<compile_context>
chip_gen: v6e
topology: v6e:2x2x1
jax: 0.10.0
libtpu: 0.0.40
codegen_flags: <defaults>
</compile_context>

<pallas_src>
import copy
import dataclasses
import math
from functools import partial

import jax
import jax.numpy as jnp
from jax.experimental import pallas as pl
from jax.experimental.pallas import tpu as pltpu

BN_EPS = 1e-5
LANE = 128

# Max tile sizes for the fused matmul (f32 accumulator + double-buffered bf16
# operand tiles stay far below the scoped VMEM limit at these sizes).
TM_MAX = 256
TN_MAX = 256
TK_MAX = 1024


def _vmem_limit_bytes():
    # ~half of physical VMEM: 64 MiB on v5e/v6e (128 MiB parts), 32 MiB on v7x.
    try:
        cap = pltpu.get_tpu_info().vmem_capacity_bytes
        return int(min(cap // 2, 96 * 1024 * 1024))
    except Exception:
        return 32 * 1024 * 1024


VMEM_LIMIT = _vmem_limit_bytes()


def _pad_to_lane(c):
    return -(-c // LANE) * LANE


def _pick_tile(dim, max_tile, align):
    """Largest tile <= max_tile dividing dim.  Channel padding guarantees dim is a
    multiple of `align` (=128), so a 128-aligned divisor always exists."""
    if dim <= max_tile:
        return dim
    t = (max_tile // align) * align
    while t >= align:
        if dim % t == 0:
            return t
        t -= align
    return dim


def _pick_tm(M):
    """Pick an 8-aligned M tile; if M has no suitable divisor, pad M up instead of
    blowing VMEM with a single whole-M block."""
    if M <= TM_MAX:
        tm = -(-M // 8) * 8
        return tm, tm
    t = (TM_MAX // 8) * 8
    while t >= 8:
        if M % t == 0:
            return t, M
        t -= 8
    t = (TM_MAX // 8) * 8
    return t, -(-M // t) * t


# --------------------------------------------------------------------------
# Fused tiled matmul + folded BN + activation (+ optional residual)
# --------------------------------------------------------------------------

def _matmul_fused_kernel(x_ref, w_ref, scale_ref, bias_ref, *rest,
                         act, has_residual):
    if has_residual:
        res_ref, o_ref, acc_ref = rest
    else:
        o_ref, acc_ref = rest
        res_ref = None

    @pl.when(pl.program_id(2) == 0)
    def _init():
        acc_ref[...] = jnp.zeros_like(acc_ref)

    acc_ref[...] += jnp.dot(x_ref[...], w_ref[...],
                            preferred_element_type=jnp.float32)

    @pl.when(pl.program_id(2) == pl.num_programs(2) - 1)
    def _finalize():
        y = acc_ref[...] * scale_ref[...] + bias_ref[...]
        if act == "silu":
            y = y * jax.nn.sigmoid(y)
        if has_residual:
            y = y + res_ref[...].astype(jnp.float32)
        o_ref[...] = y.astype(o_ref.dtype)


def matmul_bn_act(x, w, scale, bias, act="none", residual=None):
    """x: (M,K) bf16, w: (K,N) bf16, scale/bias: (1,N) f32.  K, N are multiples of
    128 (channel padding).  Returns (M, N) bf16."""
    M, K = x.shape
    N = w.shape[1]
    tn = _pick_tile(N, TN_MAX, LANE)
    tk = _pick_tile(K, TK_MAX, LANE)
    tm, M_pad = _pick_tm(M)
    if M_pad != M:
        x = jnp.pad(x, ((0, M_pad - M), (0, 0)))
        if residual is not None:
            residual = jnp.pad(residual, ((0, M_pad - M), (0, 0)))
    grid = (M_pad // tm, N // tn, K // tk)

    in_specs = [
        pl.BlockSpec((tm, tk), lambda i, j, kk: (i, kk)),
        pl.BlockSpec((tk, tn), lambda i, j, kk: (kk, j)),
        pl.BlockSpec((1, tn), lambda i, j, kk: (0, j)),
        pl.BlockSpec((1, tn), lambda i, j, kk: (0, j)),
    ]
    inputs = [x, w, scale, bias]
    if residual is not None:
        in_specs.append(pl.BlockSpec((tm, tn), lambda i, j, kk: (i, j)))
        inputs.append(residual)

    out = pl.pallas_call(
        partial(_matmul_fused_kernel, act=act, has_residual=residual is not None),
        grid=grid,
        in_specs=in_specs,
        out_specs=pl.BlockSpec((tm, tn), lambda i, j, kk: (i, j)),
        out_shape=jax.ShapeDtypeStruct((M_pad, N), jnp.bfloat16),
        scratch_shapes=[pltpu.VMEM((tm, tn), jnp.float32)],
        compiler_params=pltpu.CompilerParams(
            dimension_semantics=("parallel", "parallel", "arbitrary"),
            vmem_limit_bytes=VMEM_LIMIT),
    )(*inputs)
    return out[:M] if M_pad != M else out


# --------------------------------------------------------------------------
# Depthwise conv + BN + SiLU with the full SqueezeExcitation gate fused in the
# epilogue (mean -> FC1 -> SiLU -> FC2 -> sigmoid -> per-channel scale).
# Stride-2 layers read an even/odd phase-de-interleaved input so every tap is a
# contiguous unit-stride window (no strided ref indexing, no sublane-strided loads).
# --------------------------------------------------------------------------

def _dwconv_bn_silu_se_kernel(x_ref, w_ref, scale_ref, bias_ref,
                              w1_ref, b1_ref, w2_ref, b2_ref, o_ref,
                              *, k, stride):
    _, Ho, Wo, C = o_ref.shape
    w = w_ref[...].astype(jnp.float32)                     # (k*k, C)

    acc = jnp.zeros((Ho, Wo, C), jnp.float32)
    if stride == 1:
        x = x_ref[0]
        for kh in range(k):
            for kw in range(k):
                acc = acc + x[kh:kh + Ho, kw:kw + Wo, :].astype(jnp.float32) * \
                    w[kh * k + kw].reshape(1, 1, C)
    else:
        phases = [x_ref[i] for i in range(4)]              # (Hph, Wph, C) each
        for kh in range(k):
            for kw in range(k):
                ph = (kh % 2) * 2 + (kw % 2)
                r0, c0 = kh // 2, kw // 2
                acc = acc + phases[ph][r0:r0 + Ho, c0:c0 + Wo, :].astype(jnp.float32) * \
                    w[kh * k + kw].reshape(1, 1, C)

    y = acc * scale_ref[...].reshape(1, 1, C) + bias_ref[...].reshape(1, 1, C)
    y = y * jax.nn.sigmoid(y)                              # SiLU

    # Fused SqueezeExcitation gate.
    m = jnp.mean(y, axis=(0, 1)).reshape(1, C)
    h = jnp.dot(m, w1_ref[...], preferred_element_type=jnp.float32) + b1_ref[...]
    h = h * jax.nn.sigmoid(h)
    s = jnp.dot(h, w2_ref[...], preferred_element_type=jnp.float32) + b2_ref[...]
    gate = jax.nn.sigmoid(s)                               # (1, C)
    o_ref[0] = (y * gate.reshape(1, 1, C)).astype(o_ref.dtype)


def _phase_split(xp, k, Ho, Wo):
    """De-interleave even/odd rows/cols of the padded input (stride-2 layers).
    Returns (N*4, Hph, Wph, C); the 4 phases of image n occupy rows 4n..4n+3."""
    N, _, _, C = xp.shape
    Hph = Ho + (k - 1) // 2
    Wph = Wo + (k - 1) // 2
    phases = []
    for ph in range(2):
        for pw in range(2):
            sub = xp[:, ph::2, pw::2, :][:, :Hph, :Wph, :]
            pad_h = Hph - sub.shape[1]
            pad_w = Wph - sub.shape[2]
            if pad_h or pad_w:
                sub = jnp.pad(sub, ((0, 0), (0, pad_h), (0, pad_w), (0, 0)))
            phases.append(sub)
    return jnp.stack(phases, axis=1).reshape(N * 4, Hph, Wph, C)


def depthwise_conv_bn_silu_se(x, dw, se, k, stride):
    """x: (N,H,W,C) bf16 NHWC.  Returns (N,Ho,Wo,C) bf16, already SE-gated."""
    N, H, W, C = x.shape
    p = (k - 1) // 2
    Ho = (H + 2 * p - k) // stride + 1
    Wo = (W + 2 * p - k) // stride + 1
    xp = jnp.pad(x, ((0, 0), (p, p), (p, p), (0, 0)))      # bf16 halo pad only
    if stride == 1:
        xin = xp
        in_block = (1, H + 2 * p, W + 2 * p, C)
    else:
        xin = _phase_split(xp, k, Ho, Wo)
        in_block = (4, xin.shape[1], xin.shape[2], C)

    cse = se["w1"].shape[1]
    return pl.pallas_call(
        partial(_dwconv_bn_silu_se_kernel, k=k, stride=stride),
        grid=(N,),
        in_specs=[
            pl.BlockSpec(in_block, lambda n: (n, 0, 0, 0)),
            pl.BlockSpec((k * k, C), lambda n: (0, 0)),
            pl.BlockSpec((1, C), lambda n: (0, 0)),
            pl.BlockSpec((1, C), lambda n: (0, 0)),
            pl.BlockSpec((C, cse), lambda n: (0, 0)),
            pl.BlockSpec((1, cse), lambda n: (0, 0)),
            pl.BlockSpec((cse, C), lambda n: (0, 0)),
            pl.BlockSpec((1, C), lambda n: (0, 0)),
        ],
        out_specs=pl.BlockSpec((1, Ho, Wo, C), lambda n: (n, 0, 0, 0)),
        out_shape=jax.ShapeDtypeStruct((N, Ho, Wo, C), jnp.bfloat16),
        compiler_params=pltpu.CompilerParams(
            dimension_semantics=("parallel",),
            vmem_limit_bytes=VMEM_LIMIT),
    )(xin, dw["w"], dw["scale"], dw["bias"], se["w1"], se["b1"], se["w2"], se["b2"])


# --------------------------------------------------------------------------
# Head 1x1 conv + BN + SiLU + AdaptiveAvgPool2d(1) + flatten, fully fused.
# --------------------------------------------------------------------------

def _head_gap_kernel(x_ref, w_ref, scale_ref, bias_ref, o_ref, acc_ref):
    @pl.when(pl.program_id(2) == 0)
    def _init():
        acc_ref[...] = jnp.zeros_like(acc_ref)

    acc_ref[...] += jnp.dot(x_ref[0], w_ref[...],
                            preferred_element_type=jnp.float32)

    @pl.when(pl.program_id(2) == pl.num_programs(2) - 1)
    def _finalize():
        y = acc_ref[...] * scale_ref[...] + bias_ref[...]
        y = y * jax.nn.sigmoid(y)
        o_ref[0] = jnp.mean(y, axis=0, keepdims=True)


def head_conv_bn_silu_gap(x, w, scale, bias):
    """Fused head conv + BN + SiLU + global average pool: the big head activation
    never touches HBM.  x: (N,H,W,K) bf16 -> (N, Cout) f32."""
    N, H, W, K = x.shape
    Cout = w.shape[1]
    HW = H * W
    x3 = x.reshape(N, HW, K)
    tn = _pick_tile(Cout, TN_MAX, LANE)
    tk = _pick_tile(K, TK_MAX, LANE)
    out = pl.pallas_call(
        _head_gap_kernel,
        grid=(N, Cout // tn, K // tk),
        in_specs=[
            pl.BlockSpec((1, HW, tk), lambda b, j, kk: (b, 0, kk)),
            pl.BlockSpec((tk, tn), lambda b, j, kk: (kk, j)),
            pl.BlockSpec((1, tn), lambda b, j, kk: (0, j)),
            pl.BlockSpec((1, tn), lambda b, j, kk: (0, j)),
        ],
        out_specs=pl.BlockSpec((1, 1, tn), lambda b, j, kk: (b, 0, j)),
        out_shape=jax.ShapeDtypeStruct((N, 1, Cout), jnp.float32),
        scratch_shapes=[pltpu.VMEM((HW, tn), jnp.float32)],
        compiler_params=pltpu.CompilerParams(
            dimension_semantics=("parallel", "parallel", "arbitrary"),
            vmem_limit_bytes=VMEM_LIMIT),
    )(x3, w, scale, bias)
    return out.reshape(N, Cout)


# --------------------------------------------------------------------------
# Stem: wrapper-side im2col (tiny 3-channel input -> negligible blow-up), then the
# fused matmul kernel with K padded to 128 (lane-dense, full MXU contraction).
# --------------------------------------------------------------------------

def _im2col(x, k, stride, k_pad):
    N, H, W, C = x.shape
    p = (k - 1) // 2
    xp = jnp.pad(x, ((0, 0), (p, p), (p, p), (0, 0)))
    Ho = (H + 2 * p - k) // stride + 1
    Wo = (W + 2 * p - k) // stride + 1
    cols = []
    for kh in range(k):
        for kw in range(k):
            cols.append(jax.lax.slice(
                xp, (0, kh, kw, 0),
                (N, kh + (Ho - 1) * stride + 1, kw + (Wo - 1) * stride + 1, C),
                (1, stride, stride, 1)))
    patches = jnp.concatenate(cols, axis=-1).reshape(N * Ho * Wo, k * k * C)
    if k_pad > k * k * C:
        patches = jnp.pad(patches, ((0, 0), (0, k_pad - k * k * C)))
    return patches, (N, Ho, Wo)


# --------------------------------------------------------------------------
# Plain-JAX glue: config, parameter setup (channel-padded), forward
# --------------------------------------------------------------------------

@dataclasses.dataclass
class MBConvConfig:
    expand_ratio: int
    kernel: int
    stride: int
    input_channels: int
    out_channels: int
    num_layers: int


def _bn_fold_padded(c, c_pad):
    # gamma=1, beta=0, running_mean=0, running_var=1 (PyTorch init), eval-mode fold.
    scale = jnp.zeros((1, c_pad), jnp.float32).at[:, :c].set(1.0 / math.sqrt(1.0 + BN_EPS))
    bias = jnp.zeros((1, c_pad), jnp.float32)
    return scale, bias


def init_conv_bn(key, k_in, k_in_pad, cout, cout_pad, kernel_size):
    fan_out = cout * kernel_size * kernel_size
    w = jax.random.normal(key, (k_in, cout), jnp.float32) * math.sqrt(2.0 / fan_out)
    w_full = jnp.zeros((k_in_pad, cout_pad), jnp.float32).at[:k_in, :cout].set(w)
    scale, bias = _bn_fold_padded(cout, cout_pad)
    return {"w": w_full.astype(jnp.bfloat16), "scale": scale, "bias": bias}


def init_dwconv_bn(key, c, c_pad, k):
    fan_out = c * k * k
    w = jax.random.normal(key, (k * k, c), jnp.float32) * math.sqrt(2.0 / fan_out)
    w_full = jnp.zeros((k * k, c_pad), jnp.float32).at[:, :c].set(w)
    scale, bias = _bn_fold_padded(c, c_pad)
    return {"w": w_full.astype(jnp.bfloat16), "scale": scale, "bias": bias}


def init_se(key, c, c_pad, cse):
    k1, k2 = jax.random.split(key)
    w1 = jax.random.normal(k1, (c, cse), jnp.float32) * math.sqrt(2.0 / cse)
    w2 = jax.random.normal(k2, (cse, c), jnp.float32) * math.sqrt(2.0 / c)
    return {
        "w1": jnp.zeros((c_pad, cse), jnp.float32).at[:c, :].set(w1),
        "b1": jnp.zeros((1, cse), jnp.float32),
        "w2": jnp.zeros((cse, c_pad), jnp.float32).at[:, :c].set(w2),
        "b2": jnp.zeros((1, c_pad), jnp.float32),
    }


def init_mbconv(key, cnf):
    cin, cout = cnf.input_channels, cnf.out_channels
    cexp = cin * cnf.expand_ratio
    cin_p, cout_p, cexp_p = _pad_to_lane(cin), _pad_to_lane(cout), _pad_to_lane(cexp)
    keys = jax.random.split(key, 4)
    params = {}
    if cexp != cin:
        params["expand"] = init_conv_bn(keys[0], cin, cin_p, cexp, cexp_p, 1)
    params["dw"] = init_dwconv_bn(keys[1], cexp, cexp_p, cnf.kernel)
    squeeze = max(1, cin // 4)
    params["se"] = init_se(keys[2], cexp, cexp_p, squeeze)
    params["project"] = init_conv_bn(keys[3], cexp, cexp_p, cout, cout_p, 1)
    return params


def expand_setting(setting):
    blocks = []
    for cnf in setting:
        stage = []
        for i in range(cnf.num_layers):
            b = copy.copy(cnf)
            if i > 0:
                b = dataclasses.replace(b, input_channels=b.out_channels, stride=1)
            stage.append(b)
        blocks.append(stage)
    return blocks


def init_efficientnet(key, setting, input_channels=3):
    block_cnfs = expand_setting(setting)
    n_blocks = sum(len(s) for s in block_cnfs)
    keys = jax.random.split(key, n_blocks + 2)

    c0 = setting[0].input_channels
    stem_k_in = 3 * 3 * input_channels
    params = {"stem": init_conv_bn(keys[0], stem_k_in, _pad_to_lane(stem_k_in),
                                   c0, _pad_to_lane(c0), 3)}
    stages, ki = [], 1
    for stage_cnfs in block_cnfs:
        stage_params = []
        for cnf in stage_cnfs:
            stage_params.append(init_mbconv(keys[ki], cnf))
            ki += 1
        stages.append(stage_params)
    params["stages"] = stages

    clast = setting[-1].out_channels
    chead = 4 * clast
    params["head_conv"] = init_conv_bn(keys[-1], clast, _pad_to_lane(clast),
                                       chead, _pad_to_lane(chead), 1)
    params["head_out_channels"] = chead
    return params, block_cnfs


def mbconv_forward(x, p, cnf):
    use_res = cnf.stride == 1 and cnf.input_channels == cnf.out_channels
    N, H, W, cin_p = x.shape
    h = x
    if "expand" in p:
        e = p["expand"]
        h = matmul_bn_act(h.reshape(N * H * W, cin_p), e["w"], e["scale"], e["bias"],
                          act="silu").reshape(N, H, W, -1)
    # depthwise + BN + SiLU with the SE gate fused in the kernel epilogue
    h = depthwise_conv_bn_silu_se(h, p["dw"], p["se"], cnf.kernel, cnf.stride)
    N, Ho, Wo, cexp_p = h.shape
    pr = p["project"]
    res_flat = x.reshape(N * Ho * Wo, -1) if use_res else None
    # projection + BN (+ residual; stochastic depth is identity in eval mode)
    y = matmul_bn_act(h.reshape(N * Ho * Wo, cexp_p), pr["w"], pr["scale"], pr["bias"],
                      act="none", residual=res_flat)
    return y.reshape(N, Ho, Wo, -1)


def efficientnet_forward(x_nchw, params, block_cnfs):
    x = jnp.transpose(x_nchw, (0, 2, 3, 1)).astype(jnp.bfloat16)   # NCHW -> NHWC bf16
    st = params["stem"]
    patches, (N, Ho, Wo) = _im2col(x, k=3, stride=2, k_pad=st["w"].shape[0])
    x = matmul_bn_act(patches, st["w"], st["scale"], st["bias"], act="silu")
    x = x.reshape(N, Ho, Wo, -1)
    for stage_params, stage_cnfs in zip(params["stages"], block_cnfs):
        for blk_p, blk_cnf in zip(stage_params, stage_cnfs):
            x = mbconv_forward(x, blk_p, blk_cnf)
    hc = params["head_conv"]
    feats = head_conv_bn_silu_gap(x, hc["w"], hc["scale"], hc["bias"])   # (N, Cpad) f32
    # slice off the channel padding; head = nn.Identity() (headless zoobot usage)
    return feats[:, :params["head_out_channels"]]


if __name__ == "__main__":
    key = jax.random.PRNGKey(0)
    pkey, xkey = jax.random.split(key)

    # Small synthetic inverted-residual setting (MBConvConfig analogue)
    setting = [
        MBConvConfig(expand_ratio=1, kernel=3, stride=1, input_channels=16, out_channels=16, num_layers=1),
        MBConvConfig(expand_ratio=4, kernel=3, stride=2, input_channels=16, out_channels=24, num_layers=2),
    ]
    params, block_cnfs = init_efficientnet(pkey, setting, input_channels=3)

    x = jax.random.normal(xkey, (2, 3, 16, 16), jnp.float32)   # NCHW like PyTorch

    fwd = jax.jit(lambda inp: efficientnet_forward(inp, params, block_cnfs))
    out = jax.block_until_ready(fwd(x))

    assert out.shape == (2, 4 * setting[-1].out_channels), out.shape
    assert bool(jnp.isfinite(out).all())
    print("KERNEL_OK")
</pallas_src>

<mosaic_0001>
module attributes {stable_mosaic.version = 11 : i64} {
  func.func @_matmul_fused_kernel(%arg0: i32, %arg1: i32, %arg2: i32, %arg3: memref<128x128xbf16, #tpu.memory_space<vmem>>, %arg4: memref<128x128xbf16, #tpu.memory_space<vmem>>, %arg5: memref<1x128xf32, #tpu.memory_space<vmem>>, %arg6: memref<1x128xf32, #tpu.memory_space<vmem>>, %arg7: memref<128x128xbf16, #tpu.memory_space<vmem>>, %arg8: memref<128x128xf32, #tpu.memory_space<vmem>>) attributes {dimension_semantics = [#tpu.dimension_semantics<parallel>, #tpu.dimension_semantics<parallel>, #tpu.dimension_semantics<arbitrary>], iteration_bounds = array<i64: 1, 1, 1>, scalar_prefetch = 0 : i64, scratch_operands = 1 : i64, tpu.core_type = #tpu.core_type<tc>, window_params = [{transform_indices = @transform_0, window_bounds = array<i64: 128, 128>}, {transform_indices = @transform_1, window_bounds = array<i64: 128, 128>}, {transform_indices = @transform_2, window_bounds = array<i64: 1, 128>}, {transform_indices = @transform_3, window_bounds = array<i64: 1, 128>}, {transform_indices = @transform_4, window_bounds = array<i64: 128, 128>}]} {
    %c0_i32 = arith.constant 0 : i32
    %0 = arith.cmpi eq, %arg2, %c0_i32 : i32
    %1 = arith.extui %0 : i1 to i32
    %c0_i32_0 = arith.constant 0 : i32
    %2 = arith.cmpi ne, %1, %c0_i32_0 : i32
    scf.if %2 {
      %cst_10 = arith.constant 0.000000e+00 : f32
      %12 = vector.broadcast %cst_10 : f32 to vector<128x128xf32>
      %c0_11 = arith.constant 0 : index
      %c0_12 = arith.constant 0 : index
      %13 = vector.load %arg8[%c0_11, %c0_12] : memref<128x128xf32, #tpu.memory_space<vmem>>, vector<128x128xf32>
      tpu.vector_store %arg8[%c0_11, %c0_12], %12 {strides = array<i32>} : memref<128x128xf32, #tpu.memory_space<vmem>>, vector<128x128xf32>,
    } else {
    }
    %c0 = arith.constant 0 : index
    %c0_1 = arith.constant 0 : index
    %3 = vector.load %arg8[%c0, %c0_1] : memref<128x128xf32, #tpu.memory_space<vmem>>, vector<128x128xf32>
    %c0_2 = arith.constant 0 : index
    %c0_3 = arith.constant 0 : index
    %4 = vector.load %arg3[%c0_2, %c0_3] : memref<128x128xbf16, #tpu.memory_space<vmem>>, vector<128x128xbf16>
    %c0_4 = arith.constant 0 : index
    %c0_5 = arith.constant 0 : index
    %5 = vector.load %arg4[%c0_4, %c0_5] : memref<128x128xbf16, #tpu.memory_space<vmem>>, vector<128x128xbf16>
    %cst = arith.constant dense<0.000000e+00> : vector<128x128xf32>
    %6 = tpu.matmul %4, %5, %cst {dimension_numbers = #tpu.dot_dimension_numbers<[1], [0], [0], [1], [0, 0, 1, 1], [], []>} : vector<128x128xbf16>, vector<128x128xbf16>, vector<128x128xf32> -> vector<128x128xf32>
    %7 = arith.addf %3, %6 : vector<128x128xf32>
    %c0_6 = arith.constant 0 : index
    %c0_7 = arith.constant 0 : index
    %8 = vector.load %arg8[%c0_6, %c0_7] : memref<128x128xf32, #tpu.memory_space<vmem>>, vector<128x128xf32>
    tpu.vector_store %arg8[%c0_6, %c0_7], %7 {strides = array<i32>} : memref<128x128xf32, #tpu.memory_space<vmem>>, vector<128x128xf32>,
    %c0_i32_8 = arith.constant 0 : i32
    %9 = arith.cmpi eq, %arg2, %c0_i32_8 : i32
    %10 = arith.extui %9 : i1 to i32
    %c0_i32_9 = arith.constant 0 : i32
    %11 = arith.cmpi ne, %10, %c0_i32_9 : i32
    scf.if %11 {
      %c0_10 = arith.constant 0 : index
      %c0_11 = arith.constant 0 : index
      %12 = vector.load %arg8[%c0_10, %c0_11] : memref<128x128xf32, #tpu.memory_space<vmem>>, vector<128x128xf32>
      %c0_12 = arith.constant 0 : index
      %c0_13 = arith.constant 0 : index
      %13 = vector.load %arg5[%c0_12, %c0_13] : memref<1x128xf32, #tpu.memory_space<vmem>>, vector<1x128xf32>
      %14 = vector.broadcast %13 : vector<1x128xf32> to vector<128x128xf32>
      %15 = arith.mulf %12, %14 : vector<128x128xf32>
      %c0_14 = arith.constant 0 : index
      %c0_15 = arith.constant 0 : index
      %16 = vector.load %arg6[%c0_14, %c0_15] : memref<1x128xf32, #tpu.memory_space<vmem>>, vector<1x128xf32>
      %17 = vector.broadcast %16 : vector<1x128xf32> to vector<128x128xf32>
      %18 = arith.addf %15, %17 : vector<128x128xf32>
      %19 = arith.negf %18 : vector<128x128xf32>
      %20 = math.exp %19 : vector<128x128xf32>
      %cst_16 = arith.constant 1.000000e+00 : f32
      %21 = vector.broadcast %cst_16 : f32 to vector<128x128xf32>
      %22 = arith.addf %21, %20 : vector<128x128xf32>
      %23 = arith.divf %21, %22 : vector<128x128xf32>
      %24 = arith.mulf %18, %23 : vector<128x128xf32>
      %25 = arith.truncf %24 : vector<128x128xf32> to vector<128x128xbf16>
      %c0_17 = arith.constant 0 : index
      %c0_18 = arith.constant 0 : index
      %26 = vector.load %arg7[%c0_17, %c0_18] : memref<128x128xbf16, #tpu.memory_space<vmem>>, vector<128x128xbf16>
      tpu.vector_store %arg7[%c0_17, %c0_18], %25 {strides = array<i32>} : memref<128x128xbf16, #tpu.memory_space<vmem>>, vector<128x128xbf16>,
    } else {
    }
    return
  }
  func.func @transform_0(%arg0: i32, %arg1: i32, %arg2: i32) -> (i32, i32) {
    %c0_i32 = arith.constant 0 : i32
    return %arg0, %arg2 : i32, i32
  }
  func.func @transform_1(%arg0: i32, %arg1: i32, %arg2: i32) -> (i32, i32) {
    %c0_i32 = arith.constant 0 : i32
    return %arg2, %arg1 : i32, i32
  }
  func.func @transform_2(%arg0: i32, %arg1: i32, %arg2: i32) -> (i32, i32) {
    %c0_i32 = arith.constant 0 : i32
    %c0_i32_0 = arith.constant 0 : i32
    return %c0_i32, %arg1 : i32, i32
  }
  func.func @transform_3(%arg0: i32, %arg1: i32, %arg2: i32) -> (i32, i32) {
    %c0_i32 = arith.constant 0 : i32
    %c0_i32_0 = arith.constant 0 : i32
    return %c0_i32, %arg1 : i32, i32
  }
  func.func @transform_4(%arg0: i32, %arg1: i32, %arg2: i32) -> (i32, i32) {
    %c0_i32 = arith.constant 0 : i32
    return %arg0, %arg1 : i32, i32
  }
}

module attributes {stable_mosaic.version = 11 : i64} {
  func.func @_dwconv_bn_silu_se_kernel(%arg0: i32, %arg1: memref<1x10x10x128xbf16, #tpu.memory_space<vmem>>, %arg2: memref<9x128xbf16, #tpu.memory_space<vmem>>, %arg3: memref<1x128xf32, #tpu.memory_space<vmem>>, %arg4: memref<1x128xf32, #tpu.memory_space<vmem>>, %arg5: memref<128x4xf32, #tpu.memory_space<vmem>>, %arg6: memref<1x4xf32, #tpu.memory_space<vmem>>, %arg7: memref<4x128xf32, #tpu.memory_space<vmem>>, %arg8: memref<1x128xf32, #tpu.memory_space<vmem>>, %arg9: memref<1x8x8x128xbf16, #tpu.memory_space<vmem>>) attributes {dimension_semantics = [#tpu.dimension_semantics<parallel>], iteration_bounds = array<i64: 2>, scalar_prefetch = 0 : i64, scratch_operands = 0 : i64, tpu.core_type = #tpu.core_type<tc>, window_params = [{transform_indices = @transform_0, window_bounds = array<i64: 1, 10, 10, 128>}, {pipeline_mode = #tpu.pipeline_mode<synchronous>, transform_indices = @transform_1, window_bounds = array<i64: 9, 128>}, {pipeline_mode = #tpu.pipeline_mode<synchronous>, transform_indices = @transform_2, window_bounds = array<i64: 1, 128>}, {pipeline_mode = #tpu.pipeline_mode<synchronous>, transform_indices = @transform_3, window_bounds = array<i64: 1, 128>}, {pipeline_mode = #tpu.pipeline_mode<synchronous>, transform_indices = @transform_4, window_bounds = array<i64: 128, 4>}, {pipeline_mode = #tpu.pipeline_mode<synchronous>, transform_indices = @transform_5, window_bounds = array<i64: 1, 4>}, {pipeline_mode = #tpu.pipeline_mode<synchronous>, transform_indices = @transform_6, window_bounds = array<i64: 4, 128>}, {pipeline_mode = #tpu.pipeline_mode<synchronous>, transform_indices = @transform_7, window_bounds = array<i64: 1, 128>}, {transform_indices = @transform_8, window_bounds = array<i64: 1, 8, 8, 128>}]} {
    %c0 = arith.constant 0 : index
    %c0_0 = arith.constant 0 : index
    %0 = vector.load %arg2[%c0, %c0_0] : memref<9x128xbf16, #tpu.memory_space<vmem>>, vector<9x128xbf16>
    %1 = arith.extf %0 : vector<9x128xbf16> to vector<9x128xf32>
    %cst = arith.constant 0.000000e+00 : f32
    %2 = vector.broadcast %cst : f32 to vector<8x8x128xf32>
    %c0_1 = arith.constant 0 : index
    %c0_2 = arith.constant 0 : index
    %c0_3 = arith.constant 0 : index
    %c0_4 = arith.constant 0 : index
    %3 = vector.load %arg1[%c0_1, %c0_2, %c0_3, %c0_4] : memref<1x10x10x128xbf16, #tpu.memory_space<vmem>>, vector<1x10x10x128xbf16>
    %4 = vector.shape_cast %3 : vector<1x10x10x128xbf16> to vector<10x10x128xbf16>
    %5 = vector.extract_strided_slice %4 {offsets = [0, 0, 0], sizes = [8, 8, 128], strides = [1, 1, 1]} : vector<10x10x128xbf16> to vector<8x8x128xbf16>
    %6 = arith.extf %5 : vector<8x8x128xbf16> to vector<8x8x128xf32>
    %7 = vector.extract_strided_slice %1 {offsets = [0, 0], sizes = [1, 128], strides = [1, 1]} : vector<9x128xf32> to vector<1x128xf32>
    %8 = vector.shape_cast %7 : vector<1x128xf32> to vector<128xf32>
    %9 = vector.shape_cast %8 : vector<128xf32> to vector<1x1x128xf32>
    %10 = vector.broadcast %9 : vector<1x1x128xf32> to vector<8x8x128xf32>
    %11 = arith.mulf %6, %10 : vector<8x8x128xf32>
    %12 = arith.addf %2, %11 : vector<8x8x128xf32>
    %13 = vector.extract_strided_slice %4 {offsets = [0, 1, 0], sizes = [8, 8, 128], strides = [1, 1, 1]} : vector<10x10x128xbf16> to vector<8x8x128xbf16>
    %14 = arith.extf %13 : vector<8x8x128xbf16> to vector<8x8x128xf32>
    %15 = vector.extract_strided_slice %1 {offsets = [1, 0], sizes = [1, 128], strides = [1, 1]} : vector<9x128xf32> to vector<1x128xf32>
    %16 = vector.shape_cast %15 : vector<1x128xf32> to vector<128xf32>
    %17 = vector.shape_cast %16 : vector<128xf32> to vector<1x1x128xf32>
    %18 = vector.broadcast %17 : vector<1x1x128xf32> to vector<8x8x128xf32>
    %19 = arith.mulf %14, %18 : vector<8x8x128xf32>
    %20 = arith.addf %12, %19 : vector<8x8x128xf32>
    %21 = vector.extract_strided_slice %4 {offsets = [0, 2, 0], sizes = [8, 8, 128], strides = [1, 1, 1]} : vector<10x10x128xbf16> to vector<8x8x128xbf16>
    %22 = arith.extf %21 : vector<8x8x128xbf16> to vector<8x8x128xf32>
    %23 = vector.extract_strided_slice %1 {offsets = [2, 0], sizes = [1, 128], strides = [1, 1]} : vector<9x128xf32> to vector<1x128xf32>
    %24 = vector.shape_cast %23 : vector<1x128xf32> to vector<128xf32>
    %25 = vector.shape_cast %24 : vector<128xf32> to vector<1x1x128xf32>
    %26 = vector.broadcast %25 : vector<1x1x128xf32> to vector<8x8x128xf32>
    %27 = arith.mulf %22, %26 : vector<8x8x128xf32>
    %28 = arith.addf %20, %27 : vector<8x8x128xf32>
    %29 = vector.extract_strided_slice %4 {offsets = [1, 0, 0], sizes = [8, 8, 128], strides = [1, 1, 1]} : vector<10x10x128xbf16> to vector<8x8x128xbf16>
    %30 = arith.extf %29 : vector<8x8x128xbf16> to vector<8x8x128xf32>
    %31 = vector.extract_strided_slice %1 {offsets = [3, 0], sizes = [1, 128], strides = [1, 1]} : vector<9x128xf32> to vector<1x128xf32>
    %32 = vector.shape_cast %31 : vector<1x128xf32> to vector<128xf32>
    %33 = vector.shape_cast %32 : vector<128xf32> to vector<1x1x128xf32>
    %34 = vector.broadcast %33 : vector<1x1x128xf32> to vector<8x8x128xf32>
    %35 = arith.mulf %30, %34 : vector<8x8x128xf32>
    %36 = arith.addf %28, %35 : vector<8x8x128xf32>
    %37 = vector.extract_strided_slice %4 {offsets = [1, 1, 0], sizes = [8, 8, 128], strides = [1, 1, 1]} : vector<10x10x128xbf16> to vector<8x8x128xbf16>
    %38 = arith.extf %37 : vector<8x8x128xbf16> to vector<8x8x128xf32>
    %39 = vector.extract_strided_slice %1 {offsets = [4, 0], sizes = [1, 128], strides = [1, 1]} : vector<9x128xf32> to vector<1x128xf32>
    %40 = vector.shape_cast %39 : vector<1x128xf32> to vector<128xf32>
    %41 = vector.shape_cast %40 : vector<128xf32> to vector<1x1x128xf32>
    %42 = vector.broadcast %41 : vector<1x1x128xf32> to vector<8x8x128xf32>
    %43 = arith.mulf %38, %42 : vector<8x8x128xf32>
    %44 = arith.addf %36, %43 : vector<8x8x128xf32>
    %45 = vector.extract_strided_slice %4 {offsets = [1, 2, 0], sizes = [8, 8, 128], strides = [1, 1, 1]} : vector<10x10x128xbf16> to vector<8x8x128xbf16>
    %46 = arith.extf %45 : vector<8x8x128xbf16> to vector<8x8x128xf32>
    %47 = vector.extract_strided_slice %1 {offsets = [5, 0], sizes = [1, 128], strides = [1, 1]} : vector<9x128xf32> to vector<1x128xf32>
    %48 = vector.shape_cast %47 : vector<1x128xf32> to vector<128xf32>
    %49 = vector.shape_cast %48 : vector<128xf32> to vector<1x1x128xf32>
    %50 = vector.broadcast %49 : vector<1x1x128xf32> to vector<8x8x128xf32>
    %51 = arith.mulf %46, %50 : vector<8x8x128xf32>
    %52 = arith.addf %44, %51 : vector<8x8x128xf32>
    %53 = vector.extract_strided_slice %4 {offsets = [2, 0, 0], sizes = [8, 8, 128], strides = [1, 1, 1]} : vector<10x10x128xbf16> to vector<8x8x128xbf16>
    %54 = arith.extf %53 : vector<8x8x128xbf16> to vector<8x8x128xf32>
    %55 = vector.extract_strided_slice %1 {offsets = [6, 0], sizes = [1, 128], strides = [1, 1]} : vector<9x128xf32> to vector<1x128xf32>
    %56 = vector.shape_cast %55 : vector<1x128xf32> to vector<128xf32>
    %57 = vector.shape_cast %56 : vector<128xf32> to vector<1x1x128xf32>
    %58 = vector.broadcast %57 : vector<1x1x128xf32> to vector<8x8x128xf32>
    %59 = arith.mulf %54, %58 : vector<8x8x128xf32>
    %60 = arith.addf %52, %59 : vector<8x8x128xf32>
    %61 = vector.extract_strided_slice %4 {offsets = [2, 1, 0], sizes = [8, 8, 128], strides = [1, 1, 1]} : vector<10x10x128xbf16> to vector<8x8x128xbf16>
    %62 = arith.extf %61 : vector<8x8x128xbf16> to vector<8x8x128xf32>
    %63 = vector.extract_strided_slice %1 {offsets = [7, 0], sizes = [1, 128], strides = [1, 1]} : vector<9x128xf32> to vector<1x128xf32>
    %64 = vector.shape_cast %63 : vector<1x128xf32> to vector<128xf32>
    %65 = vector.shape_cast %64 : vector<128xf32> to vector<1x1x128xf32>
    %66 = vector.broadcast %65 : vector<1x1x128xf32> to vector<8x8x128xf32>
    %67 = arith.mulf %62, %66 : vector<8x8x128xf32>
    %68 = arith.addf %60, %67 : vector<8x8x128xf32>
    %69 = vector.extract_strided_slice %4 {offsets = [2, 2, 0], sizes = [8, 8, 128], strides = [1, 1, 1]} : vector<10x10x128xbf16> to vector<8x8x128xbf16>
    %70 = arith.extf %69 : vector<8x8x128xbf16> to vector<8x8x128xf32>
    %71 = vector.extract_strided_slice %1 {offsets = [8, 0], sizes = [1, 128], strides = [1, 1]} : vector<9x128xf32> to vector<1x128xf32>
    %72 = vector.shape_cast %71 : vector<1x128xf32> to vector<128xf32>
    %73 = vector.shape_cast %72 : vector<128xf32> to vector<1x1x128xf32>
    %74 = vector.broadcast %73 : vector<1x1x128xf32> to vector<8x8x128xf32>
    %75 = arith.mulf %70, %74 : vector<8x8x128xf32>
    %76 = arith.addf %68, %75 : vector<8x8x128xf32>
    %c0_5 = arith.constant 0 : index
    %c0_6 = arith.constant 0 : index
    %77 = vector.load %arg3[%c0_5, %c0_6] : memref<1x128xf32, #tpu.memory_space<vmem>>, vector<1x128xf32>
    %78 = vector.shape_cast %77 : vector<1x128xf32> to vector<1x1x128xf32>
    %79 = vector.broadcast %78 : vector<1x1x128xf32> to vector<8x8x128xf32>
    %80 = arith.mulf %76, %79 : vector<8x8x128xf32>
    %c0_7 = arith.constant 0 : index
    %c0_8 = arith.constant 0 : index
    %81 = vector.load %arg4[%c0_7, %c0_8] : memref<1x128xf32, #tpu.memory_space<vmem>>, vector<1x128xf32>
    %82 = vector.shape_cast %81 : vector<1x128xf32> to vector<1x1x128xf32>
    %83 = vector.broadcast %82 : vector<1x1x128xf32> to vector<8x8x128xf32>
    %84 = arith.addf %80, %83 : vector<8x8x128xf32>
    %85 = arith.negf %84 : vector<8x8x128xf32>
    %86 = math.exp %85 : vector<8x8x128xf32>
    %cst_9 = arith.constant 1.000000e+00 : f32
    %87 = vector.broadcast %cst_9 : f32 to vector<8x8x128xf32>
    %88 = arith.addf %87, %86 : vector<8x8x128xf32>
    %89 = arith.divf %87, %88 : vector<8x8x128xf32>
    %90 = arith.mulf %84, %89 : vector<8x8x128xf32>
    %cst_10 = arith.constant dense<0.000000e+00> : vector<128xf32>
    %91 = vector.multi_reduction <add>, %90, %cst_10 [0, 1] : vector<8x8x128xf32> to vector<128xf32>
    %cst_11 = arith.constant 6.400000e+01 : f32
    %92 = vector.broadcast %cst_11 : f32 to vector<128xf32>
    %93 = arith.divf %91, %92 : vector<128xf32>
    %94 = vector.shape_cast %93 : vector<128xf32> to vector<1x128xf32>
    %c0_12 = arith.constant 0 : index
    %c0_13 = arith.constant 0 : index
    %95 = vector.load %arg5[%c0_12, %c0_13] : memref<128x4xf32, #tpu.memory_space<vmem>>, vector<128x4xf32>
    %cst_14 = arith.constant dense<0.000000e+00> : vector<1x4xf32>
    %96 = tpu.matmul %94, %95, %cst_14 {dimension_numbers = #tpu.dot_dimension_numbers<[1], [0], [0], [1], [0, 0, 1, 1], [], []>} : vector<1x128xf32>, vector<128x4xf32>, vector<1x4xf32> -> vector<1x4xf32>
    %c0_15 = arith.constant 0 : index
    %c0_16 = arith.constant 0 : index
    %97 = vector.load %arg6[%c0_15, %c0_16] : memref<1x4xf32, #tpu.memory_space<vmem>>, vector<1x4xf32>
    %98 = arith.addf %96, %97 : vector<1x4xf32>
    %99 = arith.negf %98 : vector<1x4xf32>
    %100 = math.exp %99 : vector<1x4xf32>
    %cst_17 = arith.constant 1.000000e+00 : f32
    %101 = vector.broadcast %cst_17 : f32 to vector<1x4xf32>
    %102 = arith.addf %101, %100 : vector<1x4xf32>
    %103 = arith.divf %101, %102 : vector<1x4xf32>
    %104 = arith.mulf %98, %103 : vector<1x4xf32>
    %c0_18 = arith.constant 0 : index
    %c0_19 = arith.constant 0 : index
    %105 = vector.load %arg7[%c0_18, %c0_19] : memref<4x128xf32, #tpu.memory_space<vmem>>, vector<4x128xf32>
    %cst_20 = arith.constant dense<0.000000e+00> : vector<1x128xf32>
    %106 = tpu.matmul %104, %105, %cst_20 {dimension_numbers = #tpu.dot_dimension_numbers<[1], [0], [0], [1], [0, 0, 1, 1], [], []>} : vector<1x4xf32>, vector<4x128xf32>, vector<1x128xf32> -> vector<1x128xf32>
    %c0_21 = arith.constant 0 : index
    %c0_22 = arith.constant 0 : index
    %107 = vector.load %arg8[%c0_21, %c0_22] : memref<1x128xf32, #tpu.memory_space<vmem>>, vector<1x128xf32>
    %108 = arith.addf %106, %107 : vector<1x128xf32>
    %109 = arith.negf %108 : vector<1x128xf32>
    %110 = math.exp %109 : vector<1x128xf32>
    %cst_23 = arith.constant 1.000000e+00 : f32
    %111 = vector.broadcast %cst_23 : f32 to vector<1x128xf32>
    %112 = arith.addf %111, %110 : vector<1x128xf32>
    %113 = arith.divf %111, %112 : vector<1x128xf32>
    %114 = vector.shape_cast %113 : vector<1x128xf32> to vector<1x1x128xf32>
    %115 = vector.broadcast %114 : vector<1x1x128xf32> to vector<8x8x128xf32>
    %116 = arith.mulf %90, %115 : vector<8x8x128xf32>
    %117 = arith.truncf %116 : vector<8x8x128xf32> to vector<8x8x128xbf16>
    %c0_24 = arith.constant 0 : index
    %c0_25 = arith.constant 0 : index
    %c0_26 = arith.constant 0 : index
    %c0_27 = arith.constant 0 : index
    %118 = vector.load %arg9[%c0_24, %c0_25, %c0_26, %c0_27] : memref<1x8x8x128xbf16, #tpu.memory_space<vmem>>, vector<1x8x8x128xbf16>
    %119 = vector.shape_cast %118 : vector<1x8x8x128xbf16> to vector<8x8x128xbf16>
    %120 = vector.shape_cast %117 : vector<8x8x128xbf16> to vector<1x8x8x128xbf16>
    tpu.vector_store %arg9[%c0_24, %c0_25, %c0_26, %c0_27], %120 {strides = array<i32>} : memref<1x8x8x128xbf16, #tpu.memory_space<vmem>>, vector<1x8x8x128xbf16>,
    return
  }
  func.func @transform_0(%arg0: i32) -> (i32, i32, i32, i32) {
    %c0_i32 = arith.constant 0 : i32
    %c0_i32_0 = arith.constant 0 : i32
    %c0_i32_1 = arith.constant 0 : i32
    %c0_i32_2 = arith.constant 0 : i32
    return %arg0, %c0_i32, %c0_i32_0, %c0_i32_1 : i32, i32, i32, i32
  }
  func.func @transform_1(%arg0: i32) -> (i32, i32) {
    %c0_i32 = arith.constant 0 : i32
    %c0_i32_0 = arith.constant 0 : i32
    %c0_i32_1 = arith.constant 0 : i32
    return %c0_i32, %c0_i32_0 : i32, i32
  }
  func.func @transform_2(%arg0: i32) -> (i32, i32) {
    %c0_i32 = arith.constant 0 : i32
    %c0_i32_0 = arith.constant 0 : i32
    %c0_i32_1 = arith.constant 0 : i32
    return %c0_i32, %c0_i32_0 : i32, i32
  }
  func.func @transform_3(%arg0: i32) -> (i32, i32) {
    %c0_i32 = arith.constant 0 : i32
    %c0_i32_0 = arith.constant 0 : i32
    %c0_i32_1 = arith.constant 0 : i32
    return %c0_i32, %c0_i32_0 : i32, i32
  }
  func.func @transform_4(%arg0: i32) -> (i32, i32) {
    %c0_i32 = arith.constant 0 : i32
    %c0_i32_0 = arith.constant 0 : i32
    %c0_i32_1 = arith.constant 0 : i32
    return %c0_i32, %c0_i32_0 : i32, i32
  }
  func.func @transform_5(%arg0: i32) -> (i32, i32) {
    %c0_i32 = arith.constant 0 : i32
    %c0_i32_0 = arith.constant 0 : i32
    %c0_i32_1 = arith.constant 0 : i32
    return %c0_i32, %c0_i32_0 : i32, i32
  }
  func.func @transform_6(%arg0: i32) -> (i32, i32) {
    %c0_i32 = arith.constant 0 : i32
    %c0_i32_0 = arith.constant 0 : i32
    %c0_i32_1 = arith.constant 0 : i32
    return %c0_i32, %c0_i32_0 : i32, i32
  }
  func.func @transform_7(%arg0: i32) -> (i32, i32) {
    %c0_i32 = arith.constant 0 : i32
    %c0_i32_0 = arith.constant 0 : i32
    %c0_i32_1 = arith.constant 0 : i32
    return %c0_i32, %c0_i32_0 : i32, i32
  }
  func.func @transform_8(%arg0: i32) -> (i32, i32, i32, i32) {
    %c0_i32 = arith.constant 0 : i32
    %c0_i32_0 = arith.constant 0 : i32
    %c0_i32_1 = arith.constant 0 : i32
    %c0_i32_2 = arith.constant 0 : i32
    return %arg0, %c0_i32, %c0_i32_0, %c0_i32_1 : i32, i32, i32, i32
  }
}

module attributes {stable_mosaic.version = 11 : i64} {
  func.func @_matmul_fused_kernel(%arg0: i32, %arg1: i32, %arg2: i32, %arg3: memref<128x128xbf16, #tpu.memory_space<vmem>>, %arg4: memref<128x128xbf16, #tpu.memory_space<vmem>>, %arg5: memref<1x128xf32, #tpu.memory_space<vmem>>, %arg6: memref<1x128xf32, #tpu.memory_space<vmem>>, %arg7: memref<128x128xbf16, #tpu.memory_space<vmem>>, %arg8: memref<128x128xbf16, #tpu.memory_space<vmem>>, %arg9: memref<128x128xf32, #tpu.memory_space<vmem>>) attributes {dimension_semantics = [#tpu.dimension_semantics<parallel>, #tpu.dimension_semantics<parallel>, #tpu.dimension_semantics<arbitrary>], iteration_bounds = array<i64: 1, 1, 1>, scalar_prefetch = 0 : i64, scratch_operands = 1 : i64, tpu.core_type = #tpu.core_type<tc>, window_params = [{transform_indices = @transform_0, window_bounds = array<i64: 128, 128>}, {transform_indices = @transform_1, window_bounds = array<i64: 128, 128>}, {transform_indices = @transform_2, window_bounds = array<i64: 1, 128>}, {transform_indices = @transform_3, window_bounds = array<i64: 1, 128>}, {transform_indices = @transform_4, window_bounds = array<i64: 128, 128>}, {transform_indices = @transform_5, window_bounds = array<i64: 128, 128>}]} {
    %c0_i32 = arith.constant 0 : i32
    %0 = arith.cmpi eq, %arg2, %c0_i32 : i32
    %1 = arith.extui %0 : i1 to i32
    %c0_i32_0 = arith.constant 0 : i32
    %2 = arith.cmpi ne, %1, %c0_i32_0 : i32
    scf.if %2 {
      %cst_10 = arith.constant 0.000000e+00 : f32
      %12 = vector.broadcast %cst_10 : f32 to vector<128x128xf32>
      %c0_11 = arith.constant 0 : index
      %c0_12 = arith.constant 0 : index
      %13 = vector.load %arg9[%c0_11, %c0_12] : memref<128x128xf32, #tpu.memory_space<vmem>>, vector<128x128xf32>
      tpu.vector_store %arg9[%c0_11, %c0_12], %12 {strides = array<i32>} : memref<128x128xf32, #tpu.memory_space<vmem>>, vector<128x128xf32>,
    } else {
    }
    %c0 = arith.constant 0 : index
    %c0_1 = arith.constant 0 : index
    %3 = vector.load %arg9[%c0, %c0_1] : memref<128x128xf32, #tpu.memory_space<vmem>>, vector<128x128xf32>
    %c0_2 = arith.constant 0 : index
    %c0_3 = arith.constant 0 : index
    %4 = vector.load %arg3[%c0_2, %c0_3] : memref<128x128xbf16, #tpu.memory_space<vmem>>, vector<128x128xbf16>
    %c0_4 = arith.constant 0 : index
    %c0_5 = arith.constant 0 : index
    %5 = vector.load %arg4[%c0_4, %c0_5] : memref<128x128xbf16, #tpu.memory_space<vmem>>, vector<128x128xbf16>
    %cst = arith.constant dense<0.000000e+00> : vector<128x128xf32>
    %6 = tpu.matmul %4, %5, %cst {dimension_numbers = #tpu.dot_dimension_numbers<[1], [0], [0], [1], [0, 0, 1, 1], [], []>} : vector<128x128xbf16>, vector<128x128xbf16>, vector<128x128xf32> -> vector<128x128xf32>
    %7 = arith.addf %3, %6 : vector<128x128xf32>
    %c0_6 = arith.constant 0 : index
    %c0_7 = arith.constant 0 : index
    %8 = vector.load %arg9[%c0_6, %c0_7] : memref<128x128xf32, #tpu.memory_space<vmem>>, vector<128x128xf32>
    tpu.vector_store %arg9[%c0_6, %c0_7], %7 {strides = array<i32>} : memref<128x128xf32, #tpu.memory_space<vmem>>, vector<128x128xf32>,
    %c0_i32_8 = arith.constant 0 : i32
    %9 = arith.cmpi eq, %arg2, %c0_i32_8 : i32
    %10 = arith.extui %9 : i1 to i32
    %c0_i32_9 = arith.constant 0 : i32
    %11 = arith.cmpi ne, %10, %c0_i32_9 : i32
    scf.if %11 {
      %c0_10 = arith.constant 0 : index
      %c0_11 = arith.constant 0 : index
      %12 = vector.load %arg9[%c0_10, %c0_11] : memref<128x128xf32, #tpu.memory_space<vmem>>, vector<128x128xf32>
      %c0_12 = arith.constant 0 : index
      %c0_13 = arith.constant 0 : index
      %13 = vector.load %arg5[%c0_12, %c0_13] : memref<1x128xf32, #tpu.memory_space<vmem>>, vector<1x128xf32>
      %14 = vector.broadcast %13 : vector<1x128xf32> to vector<128x128xf32>
      %15 = arith.mulf %12, %14 : vector<128x128xf32>
      %c0_14 = arith.constant 0 : index
      %c0_15 = arith.constant 0 : index
      %16 = vector.load %arg6[%c0_14, %c0_15] : memref<1x128xf32, #tpu.memory_space<vmem>>, vector<1x128xf32>
      %17 = vector.broadcast %16 : vector<1x128xf32> to vector<128x128xf32>
      %18 = arith.addf %15, %17 : vector<128x128xf32>
      %c0_16 = arith.constant 0 : index
      %c0_17 = arith.constant 0 : index
      %19 = vector.load %arg7[%c0_16, %c0_17] : memref<128x128xbf16, #tpu.memory_space<vmem>>, vector<128x128xbf16>
      %20 = arith.extf %19 : vector<128x128xbf16> to vector<128x128xf32>
      %21 = arith.addf %18, %20 : vector<128x128xf32>
      %22 = arith.truncf %21 : vector<128x128xf32> to vector<128x128xbf16>
      %c0_18 = arith.constant 0 : index
      %c0_19 = arith.constant 0 : index
      %23 = vector.load %arg8[%c0_18, %c0_19] : memref<128x128xbf16, #tpu.memory_space<vmem>>, vector<128x128xbf16>
      tpu.vector_store %arg8[%c0_18, %c0_19], %22 {strides = array<i32>} : memref<128x128xbf16, #tpu.memory_space<vmem>>, vector<128x128xbf16>,
    } else {
    }
    return
  }
  func.func @transform_0(%arg0: i32, %arg1: i32, %arg2: i32) -> (i32, i32) {
    %c0_i32 = arith.constant 0 : i32
    return %arg0, %arg2 : i32, i32
  }
  func.func @transform_1(%arg0: i32, %arg1: i32, %arg2: i32) -> (i32, i32) {
    %c0_i32 = arith.constant 0 : i32
    return %arg2, %arg1 : i32, i32
  }
  func.func @transform_2(%arg0: i32, %arg1: i32, %arg2: i32) -> (i32, i32) {
    %c0_i32 = arith.constant 0 : i32
    %c0_i32_0 = arith.constant 0 : i32
    return %c0_i32, %arg1 : i32, i32
  }
  func.func @transform_3(%arg0: i32, %arg1: i32, %arg2: i32) -> (i32, i32) {
    %c0_i32 = arith.constant 0 : i32
    %c0_i32_0 = arith.constant 0 : i32
    return %c0_i32, %arg1 : i32, i32
  }
  func.func @transform_4(%arg0: i32, %arg1: i32, %arg2: i32) -> (i32, i32) {
    %c0_i32 = arith.constant 0 : i32
    return %arg0, %arg1 : i32, i32
  }
  func.func @transform_5(%arg0: i32, %arg1: i32, %arg2: i32) -> (i32, i32) {
    %c0_i32 = arith.constant 0 : i32
    return %arg0, %arg1 : i32, i32
  }
}

module attributes {stable_mosaic.version = 11 : i64} {
  func.func @_dwconv_bn_silu_se_kernel(%arg0: i32, %arg1: memref<4x5x5x128xbf16, #tpu.memory_space<vmem>>, %arg2: memref<9x128xbf16, #tpu.memory_space<vmem>>, %arg3: memref<1x128xf32, #tpu.memory_space<vmem>>, %arg4: memref<1x128xf32, #tpu.memory_space<vmem>>, %arg5: memref<128x4xf32, #tpu.memory_space<vmem>>, %arg6: memref<1x4xf32, #tpu.memory_space<vmem>>, %arg7: memref<4x128xf32, #tpu.memory_space<vmem>>, %arg8: memref<1x128xf32, #tpu.memory_space<vmem>>, %arg9: memref<1x4x4x128xbf16, #tpu.memory_space<vmem>>) attributes {dimension_semantics = [#tpu.dimension_semantics<parallel>], iteration_bounds = array<i64: 2>, scalar_prefetch = 0 : i64, scratch_operands = 0 : i64, tpu.core_type = #tpu.core_type<tc>, window_params = [{transform_indices = @transform_0, window_bounds = array<i64: 4, 5, 5, 128>}, {pipeline_mode = #tpu.pipeline_mode<synchronous>, transform_indices = @transform_1, window_bounds = array<i64: 9, 128>}, {pipeline_mode = #tpu.pipeline_mode<synchronous>, transform_indices = @transform_2, window_bounds = array<i64: 1, 128>}, {pipeline_mode = #tpu.pipeline_mode<synchronous>, transform_indices = @transform_3, window_bounds = array<i64: 1, 128>}, {pipeline_mode = #tpu.pipeline_mode<synchronous>, transform_indices = @transform_4, window_bounds = array<i64: 128, 4>}, {pipeline_mode = #tpu.pipeline_mode<synchronous>, transform_indices = @transform_5, window_bounds = array<i64: 1, 4>}, {pipeline_mode = #tpu.pipeline_mode<synchronous>, transform_indices = @transform_6, window_bounds = array<i64: 4, 128>}, {pipeline_mode = #tpu.pipeline_mode<synchronous>, transform_indices = @transform_7, window_bounds = array<i64: 1, 128>}, {transform_indices = @transform_8, window_bounds = array<i64: 1, 4, 4, 128>}]} {
    %c0 = arith.constant 0 : index
    %c0_0 = arith.constant 0 : index
    %0 = vector.load %arg2[%c0, %c0_0] : memref<9x128xbf16, #tpu.memory_space<vmem>>, vector<9x128xbf16>
    %1 = arith.extf %0 : vector<9x128xbf16> to vector<9x128xf32>
    %cst = arith.constant 0.000000e+00 : f32
    %2 = vector.broadcast %cst : f32 to vector<4x4x128xf32>
    %c0_1 = arith.constant 0 : index
    %c0_2 = arith.constant 0 : index
    %c0_3 = arith.constant 0 : index
    %c0_4 = arith.constant 0 : index
    %3 = vector.load %arg1[%c0_1, %c0_2, %c0_3, %c0_4] : memref<4x5x5x128xbf16, #tpu.memory_space<vmem>>, vector<1x5x5x128xbf16>
    %4 = vector.shape_cast %3 : vector<1x5x5x128xbf16> to vector<5x5x128xbf16>
    %c1 = arith.constant 1 : index
    %c0_5 = arith.constant 0 : index
    %c0_6 = arith.constant 0 : index
    %c0_7 = arith.constant 0 : index
    %5 = vector.load %arg1[%c1, %c0_5, %c0_6, %c0_7] : memref<4x5x5x128xbf16, #tpu.memory_space<vmem>>, vector<1x5x5x128xbf16>
    %6 = vector.shape_cast %5 : vector<1x5x5x128xbf16> to vector<5x5x128xbf16>
    %c2 = arith.constant 2 : index
    %c0_8 = arith.constant 0 : index
    %c0_9 = arith.constant 0 : index
    %c0_10 = arith.constant 0 : index
    %7 = vector.load %arg1[%c2, %c0_8, %c0_9, %c0_10] : memref<4x5x5x128xbf16, #tpu.memory_space<vmem>>, vector<1x5x5x128xbf16>
    %8 = vector.shape_cast %7 : vector<1x5x5x128xbf16> to vector<5x5x128xbf16>
    %c3 = arith.constant 3 : index
    %c0_11 = arith.constant 0 : index
    %c0_12 = arith.constant 0 : index
    %c0_13 = arith.constant 0 : index
    %9 = vector.load %arg1[%c3, %c0_11, %c0_12, %c0_13] : memref<4x5x5x128xbf16, #tpu.memory_space<vmem>>, vector<1x5x5x128xbf16>
    %10 = vector.shape_cast %9 : vector<1x5x5x128xbf16> to vector<5x5x128xbf16>
    %11 = vector.extract_strided_slice %4 {offsets = [0, 0, 0], sizes = [4, 4, 128], strides = [1, 1, 1]} : vector<5x5x128xbf16> to vector<4x4x128xbf16>
    %12 = arith.extf %11 : vector<4x4x128xbf16> to vector<4x4x128xf32>
    %13 = vector.extract_strided_slice %1 {offsets = [0, 0], sizes = [1, 128], strides = [1, 1]} : vector<9x128xf32> to vector<1x128xf32>
    %14 = vector.shape_cast %13 : vector<1x128xf32> to vector<128xf32>
    %15 = vector.shape_cast %14 : vector<128xf32> to vector<1x1x128xf32>
    %16 = vector.broadcast %15 : vector<1x1x128xf32> to vector<4x4x128xf32>
    %17 = arith.mulf %12, %16 : vector<4x4x128xf32>
    %18 = arith.addf %2, %17 : vector<4x4x128xf32>
    %19 = vector.extract_strided_slice %6 {offsets = [0, 0, 0], sizes = [4, 4, 128], strides = [1, 1, 1]} : vector<5x5x128xbf16> to vector<4x4x128xbf16>
    %20 = arith.extf %19 : vector<4x4x128xbf16> to vector<4x4x128xf32>
    %21 = vector.extract_strided_slice %1 {offsets = [1, 0], sizes = [1, 128], strides = [1, 1]} : vector<9x128xf32> to vector<1x128xf32>
    %22 = vector.shape_cast %21 : vector<1x128xf32> to vector<128xf32>
    %23 = vector.shape_cast %22 : vector<128xf32> to vector<1x1x128xf32>
    %24 = vector.broadcast %23 : vector<1x1x128xf32> to vector<4x4x128xf32>
    %25 = arith.mulf %20, %24 : vector<4x4x128xf32>
    %26 = arith.addf %18, %25 : vector<4x4x128xf32>
    %27 = vector.extract_strided_slice %4 {offsets = [0, 1, 0], sizes = [4, 4, 128], strides = [1, 1, 1]} : vector<5x5x128xbf16> to vector<4x4x128xbf16>
    %28 = arith.extf %27 : vector<4x4x128xbf16> to vector<4x4x128xf32>
    %29 = vector.extract_strided_slice %1 {offsets = [2, 0], sizes = [1, 128], strides = [1, 1]} : vector<9x128xf32> to vector<1x128xf32>
    %30 = vector.shape_cast %29 : vector<1x128xf32> to vector<128xf32>
    %31 = vector.shape_cast %30 : vector<128xf32> to vector<1x1x128xf32>
    %32 = vector.broadcast %31 : vector<1x1x128xf32> to vector<4x4x128xf32>
    %33 = arith.mulf %28, %32 : vector<4x4x128xf32>
    %34 = arith.addf %26, %33 : vector<4x4x128xf32>
    %35 = vector.extract_strided_slice %8 {offsets = [0, 0, 0], sizes = [4, 4, 128], strides = [1, 1, 1]} : vector<5x5x128xbf16> to vector<4x4x128xbf16>
    %36 = arith.extf %35 : vector<4x4x128xbf16> to vector<4x4x128xf32>
    %37 = vector.extract_strided_slice %1 {offsets = [3, 0], sizes = [1, 128], strides = [1, 1]} : vector<9x128xf32> to vector<1x128xf32>
    %38 = vector.shape_cast %37 : vector<1x128xf32> to vector<128xf32>
    %39 = vector.shape_cast %38 : vector<128xf32> to vector<1x1x128xf32>
    %40 = vector.broadcast %39 : vector<1x1x128xf32> to vector<4x4x128xf32>
    %41 = arith.mulf %36, %40 : vector<4x4x128xf32>
    %42 = arith.addf %34, %41 : vector<4x4x128xf32>
    %43 = vector.extract_strided_slice %10 {offsets = [0, 0, 0], sizes = [4, 4, 128], strides = [1, 1, 1]} : vector<5x5x128xbf16> to vector<4x4x128xbf16>
    %44 = arith.extf %43 : vector<4x4x128xbf16> to vector<4x4x128xf32>
    %45 = vector.extract_strided_slice %1 {offsets = [4, 0], sizes = [1, 128], strides = [1, 1]} : vector<9x128xf32> to vector<1x128xf32>
    %46 = vector.shape_cast %45 : vector<1x128xf32> to vector<128xf32>
    %47 = vector.shape_cast %46 : vector<128xf32> to vector<1x1x128xf32>
    %48 = vector.broadcast %47 : vector<1x1x128xf32> to vector<4x4x128xf32>
    %49 = arith.mulf %44, %48 : vector<4x4x128xf32>
    %50 = arith.addf %42, %49 : vector<4x4x128xf32>
    %51 = vector.extract_strided_slice %8 {offsets = [0, 1, 0], sizes = [4, 4, 128], strides = [1, 1, 1]} : vector<5x5x128xbf16> to vector<4x4x128xbf16>
    %52 = arith.extf %51 : vector<4x4x128xbf16> to vector<4x4x128xf32>
    %53 = vector.extract_strided_slice %1 {offsets = [5, 0], sizes = [1, 128], strides = [1, 1]} : vector<9x128xf32> to vector<1x128xf32>
    %54 = vector.shape_cast %53 : vector<1x128xf32> to vector<128xf32>
    %55 = vector.shape_cast %54 : vector<128xf32> to vector<1x1x128xf32>
    %56 = vector.broadcast %55 : vector<1x1x128xf32> to vector<4x4x128xf32>
    %57 = arith.mulf %52, %56 : vector<4x4x128xf32>
    %58 = arith.addf %50, %57 : vector<4x4x128xf32>
    %59 = vector.extract_strided_slice %4 {offsets = [1, 0, 0], sizes = [4, 4, 128], strides = [1, 1, 1]} : vector<5x5x128xbf16> to vector<4x4x128xbf16>
    %60 = arith.extf %59 : vector<4x4x128xbf16> to vector<4x4x128xf32>
    %61 = vector.extract_strided_slice %1 {offsets = [6, 0], sizes = [1, 128], strides = [1, 1]} : vector<9x128xf32> to vector<1x128xf32>
    %62 = vector.shape_cast %61 : vector<1x128xf32> to vector<128xf32>
    %63 = vector.shape_cast %62 : vector<128xf32> to vector<1x1x128xf32>
    %64 = vector.broadcast %63 : vector<1x1x128xf32> to vector<4x4x128xf32>
    %65 = arith.mulf %60, %64 : vector<4x4x128xf32>
    %66 = arith.addf %58, %65 : vector<4x4x128xf32>
    %67 = vector.extract_strided_slice %6 {offsets = [1, 0, 0], sizes = [4, 4, 128], strides = [1, 1, 1]} : vector<5x5x128xbf16> to vector<4x4x128xbf16>
    %68 = arith.extf %67 : vector<4x4x128xbf16> to vector<4x4x128xf32>
    %69 = vector.extract_strided_slice %1 {offsets = [7, 0], sizes = [1, 128], strides = [1, 1]} : vector<9x128xf32> to vector<1x128xf32>
    %70 = vector.shape_cast %69 : vector<1x128xf32> to vector<128xf32>
    %71 = vector.shape_cast %70 : vector<128xf32> to vector<1x1x128xf32>
    %72 = vector.broadcast %71 : vector<1x1x128xf32> to vector<4x4x128xf32>
    %73 = arith.mulf %68, %72 : vector<4x4x128xf32>
    %74 = arith.addf %66, %73 : vector<4x4x128xf32>
    %75 = vector.extract_strided_slice %4 {offsets = [1, 1, 0], sizes = [4, 4, 128], strides = [1, 1, 1]} : vector<5x5x128xbf16> to vector<4x4x128xbf16>
    %76 = arith.extf %75 : vector<4x4x128xbf16> to vector<4x4x128xf32>
    %77 = vector.extract_strided_slice %1 {offsets = [8, 0], sizes = [1, 128], strides = [1, 1]} : vector<9x128xf32> to vector<1x128xf32>
    %78 = vector.shape_cast %77 : vector<1x128xf32> to vector<128xf32>
    %79 = vector.shape_cast %78 : vector<128xf32> to vector<1x1x128xf32>
    %80 = vector.broadcast %79 : vector<1x1x128xf32> to vector<4x4x128xf32>
    %81 = arith.mulf %76, %80 : vector<4x4x128xf32>
    %82 = arith.addf %74, %81 : vector<4x4x128xf32>
    %c0_14 = arith.constant 0 : index
    %c0_15 = arith.constant 0 : index
    %83 = vector.load %arg3[%c0_14, %c0_15] : memref<1x128xf32, #tpu.memory_space<vmem>>, vector<1x128xf32>
    %84 = vector.shape_cast %83 : vector<1x128xf32> to vector<1x1x128xf32>
    %85 = vector.broadcast %84 : vector<1x1x128xf32> to vector<4x4x128xf32>
    %86 = arith.mulf %82, %85 : vector<4x4x128xf32>
    %c0_16 = arith.constant 0 : index
    %c0_17 = arith.constant 0 : index
    %87 = vector.load %arg4[%c0_16, %c0_17] : memref<1x128xf32, #tpu.memory_space<vmem>>, vector<1x128xf32>
    %88 = vector.shape_cast %87 : vector<1x128xf32> to vector<1x1x128xf32>
    %89 = vector.broadcast %88 : vector<1x1x128xf32> to vector<4x4x128xf32>
    %90 = arith.addf %86, %89 : vector<4x4x128xf32>
    %91 = arith.negf %90 : vector<4x4x128xf32>
    %92 = math.exp %91 : vector<4x4x128xf32>
    %cst_18 = arith.constant 1.000000e+00 : f32
    %93 = vector.broadcast %cst_18 : f32 to vector<4x4x128xf32>
    %94 = arith.addf %93, %92 : vector<4x4x128xf32>
    %95 = arith.divf %93, %94 : vector<4x4x128xf32>
    %96 = arith.mulf %90, %95 : vector<4x4x128xf32>
    %cst_19 = arith.constant dense<0.000000e+00> : vector<128xf32>
    %97 = vector.multi_reduction <add>, %96, %cst_19 [0, 1] : vector<4x4x128xf32> to vector<128xf32>
    %cst_20 = arith.constant 1.600000e+01 : f32
    %98 = vector.broadcast %cst_20 : f32 to vector<128xf32>
    %99 = arith.divf %97, %98 : vector<128xf32>
    %100 = vector.shape_cast %99 : vector<128xf32> to vector<1x128xf32>
    %c0_21 = arith.constant 0 : index
    %c0_22 = arith.constant 0 : index
    %101 = vector.load %arg5[%c0_21, %c0_22] : memref<128x4xf32, #tpu.memory_space<vmem>>, vector<128x4xf32>
    %cst_23 = arith.constant dense<0.000000e+00> : vector<1x4xf32>
    %102 = tpu.matmul %100, %101, %cst_23 {dimension_numbers = #tpu.dot_dimension_numbers<[1], [0], [0], [1], [0, 0, 1, 1], [], []>} : vector<1x128xf32>, vector<128x4xf32>, vector<1x4xf32> -> vector<1x4xf32>
    %c0_24 = arith.constant 0 : index
    %c0_25 = arith.constant 0 : index
    %103 = vector.load %arg6[%c0_24, %c0_25] : memref<1x4xf32, #tpu.memory_space<vmem>>, vector<1x4xf32>
    %104 = arith.addf %102, %103 : vector<1x4xf32>
    %105 = arith.negf %104 : vector<1x4xf32>
    %106 = math.exp %105 : vector<1x4xf32>
    %cst_26 = arith.constant 1.000000e+00 : f32
    %107 = vector.broadcast %cst_26 : f32 to vector<1x4xf32>
    %108 = arith.addf %107, %106 : vector<1x4xf32>
    %109 = arith.divf %107, %108 : vector<1x4xf32>
    %110 = arith.mulf %104, %109 : vector<1x4xf32>
    %c0_27 = arith.constant 0 : index
    %c0_28 = arith.constant 0 : index
    %111 = vector.load %arg7[%c0_27, %c0_28] : memref<4x128xf32, #tpu.memory_space<vmem>>, vector<4x128xf32>
    %cst_29 = arith.constant dense<0.000000e+00> : vector<1x128xf32>
    %112 = tpu.matmul %110, %111, %cst_29 {dimension_numbers = #tpu.dot_dimension_numbers<[1], [0], [0], [1], [0, 0, 1, 1], [], []>} : vector<1x4xf32>, vector<4x128xf32>, vector<1x128xf32> -> vector<1x128xf32>
    %c0_30 = arith.constant 0 : index
    %c0_31 = arith.constant 0 : index
    %113 = vector.load %arg8[%c0_30, %c0_31] : memref<1x128xf32, #tpu.memory_space<vmem>>, vector<1x128xf32>
    %114 = arith.addf %112, %113 : vector<1x128xf32>
    %115 = arith.negf %114 : vector<1x128xf32>
    %116 = math.exp %115 : vector<1x128xf32>
    %cst_32 = arith.constant 1.000000e+00 : f32
    %117 = vector.broadcast %cst_32 : f32 to vector<1x128xf32>
    %118 = arith.addf %117, %116 : vector<1x128xf32>
    %119 = arith.divf %117, %118 : vector<1x128xf32>
    %120 = vector.shape_cast %119 : vector<1x128xf32> to vector<1x1x128xf32>
    %121 = vector.broadcast %120 : vector<1x1x128xf32> to vector<4x4x128xf32>
    %122 = arith.mulf %96, %121 : vector<4x4x128xf32>
    %123 = arith.truncf %122 : vector<4x4x128xf32> to vector<4x4x128xbf16>
    %c0_33 = arith.constant 0 : index
    %c0_34 = arith.constant 0 : index
    %c0_35 = arith.constant 0 : index
    %c0_36 = arith.constant 0 : index
    %124 = vector.load %arg9[%c0_33, %c0_34, %c0_35, %c0_36] : memref<1x4x4x128xbf16, #tpu.memory_space<vmem>>, vector<1x4x4x128xbf16>
    %125 = vector.shape_cast %124 : vector<1x4x4x128xbf16> to vector<4x4x128xbf16>
    %126 = vector.shape_cast %123 : vector<4x4x128xbf16> to vector<1x4x4x128xbf16>
    tpu.vector_store %arg9[%c0_33, %c0_34, %c0_35, %c0_36], %126 {strides = array<i32>} : memref<1x4x4x128xbf16, #tpu.memory_space<vmem>>, vector<1x4x4x128xbf16>,
    return
  }
  func.func @transform_0(%arg0: i32) -> (i32, i32, i32, i32) {
    %c0_i32 = arith.constant 0 : i32
    %c0_i32_0 = arith.constant 0 : i32
    %c0_i32_1 = arith.constant 0 : i32
    %c0_i32_2 = arith.constant 0 : i32
    return %arg0, %c0_i32, %c0_i32_0, %c0_i32_1 : i32, i32, i32, i32
  }
  func.func @transform_1(%arg0: i32) -> (i32, i32) {
    %c0_i32 = arith.constant 0 : i32
    %c0_i32_0 = arith.constant 0 : i32
    %c0_i32_1 = arith.constant 0 : i32
    return %c0_i32, %c0_i32_0 : i32, i32
  }
  func.func @transform_2(%arg0: i32) -> (i32, i32) {
    %c0_i32 = arith.constant 0 : i32
    %c0_i32_0 = arith.constant 0 : i32
    %c0_i32_1 = arith.constant 0 : i32
    return %c0_i32, %c0_i32_0 : i32, i32
  }
  func.func @transform_3(%arg0: i32) -> (i32, i32) {
    %c0_i32 = arith.constant 0 : i32
    %c0_i32_0 = arith.constant 0 : i32
    %c0_i32_1 = arith.constant 0 : i32
    return %c0_i32, %c0_i32_0 : i32, i32
  }
  func.func @transform_4(%arg0: i32) -> (i32, i32) {
    %c0_i32 = arith.constant 0 : i32
    %c0_i32_0 = arith.constant 0 : i32
    %c0_i32_1 = arith.constant 0 : i32
    return %c0_i32, %c0_i32_0 : i32, i32
  }
  func.func @transform_5(%arg0: i32) -> (i32, i32) {
    %c0_i32 = arith.constant 0 : i32
    %c0_i32_0 = arith.constant 0 : i32
    %c0_i32_1 = arith.constant 0 : i32
    return %c0_i32, %c0_i32_0 : i32, i32
  }
  func.func @transform_6(%arg0: i32) -> (i32, i32) {
    %c0_i32 = arith.constant 0 : i32
    %c0_i32_0 = arith.constant 0 : i32
    %c0_i32_1 = arith.constant 0 : i32
    return %c0_i32, %c0_i32_0 : i32, i32
  }
  func.func @transform_7(%arg0: i32) -> (i32, i32) {
    %c0_i32 = arith.constant 0 : i32
    %c0_i32_0 = arith.constant 0 : i32
    %c0_i32_1 = arith.constant 0 : i32
    return %c0_i32, %c0_i32_0 : i32, i32
  }
  func.func @transform_8(%arg0: i32) -> (i32, i32, i32, i32) {
    %c0_i32 = arith.constant 0 : i32
    %c0_i32_0 = arith.constant 0 : i32
    %c0_i32_1 = arith.constant 0 : i32
    %c0_i32_2 = arith.constant 0 : i32
    return %arg0, %c0_i32, %c0_i32_0, %c0_i32_1 : i32, i32, i32, i32
  }
}

module attributes {stable_mosaic.version = 11 : i64} {
  func.func @_matmul_fused_kernel(%arg0: i32, %arg1: i32, %arg2: i32, %arg3: memref<32x128xbf16, #tpu.memory_space<vmem>>, %arg4: memref<128x128xbf16, #tpu.memory_space<vmem>>, %arg5: memref<1x128xf32, #tpu.memory_space<vmem>>, %arg6: memref<1x128xf32, #tpu.memory_space<vmem>>, %arg7: memref<32x128xbf16, #tpu.memory_space<vmem>>, %arg8: memref<32x128xf32, #tpu.memory_space<vmem>>) attributes {dimension_semantics = [#tpu.dimension_semantics<parallel>, #tpu.dimension_semantics<parallel>, #tpu.dimension_semantics<arbitrary>], iteration_bounds = array<i64: 1, 1, 1>, scalar_prefetch = 0 : i64, scratch_operands = 1 : i64, tpu.core_type = #tpu.core_type<tc>, window_params = [{transform_indices = @transform_0, window_bounds = array<i64: 32, 128>}, {transform_indices = @transform_1, window_bounds = array<i64: 128, 128>}, {transform_indices = @transform_2, window_bounds = array<i64: 1, 128>}, {transform_indices = @transform_3, window_bounds = array<i64: 1, 128>}, {transform_indices = @transform_4, window_bounds = array<i64: 32, 128>}]} {
    %c0_i32 = arith.constant 0 : i32
    %0 = arith.cmpi eq, %arg2, %c0_i32 : i32
    %1 = arith.extui %0 : i1 to i32
    %c0_i32_0 = arith.constant 0 : i32
    %2 = arith.cmpi ne, %1, %c0_i32_0 : i32
    scf.if %2 {
      %cst_10 = arith.constant 0.000000e+00 : f32
      %12 = vector.broadcast %cst_10 : f32 to vector<32x128xf32>
      %c0_11 = arith.constant 0 : index
      %c0_12 = arith.constant 0 : index
      %13 = vector.load %arg8[%c0_11, %c0_12] : memref<32x128xf32, #tpu.memory_space<vmem>>, vector<32x128xf32>
      tpu.vector_store %arg8[%c0_11, %c0_12], %12 {strides = array<i32>} : memref<32x128xf32, #tpu.memory_space<vmem>>, vector<32x128xf32>,
    } else {
    }
    %c0 = arith.constant 0 : index
    %c0_1 = arith.constant 0 : index
    %3 = vector.load %arg8[%c0, %c0_1] : memref<32x128xf32, #tpu.memory_space<vmem>>, vector<32x128xf32>
    %c0_2 = arith.constant 0 : index
    %c0_3 = arith.constant 0 : index
    %4 = vector.load %arg3[%c0_2, %c0_3] : memref<32x128xbf16, #tpu.memory_space<vmem>>, vector<32x128xbf16>
    %c0_4 = arith.constant 0 : index
    %c0_5 = arith.constant 0 : index
    %5 = vector.load %arg4[%c0_4, %c0_5] : memref<128x128xbf16, #tpu.memory_space<vmem>>, vector<128x128xbf16>
    %cst = arith.constant dense<0.000000e+00> : vector<32x128xf32>
    %6 = tpu.matmul %4, %5, %cst {dimension_numbers = #tpu.dot_dimension_numbers<[1], [0], [0], [1], [0, 0, 1, 1], [], []>} : vector<32x128xbf16>, vector<128x128xbf16>, vector<32x128xf32> -> vector<32x128xf32>
    %7 = arith.addf %3, %6 : vector<32x128xf32>
    %c0_6 = arith.constant 0 : index
    %c0_7 = arith.constant 0 : index
    %8 = vector.load %arg8[%c0_6, %c0_7] : memref<32x128xf32, #tpu.memory_space<vmem>>, vector<32x128xf32>
    tpu.vector_store %arg8[%c0_6, %c0_7], %7 {strides = array<i32>} : memref<32x128xf32, #tpu.memory_space<vmem>>, vector<32x128xf32>,
    %c0_i32_8 = arith.constant 0 : i32
    %9 = arith.cmpi eq, %arg2, %c0_i32_8 : i32
    %10 = arith.extui %9 : i1 to i32
    %c0_i32_9 = arith.constant 0 : i32
    %11 = arith.cmpi ne, %10, %c0_i32_9 : i32
    scf.if %11 {
      %c0_10 = arith.constant 0 : index
      %c0_11 = arith.constant 0 : index
      %12 = vector.load %arg8[%c0_10, %c0_11] : memref<32x128xf32, #tpu.memory_space<vmem>>, vector<32x128xf32>
      %c0_12 = arith.constant 0 : index
      %c0_13 = arith.constant 0 : index
      %13 = vector.load %arg5[%c0_12, %c0_13] : memref<1x128xf32, #tpu.memory_space<vmem>>, vector<1x128xf32>
      %14 = vector.broadcast %13 : vector<1x128xf32> to vector<32x128xf32>
      %15 = arith.mulf %12, %14 : vector<32x128xf32>
      %c0_14 = arith.constant 0 : index
      %c0_15 = arith.constant 0 : index
      %16 = vector.load %arg6[%c0_14, %c0_15] : memref<1x128xf32, #tpu.memory_space<vmem>>, vector<1x128xf32>
      %17 = vector.broadcast %16 : vector<1x128xf32> to vector<32x128xf32>
      %18 = arith.addf %15, %17 : vector<32x128xf32>
      %19 = arith.truncf %18 : vector<32x128xf32> to vector<32x128xbf16>
      %c0_16 = arith.constant 0 : index
      %c0_17 = arith.constant 0 : index
      %20 = vector.load %arg7[%c0_16, %c0_17] : memref<32x128xbf16, #tpu.memory_space<vmem>>, vector<32x128xbf16>
      tpu.vector_store %arg7[%c0_16, %c0_17], %19 {strides = array<i32>} : memref<32x128xbf16, #tpu.memory_space<vmem>>, vector<32x128xbf16>,
    } else {
    }
    return
  }
  func.func @transform_0(%arg0: i32, %arg1: i32, %arg2: i32) -> (i32, i32) {
    %c0_i32 = arith.constant 0 : i32
    return %arg0, %arg2 : i32, i32
  }
  func.func @transform_1(%arg0: i32, %arg1: i32, %arg2: i32) -> (i32, i32) {
    %c0_i32 = arith.constant 0 : i32
    return %arg2, %arg1 : i32, i32
  }
  func.func @transform_2(%arg0: i32, %arg1: i32, %arg2: i32) -> (i32, i32) {
    %c0_i32 = arith.constant 0 : i32
    %c0_i32_0 = arith.constant 0 : i32
    return %c0_i32, %arg1 : i32, i32
  }
  func.func @transform_3(%arg0: i32, %arg1: i32, %arg2: i32) -> (i32, i32) {
    %c0_i32 = arith.constant 0 : i32
    %c0_i32_0 = arith.constant 0 : i32
    return %c0_i32, %arg1 : i32, i32
  }
  func.func @transform_4(%arg0: i32, %arg1: i32, %arg2: i32) -> (i32, i32) {
    %c0_i32 = arith.constant 0 : i32
    return %arg0, %arg1 : i32, i32
  }
}

module attributes {stable_mosaic.version = 11 : i64} {
  func.func @_matmul_fused_kernel(%arg0: i32, %arg1: i32, %arg2: i32, %arg3: memref<32x128xbf16, #tpu.memory_space<vmem>>, %arg4: memref<128x128xbf16, #tpu.memory_space<vmem>>, %arg5: memref<1x128xf32, #tpu.memory_space<vmem>>, %arg6: memref<1x128xf32, #tpu.memory_space<vmem>>, %arg7: memref<32x128xbf16, #tpu.memory_space<vmem>>, %arg8: memref<32x128xf32, #tpu.memory_space<vmem>>) attributes {dimension_semantics = [#tpu.dimension_semantics<parallel>, #tpu.dimension_semantics<parallel>, #tpu.dimension_semantics<arbitrary>], iteration_bounds = array<i64: 1, 1, 1>, scalar_prefetch = 0 : i64, scratch_operands = 1 : i64, tpu.core_type = #tpu.core_type<tc>, window_params = [{transform_indices = @transform_0, window_bounds = array<i64: 32, 128>}, {transform_indices = @transform_1, window_bounds = array<i64: 128, 128>}, {transform_indices = @transform_2, window_bounds = array<i64: 1, 128>}, {transform_indices = @transform_3, window_bounds = array<i64: 1, 128>}, {transform_indices = @transform_4, window_bounds = array<i64: 32, 128>}]} {
    %c0_i32 = arith.constant 0 : i32
    %0 = arith.cmpi eq, %arg2, %c0_i32 : i32
    %1 = arith.extui %0 : i1 to i32
    %c0_i32_0 = arith.constant 0 : i32
    %2 = arith.cmpi ne, %1, %c0_i32_0 : i32
    scf.if %2 {
      %cst_10 = arith.constant 0.000000e+00 : f32
      %12 = vector.broadcast %cst_10 : f32 to vector<32x128xf32>
      %c0_11 = arith.constant 0 : index
      %c0_12 = arith.constant 0 : index
      %13 = vector.load %arg8[%c0_11, %c0_12] : memref<32x128xf32, #tpu.memory_space<vmem>>, vector<32x128xf32>
      tpu.vector_store %arg8[%c0_11, %c0_12], %12 {strides = array<i32>} : memref<32x128xf32, #tpu.memory_space<vmem>>, vector<32x128xf32>,
    } else {
    }
    %c0 = arith.constant 0 : index
    %c0_1 = arith.constant 0 : index
    %3 = vector.load %arg8[%c0, %c0_1] : memref<32x128xf32, #tpu.memory_space<vmem>>, vector<32x128xf32>
    %c0_2 = arith.constant 0 : index
    %c0_3 = arith.constant 0 : index
    %4 = vector.load %arg3[%c0_2, %c0_3] : memref<32x128xbf16, #tpu.memory_space<vmem>>, vector<32x128xbf16>
    %c0_4 = arith.constant 0 : index
    %c0_5 = arith.constant 0 : index
    %5 = vector.load %arg4[%c0_4, %c0_5] : memref<128x128xbf16, #tpu.memory_space<vmem>>, vector<128x128xbf16>
    %cst = arith.constant dense<0.000000e+00> : vector<32x128xf32>
    %6 = tpu.matmul %4, %5, %cst {dimension_numbers = #tpu.dot_dimension_numbers<[1], [0], [0], [1], [0, 0, 1, 1], [], []>} : vector<32x128xbf16>, vector<128x128xbf16>, vector<32x128xf32> -> vector<32x128xf32>
    %7 = arith.addf %3, %6 : vector<32x128xf32>
    %c0_6 = arith.constant 0 : index
    %c0_7 = arith.constant 0 : index
    %8 = vector.load %arg8[%c0_6, %c0_7] : memref<32x128xf32, #tpu.memory_space<vmem>>, vector<32x128xf32>
    tpu.vector_store %arg8[%c0_6, %c0_7], %7 {strides = array<i32>} : memref<32x128xf32, #tpu.memory_space<vmem>>, vector<32x128xf32>,
    %c0_i32_8 = arith.constant 0 : i32
    %9 = arith.cmpi eq, %arg2, %c0_i32_8 : i32
    %10 = arith.extui %9 : i1 to i32
    %c0_i32_9 = arith.constant 0 : i32
    %11 = arith.cmpi ne, %10, %c0_i32_9 : i32
    scf.if %11 {
      %c0_10 = arith.constant 0 : index
      %c0_11 = arith.constant 0 : index
      %12 = vector.load %arg8[%c0_10, %c0_11] : memref<32x128xf32, #tpu.memory_space<vmem>>, vector<32x128xf32>
      %c0_12 = arith.constant 0 : index
      %c0_13 = arith.constant 0 : index
      %13 = vector.load %arg5[%c0_12, %c0_13] : memref<1x128xf32, #tpu.memory_space<vmem>>, vector<1x128xf32>
      %14 = vector.broadcast %13 : vector<1x128xf32> to vector<32x128xf32>
      %15 = arith.mulf %12, %14 : vector<32x128xf32>
      %c0_14 = arith.constant 0 : index
      %c0_15 = arith.constant 0 : index
      %16 = vector.load %arg6[%c0_14, %c0_15] : memref<1x128xf32, #tpu.memory_space<vmem>>, vector<1x128xf32>
      %17 = vector.broadcast %16 : vector<1x128xf32> to vector<32x128xf32>
      %18 = arith.addf %15, %17 : vector<32x128xf32>
      %19 = arith.negf %18 : vector<32x128xf32>
      %20 = math.exp %19 : vector<32x128xf32>
      %cst_16 = arith.constant 1.000000e+00 : f32
      %21 = vector.broadcast %cst_16 : f32 to vector<32x128xf32>
      %22 = arith.addf %21, %20 : vector<32x128xf32>
      %23 = arith.divf %21, %22 : vector<32x128xf32>
      %24 = arith.mulf %18, %23 : vector<32x128xf32>
      %25 = arith.truncf %24 : vector<32x128xf32> to vector<32x128xbf16>
      %c0_17 = arith.constant 0 : index
      %c0_18 = arith.constant 0 : index
      %26 = vector.load %arg7[%c0_17, %c0_18] : memref<32x128xbf16, #tpu.memory_space<vmem>>, vector<32x128xbf16>
      tpu.vector_store %arg7[%c0_17, %c0_18], %25 {strides = array<i32>} : memref<32x128xbf16, #tpu.memory_space<vmem>>, vector<32x128xbf16>,
    } else {
    }
    return
  }
  func.func @transform_0(%arg0: i32, %arg1: i32, %arg2: i32) -> (i32, i32) {
    %c0_i32 = arith.constant 0 : i32
    return %arg0, %arg2 : i32, i32
  }
  func.func @transform_1(%arg0: i32, %arg1: i32, %arg2: i32) -> (i32, i32) {
    %c0_i32 = arith.constant 0 : i32
    return %arg2, %arg1 : i32, i32
  }
  func.func @transform_2(%arg0: i32, %arg1: i32, %arg2: i32) -> (i32, i32) {
    %c0_i32 = arith.constant 0 : i32
    %c0_i32_0 = arith.constant 0 : i32
    return %c0_i32, %arg1 : i32, i32
  }
  func.func @transform_3(%arg0: i32, %arg1: i32, %arg2: i32) -> (i32, i32) {
    %c0_i32 = arith.constant 0 : i32
    %c0_i32_0 = arith.constant 0 : i32
    return %c0_i32, %arg1 : i32, i32
  }
  func.func @transform_4(%arg0: i32, %arg1: i32, %arg2: i32) -> (i32, i32) {
    %c0_i32 = arith.constant 0 : i32
    return %arg0, %arg1 : i32, i32
  }
}

module attributes {stable_mosaic.version = 11 : i64} {
  func.func @_dwconv_bn_silu_se_kernel(%arg0: i32, %arg1: memref<1x6x6x128xbf16, #tpu.memory_space<vmem>>, %arg2: memref<9x128xbf16, #tpu.memory_space<vmem>>, %arg3: memref<1x128xf32, #tpu.memory_space<vmem>>, %arg4: memref<1x128xf32, #tpu.memory_space<vmem>>, %arg5: memref<128x6xf32, #tpu.memory_space<vmem>>, %arg6: memref<1x6xf32, #tpu.memory_space<vmem>>, %arg7: memref<6x128xf32, #tpu.memory_space<vmem>>, %arg8: memref<1x128xf32, #tpu.memory_space<vmem>>, %arg9: memref<1x4x4x128xbf16, #tpu.memory_space<vmem>>) attributes {dimension_semantics = [#tpu.dimension_semantics<parallel>], iteration_bounds = array<i64: 2>, scalar_prefetch = 0 : i64, scratch_operands = 0 : i64, tpu.core_type = #tpu.core_type<tc>, window_params = [{transform_indices = @transform_0, window_bounds = array<i64: 1, 6, 6, 128>}, {pipeline_mode = #tpu.pipeline_mode<synchronous>, transform_indices = @transform_1, window_bounds = array<i64: 9, 128>}, {pipeline_mode = #tpu.pipeline_mode<synchronous>, transform_indices = @transform_2, window_bounds = array<i64: 1, 128>}, {pipeline_mode = #tpu.pipeline_mode<synchronous>, transform_indices = @transform_3, window_bounds = array<i64: 1, 128>}, {pipeline_mode = #tpu.pipeline_mode<synchronous>, transform_indices = @transform_4, window_bounds = array<i64: 128, 6>}, {pipeline_mode = #tpu.pipeline_mode<synchronous>, transform_indices = @transform_5, window_bounds = array<i64: 1, 6>}, {pipeline_mode = #tpu.pipeline_mode<synchronous>, transform_indices = @transform_6, window_bounds = array<i64: 6, 128>}, {pipeline_mode = #tpu.pipeline_mode<synchronous>, transform_indices = @transform_7, window_bounds = array<i64: 1, 128>}, {transform_indices = @transform_8, window_bounds = array<i64: 1, 4, 4, 128>}]} {
    %c0 = arith.constant 0 : index
    %c0_0 = arith.constant 0 : index
    %0 = vector.load %arg2[%c0, %c0_0] : memref<9x128xbf16, #tpu.memory_space<vmem>>, vector<9x128xbf16>
    %1 = arith.extf %0 : vector<9x128xbf16> to vector<9x128xf32>
    %cst = arith.constant 0.000000e+00 : f32
    %2 = vector.broadcast %cst : f32 to vector<4x4x128xf32>
    %c0_1 = arith.constant 0 : index
    %c0_2 = arith.constant 0 : index
    %c0_3 = arith.constant 0 : index
    %c0_4 = arith.constant 0 : index
    %3 = vector.load %arg1[%c0_1, %c0_2, %c0_3, %c0_4] : memref<1x6x6x128xbf16, #tpu.memory_space<vmem>>, vector<1x6x6x128xbf16>
    %4 = vector.shape_cast %3 : vector<1x6x6x128xbf16> to vector<6x6x128xbf16>
    %5 = vector.extract_strided_slice %4 {offsets = [0, 0, 0], sizes = [4, 4, 128], strides = [1, 1, 1]} : vector<6x6x128xbf16> to vector<4x4x128xbf16>
    %6 = arith.extf %5 : vector<4x4x128xbf16> to vector<4x4x128xf32>
    %7 = vector.extract_strided_slice %1 {offsets = [0, 0], sizes = [1, 128], strides = [1, 1]} : vector<9x128xf32> to vector<1x128xf32>
    %8 = vector.shape_cast %7 : vector<1x128xf32> to vector<128xf32>
    %9 = vector.shape_cast %8 : vector<128xf32> to vector<1x1x128xf32>
    %10 = vector.broadcast %9 : vector<1x1x128xf32> to vector<4x4x128xf32>
    %11 = arith.mulf %6, %10 : vector<4x4x128xf32>
    %12 = arith.addf %2, %11 : vector<4x4x128xf32>
    %13 = vector.extract_strided_slice %4 {offsets = [0, 1, 0], sizes = [4, 4, 128], strides = [1, 1, 1]} : vector<6x6x128xbf16> to vector<4x4x128xbf16>
    %14 = arith.extf %13 : vector<4x4x128xbf16> to vector<4x4x128xf32>
    %15 = vector.extract_strided_slice %1 {offsets = [1, 0], sizes = [1, 128], strides = [1, 1]} : vector<9x128xf32> to vector<1x128xf32>
    %16 = vector.shape_cast %15 : vector<1x128xf32> to vector<128xf32>
    %17 = vector.shape_cast %16 : vector<128xf32> to vector<1x1x128xf32>
    %18 = vector.broadcast %17 : vector<1x1x128xf32> to vector<4x4x128xf32>
    %19 = arith.mulf %14, %18 : vector<4x4x128xf32>
    %20 = arith.addf %12, %19 : vector<4x4x128xf32>
    %21 = vector.extract_strided_slice %4 {offsets = [0, 2, 0], sizes = [4, 4, 128], strides = [1, 1, 1]} : vector<6x6x128xbf16> to vector<4x4x128xbf16>
    %22 = arith.extf %21 : vector<4x4x128xbf16> to vector<4x4x128xf32>
    %23 = vector.extract_strided_slice %1 {offsets = [2, 0], sizes = [1, 128], strides = [1, 1]} : vector<9x128xf32> to vector<1x128xf32>
    %24 = vector.shape_cast %23 : vector<1x128xf32> to vector<128xf32>
    %25 = vector.shape_cast %24 : vector<128xf32> to vector<1x1x128xf32>
    %26 = vector.broadcast %25 : vector<1x1x128xf32> to vector<4x4x128xf32>
    %27 = arith.mulf %22, %26 : vector<4x4x128xf32>
    %28 = arith.addf %20, %27 : vector<4x4x128xf32>
    %29 = vector.extract_strided_slice %4 {offsets = [1, 0, 0], sizes = [4, 4, 128], strides = [1, 1, 1]} : vector<6x6x128xbf16> to vector<4x4x128xbf16>
    %30 = arith.extf %29 : vector<4x4x128xbf16> to vector<4x4x128xf32>
    %31 = vector.extract_strided_slice %1 {offsets = [3, 0], sizes = [1, 128], strides = [1, 1]} : vector<9x128xf32> to vector<1x128xf32>
    %32 = vector.shape_cast %31 : vector<1x128xf32> to vector<128xf32>
    %33 = vector.shape_cast %32 : vector<128xf32> to vector<1x1x128xf32>
    %34 = vector.broadcast %33 : vector<1x1x128xf32> to vector<4x4x128xf32>
    %35 = arith.mulf %30, %34 : vector<4x4x128xf32>
    %36 = arith.addf %28, %35 : vector<4x4x128xf32>
    %37 = vector.extract_strided_slice %4 {offsets = [1, 1, 0], sizes = [4, 4, 128], strides = [1, 1, 1]} : vector<6x6x128xbf16> to vector<4x4x128xbf16>
    %38 = arith.extf %37 : vector<4x4x128xbf16> to vector<4x4x128xf32>
    %39 = vector.extract_strided_slice %1 {offsets = [4, 0], sizes = [1, 128], strides = [1, 1]} : vector<9x128xf32> to vector<1x128xf32>
    %40 = vector.shape_cast %39 : vector<1x128xf32> to vector<128xf32>
    %41 = vector.shape_cast %40 : vector<128xf32> to vector<1x1x128xf32>
    %42 = vector.broadcast %41 : vector<1x1x128xf32> to vector<4x4x128xf32>
    %43 = arith.mulf %38, %42 : vector<4x4x128xf32>
    %44 = arith.addf %36, %43 : vector<4x4x128xf32>
    %45 = vector.extract_strided_slice %4 {offsets = [1, 2, 0], sizes = [4, 4, 128], strides = [1, 1, 1]} : vector<6x6x128xbf16> to vector<4x4x128xbf16>
    %46 = arith.extf %45 : vector<4x4x128xbf16> to vector<4x4x128xf32>
    %47 = vector.extract_strided_slice %1 {offsets = [5, 0], sizes = [1, 128], strides = [1, 1]} : vector<9x128xf32> to vector<1x128xf32>
    %48 = vector.shape_cast %47 : vector<1x128xf32> to vector<128xf32>
    %49 = vector.shape_cast %48 : vector<128xf32> to vector<1x1x128xf32>
    %50 = vector.broadcast %49 : vector<1x1x128xf32> to vector<4x4x128xf32>
    %51 = arith.mulf %46, %50 : vector<4x4x128xf32>
    %52 = arith.addf %44, %51 : vector<4x4x128xf32>
    %53 = vector.extract_strided_slice %4 {offsets = [2, 0, 0], sizes = [4, 4, 128], strides = [1, 1, 1]} : vector<6x6x128xbf16> to vector<4x4x128xbf16>
    %54 = arith.extf %53 : vector<4x4x128xbf16> to vector<4x4x128xf32>
    %55 = vector.extract_strided_slice %1 {offsets = [6, 0], sizes = [1, 128], strides = [1, 1]} : vector<9x128xf32> to vector<1x128xf32>
    %56 = vector.shape_cast %55 : vector<1x128xf32> to vector<128xf32>
    %57 = vector.shape_cast %56 : vector<128xf32> to vector<1x1x128xf32>
    %58 = vector.broadcast %57 : vector<1x1x128xf32> to vector<4x4x128xf32>
    %59 = arith.mulf %54, %58 : vector<4x4x128xf32>
    %60 = arith.addf %52, %59 : vector<4x4x128xf32>
    %61 = vector.extract_strided_slice %4 {offsets = [2, 1, 0], sizes = [4, 4, 128], strides = [1, 1, 1]} : vector<6x6x128xbf16> to vector<4x4x128xbf16>
    %62 = arith.extf %61 : vector<4x4x128xbf16> to vector<4x4x128xf32>
    %63 = vector.extract_strided_slice %1 {offsets = [7, 0], sizes = [1, 128], strides = [1, 1]} : vector<9x128xf32> to vector<1x128xf32>
    %64 = vector.shape_cast %63 : vector<1x128xf32> to vector<128xf32>
    %65 = vector.shape_cast %64 : vector<128xf32> to vector<1x1x128xf32>
    %66 = vector.broadcast %65 : vector<1x1x128xf32> to vector<4x4x128xf32>
    %67 = arith.mulf %62, %66 : vector<4x4x128xf32>
    %68 = arith.addf %60, %67 : vector<4x4x128xf32>
    %69 = vector.extract_strided_slice %4 {offsets = [2, 2, 0], sizes = [4, 4, 128], strides = [1, 1, 1]} : vector<6x6x128xbf16> to vector<4x4x128xbf16>
    %70 = arith.extf %69 : vector<4x4x128xbf16> to vector<4x4x128xf32>
    %71 = vector.extract_strided_slice %1 {offsets = [8, 0], sizes = [1, 128], strides = [1, 1]} : vector<9x128xf32> to vector<1x128xf32>
    %72 = vector.shape_cast %71 : vector<1x128xf32> to vector<128xf32>
    %73 = vector.shape_cast %72 : vector<128xf32> to vector<1x1x128xf32>
    %74 = vector.broadcast %73 : vector<1x1x128xf32> to vector<4x4x128xf32>
    %75 = arith.mulf %70, %74 : vector<4x4x128xf32>
    %76 = arith.addf %68, %75 : vector<4x4x128xf32>
    %c0_5 = arith.constant 0 : index
    %c0_6 = arith.constant 0 : index
    %77 = vector.load %arg3[%c0_5, %c0_6] : memref<1x128xf32, #tpu.memory_space<vmem>>, vector<1x128xf32>
    %78 = vector.shape_cast %77 : vector<1x128xf32> to vector<1x1x128xf32>
    %79 = vector.broadcast %78 : vector<1x1x128xf32> to vector<4x4x128xf32>
    %80 = arith.mulf %76, %79 : vector<4x4x128xf32>
    %c0_7 = arith.constant 0 : index
    %c0_8 = arith.constant 0 : index
    %81 = vector.load %arg4[%c0_7, %c0_8] : memref<1x128xf32, #tpu.memory_space<vmem>>, vector<1x128xf32>
    %82 = vector.shape_cast %81 : vector<1x128xf32> to vector<1x1x128xf32>
    %83 = vector.broadcast %82 : vector<1x1x128xf32> to vector<4x4x128xf32>
    %84 = arith.addf %80, %83 : vector<4x4x128xf32>
    %85 = arith.negf %84 : vector<4x4x128xf32>
    %86 = math.exp %85 : vector<4x4x128xf32>
    %cst_9 = arith.constant 1.000000e+00 : f32
    %87 = vector.broadcast %cst_9 : f32 to vector<4x4x128xf32>
    %88 = arith.addf %87, %86 : vector<4x4x128xf32>
    %89 = arith.divf %87, %88 : vector<4x4x128xf32>
    %90 = arith.mulf %84, %89 : vector<4x4x128xf32>
    %cst_10 = arith.constant dense<0.000000e+00> : vector<128xf32>
    %91 = vector.multi_reduction <add>, %90, %cst_10 [0, 1] : vector<4x4x128xf32> to vector<128xf32>
    %cst_11 = arith.constant 1.600000e+01 : f32
    %92 = vector.broadcast %cst_11 : f32 to vector<128xf32>
    %93 = arith.divf %91, %92 : vector<128xf32>
    %94 = vector.shape_cast %93 : vector<128xf32> to vector<1x128xf32>
    %c0_12 = arith.constant 0 : index
    %c0_13 = arith.constant 0 : index
    %95 = vector.load %arg5[%c0_12, %c0_13] : memref<128x6xf32, #tpu.memory_space<vmem>>, vector<128x6xf32>
    %cst_14 = arith.constant dense<0.000000e+00> : vector<1x6xf32>
    %96 = tpu.matmul %94, %95, %cst_14 {dimension_numbers = #tpu.dot_dimension_numbers<[1], [0], [0], [1], [0, 0, 1, 1], [], []>} : vector<1x128xf32>, vector<128x6xf32>, vector<1x6xf32> -> vector<1x6xf32>
    %c0_15 = arith.constant 0 : index
    %c0_16 = arith.constant 0 : index
    %97 = vector.load %arg6[%c0_15, %c0_16] : memref<1x6xf32, #tpu.memory_space<vmem>>, vector<1x6xf32>
    %98 = arith.addf %96, %97 : vector<1x6xf32>
    %99 = arith.negf %98 : vector<1x6xf32>
    %100 = math.exp %99 : vector<1x6xf32>
    %cst_17 = arith.constant 1.000000e+00 : f32
    %101 = vector.broadcast %cst_17 : f32 to vector<1x6xf32>
    %102 = arith.addf %101, %100 : vector<1x6xf32>
    %103 = arith.divf %101, %102 : vector<1x6xf32>
    %104 = arith.mulf %98, %103 : vector<1x6xf32>
    %c0_18 = arith.constant 0 : index
    %c0_19 = arith.constant 0 : index
    %105 = vector.load %arg7[%c0_18, %c0_19] : memref<6x128xf32, #tpu.memory_space<vmem>>, vector<6x128xf32>
    %cst_20 = arith.constant dense<0.000000e+00> : vector<1x128xf32>
    %106 = tpu.matmul %104, %105, %cst_20 {dimension_numbers = #tpu.dot_dimension_numbers<[1], [0], [0], [1], [0, 0, 1, 1], [], []>} : vector<1x6xf32>, vector<6x128xf32>, vector<1x128xf32> -> vector<1x128xf32>
    %c0_21 = arith.constant 0 : index
    %c0_22 = arith.constant 0 : index
    %107 = vector.load %arg8[%c0_21, %c0_22] : memref<1x128xf32, #tpu.memory_space<vmem>>, vector<1x128xf32>
    %108 = arith.addf %106, %107 : vector<1x128xf32>
    %109 = arith.negf %108 : vector<1x128xf32>
    %110 = math.exp %109 : vector<1x128xf32>
    %cst_23 = arith.constant 1.000000e+00 : f32
    %111 = vector.broadcast %cst_23 : f32 to vector<1x128xf32>
    %112 = arith.addf %111, %110 : vector<1x128xf32>
    %113 = arith.divf %111, %112 : vector<1x128xf32>
    %114 = vector.shape_cast %113 : vector<1x128xf32> to vector<1x1x128xf32>
    %115 = vector.broadcast %114 : vector<1x1x128xf32> to vector<4x4x128xf32>
    %116 = arith.mulf %90, %115 : vector<4x4x128xf32>
    %117 = arith.truncf %116 : vector<4x4x128xf32> to vector<4x4x128xbf16>
    %c0_24 = arith.constant 0 : index
    %c0_25 = arith.constant 0 : index
    %c0_26 = arith.constant 0 : index
    %c0_27 = arith.constant 0 : index
    %118 = vector.load %arg9[%c0_24, %c0_25, %c0_26, %c0_27] : memref<1x4x4x128xbf16, #tpu.memory_space<vmem>>, vector<1x4x4x128xbf16>
    %119 = vector.shape_cast %118 : vector<1x4x4x128xbf16> to vector<4x4x128xbf16>
    %120 = vector.shape_cast %117 : vector<4x4x128xbf16> to vector<1x4x4x128xbf16>
    tpu.vector_store %arg9[%c0_24, %c0_25, %c0_26, %c0_27], %120 {strides = array<i32>} : memref<1x4x4x128xbf16, #tpu.memory_space<vmem>>, vector<1x4x4x128xbf16>,
    return
  }
  func.func @transform_0(%arg0: i32) -> (i32, i32, i32, i32) {
    %c0_i32 = arith.constant 0 : i32
    %c0_i32_0 = arith.constant 0 : i32
    %c0_i32_1 = arith.constant 0 : i32
    %c0_i32_2 = arith.constant 0 : i32
    return %arg0, %c0_i32, %c0_i32_0, %c0_i32_1 : i32, i32, i32, i32
  }
  func.func @transform_1(%arg0: i32) -> (i32, i32) {
    %c0_i32 = arith.constant 0 : i32
    %c0_i32_0 = arith.constant 0 : i32
    %c0_i32_1 = arith.constant 0 : i32
    return %c0_i32, %c0_i32_0 : i32, i32
  }
  func.func @transform_2(%arg0: i32) -> (i32, i32) {
    %c0_i32 = arith.constant 0 : i32
    %c0_i32_0 = arith.constant 0 : i32
    %c0_i32_1 = arith.constant 0 : i32
    return %c0_i32, %c0_i32_0 : i32, i32
  }
  func.func @transform_3(%arg0: i32) -> (i32, i32) {
    %c0_i32 = arith.constant 0 : i32
    %c0_i32_0 = arith.constant 0 : i32
    %c0_i32_1 = arith.constant 0 : i32
    return %c0_i32, %c0_i32_0 : i32, i32
  }
  func.func @transform_4(%arg0: i32) -> (i32, i32) {
    %c0_i32 = arith.constant 0 : i32
    %c0_i32_0 = arith.constant 0 : i32
    %c0_i32_1 = arith.constant 0 : i32
    return %c0_i32, %c0_i32_0 : i32, i32
  }
  func.func @transform_5(%arg0: i32) -> (i32, i32) {
    %c0_i32 = arith.constant 0 : i32
    %c0_i32_0 = arith.constant 0 : i32
    %c0_i32_1 = arith.constant 0 : i32
    return %c0_i32, %c0_i32_0 : i32, i32
  }
  func.func @transform_6(%arg0: i32) -> (i32, i32) {
    %c0_i32 = arith.constant 0 : i32
    %c0_i32_0 = arith.constant 0 : i32
    %c0_i32_1 = arith.constant 0 : i32
    return %c0_i32, %c0_i32_0 : i32, i32
  }
  func.func @transform_7(%arg0: i32) -> (i32, i32) {
    %c0_i32 = arith.constant 0 : i32
    %c0_i32_0 = arith.constant 0 : i32
    %c0_i32_1 = arith.constant 0 : i32
    return %c0_i32, %c0_i32_0 : i32, i32
  }
  func.func @transform_8(%arg0: i32) -> (i32, i32, i32, i32) {
    %c0_i32 = arith.constant 0 : i32
    %c0_i32_0 = arith.constant 0 : i32
    %c0_i32_1 = arith.constant 0 : i32
    %c0_i32_2 = arith.constant 0 : i32
    return %arg0, %c0_i32, %c0_i32_0, %c0_i32_1 : i32, i32, i32, i32
  }
}

module attributes {stable_mosaic.version = 11 : i64} {
  func.func @_matmul_fused_kernel(%arg0: i32, %arg1: i32, %arg2: i32, %arg3: memref<32x128xbf16, #tpu.memory_space<vmem>>, %arg4: memref<128x128xbf16, #tpu.memory_space<vmem>>, %arg5: memref<1x128xf32, #tpu.memory_space<vmem>>, %arg6: memref<1x128xf32, #tpu.memory_space<vmem>>, %arg7: memref<32x128xbf16, #tpu.memory_space<vmem>>, %arg8: memref<32x128xbf16, #tpu.memory_space<vmem>>, %arg9: memref<32x128xf32, #tpu.memory_space<vmem>>) attributes {dimension_semantics = [#tpu.dimension_semantics<parallel>, #tpu.dimension_semantics<parallel>, #tpu.dimension_semantics<arbitrary>], iteration_bounds = array<i64: 1, 1, 1>, scalar_prefetch = 0 : i64, scratch_operands = 1 : i64, tpu.core_type = #tpu.core_type<tc>, window_params = [{transform_indices = @transform_0, window_bounds = array<i64: 32, 128>}, {transform_indices = @transform_1, window_bounds = array<i64: 128, 128>}, {transform_indices = @transform_2, window_bounds = array<i64: 1, 128>}, {transform_indices = @transform_3, window_bounds = array<i64: 1, 128>}, {transform_indices = @transform_4, window_bounds = array<i64: 32, 128>}, {transform_indices = @transform_5, window_bounds = array<i64: 32, 128>}]} {
    %c0_i32 = arith.constant 0 : i32
    %0 = arith.cmpi eq, %arg2, %c0_i32 : i32
    %1 = arith.extui %0 : i1 to i32
    %c0_i32_0 = arith.constant 0 : i32
    %2 = arith.cmpi ne, %1, %c0_i32_0 : i32
    scf.if %2 {
      %cst_10 = arith.constant 0.000000e+00 : f32
      %12 = vector.broadcast %cst_10 : f32 to vector<32x128xf32>
      %c0_11 = arith.constant 0 : index
      %c0_12 = arith.constant 0 : index
      %13 = vector.load %arg9[%c0_11, %c0_12] : memref<32x128xf32, #tpu.memory_space<vmem>>, vector<32x128xf32>
      tpu.vector_store %arg9[%c0_11, %c0_12], %12 {strides = array<i32>} : memref<32x128xf32, #tpu.memory_space<vmem>>, vector<32x128xf32>,
    } else {
    }
    %c0 = arith.constant 0 : index
    %c0_1 = arith.constant 0 : index
    %3 = vector.load %arg9[%c0, %c0_1] : memref<32x128xf32, #tpu.memory_space<vmem>>, vector<32x128xf32>
    %c0_2 = arith.constant 0 : index
    %c0_3 = arith.constant 0 : index
    %4 = vector.load %arg3[%c0_2, %c0_3] : memref<32x128xbf16, #tpu.memory_space<vmem>>, vector<32x128xbf16>
    %c0_4 = arith.constant 0 : index
    %c0_5 = arith.constant 0 : index
    %5 = vector.load %arg4[%c0_4, %c0_5] : memref<128x128xbf16, #tpu.memory_space<vmem>>, vector<128x128xbf16>
    %cst = arith.constant dense<0.000000e+00> : vector<32x128xf32>
    %6 = tpu.matmul %4, %5, %cst {dimension_numbers = #tpu.dot_dimension_numbers<[1], [0], [0], [1], [0, 0, 1, 1], [], []>} : vector<32x128xbf16>, vector<128x128xbf16>, vector<32x128xf32> -> vector<32x128xf32>
    %7 = arith.addf %3, %6 : vector<32x128xf32>
    %c0_6 = arith.constant 0 : index
    %c0_7 = arith.constant 0 : index
    %8 = vector.load %arg9[%c0_6, %c0_7] : memref<32x128xf32, #tpu.memory_space<vmem>>, vector<32x128xf32>
    tpu.vector_store %arg9[%c0_6, %c0_7], %7 {strides = array<i32>} : memref<32x128xf32, #tpu.memory_space<vmem>>, vector<32x128xf32>,
    %c0_i32_8 = arith.constant 0 : i32
    %9 = arith.cmpi eq, %arg2, %c0_i32_8 : i32
    %10 = arith.extui %9 : i1 to i32
    %c0_i32_9 = arith.constant 0 : i32
    %11 = arith.cmpi ne, %10, %c0_i32_9 : i32
    scf.if %11 {
      %c0_10 = arith.constant 0 : index
      %c0_11 = arith.constant 0 : index
      %12 = vector.load %arg9[%c0_10, %c0_11] : memref<32x128xf32, #tpu.memory_space<vmem>>, vector<32x128xf32>
      %c0_12 = arith.constant 0 : index
      %c0_13 = arith.constant 0 : index
      %13 = vector.load %arg5[%c0_12, %c0_13] : memref<1x128xf32, #tpu.memory_space<vmem>>, vector<1x128xf32>
      %14 = vector.broadcast %13 : vector<1x128xf32> to vector<32x128xf32>
      %15 = arith.mulf %12, %14 : vector<32x128xf32>
      %c0_14 = arith.constant 0 : index
      %c0_15 = arith.constant 0 : index
      %16 = vector.load %arg6[%c0_14, %c0_15] : memref<1x128xf32, #tpu.memory_space<vmem>>, vector<1x128xf32>
      %17 = vector.broadcast %16 : vector<1x128xf32> to vector<32x128xf32>
      %18 = arith.addf %15, %17 : vector<32x128xf32>
      %c0_16 = arith.constant 0 : index
      %c0_17 = arith.constant 0 : index
      %19 = vector.load %arg7[%c0_16, %c0_17] : memref<32x128xbf16, #tpu.memory_space<vmem>>, vector<32x128xbf16>
      %20 = arith.extf %19 : vector<32x128xbf16> to vector<32x128xf32>
      %21 = arith.addf %18, %20 : vector<32x128xf32>
      %22 = arith.truncf %21 : vector<32x128xf32> to vector<32x128xbf16>
      %c0_18 = arith.constant 0 : index
      %c0_19 = arith.constant 0 : index
      %23 = vector.load %arg8[%c0_18, %c0_19] : memref<32x128xbf16, #tpu.memory_space<vmem>>, vector<32x128xbf16>
      tpu.vector_store %arg8[%c0_18, %c0_19], %22 {strides = array<i32>} : memref<32x128xbf16, #tpu.memory_space<vmem>>, vector<32x128xbf16>,
    } else {
    }
    return
  }
  func.func @transform_0(%arg0: i32, %arg1: i32, %arg2: i32) -> (i32, i32) {
    %c0_i32 = arith.constant 0 : i32
    return %arg0, %arg2 : i32, i32
  }
  func.func @transform_1(%arg0: i32, %arg1: i32, %arg2: i32) -> (i32, i32) {
    %c0_i32 = arith.constant 0 : i32
    return %arg2, %arg1 : i32, i32
  }
  func.func @transform_2(%arg0: i32, %arg1: i32, %arg2: i32) -> (i32, i32) {
    %c0_i32 = arith.constant 0 : i32
    %c0_i32_0 = arith.constant 0 : i32
    return %c0_i32, %arg1 : i32, i32
  }
  func.func @transform_3(%arg0: i32, %arg1: i32, %arg2: i32) -> (i32, i32) {
    %c0_i32 = arith.constant 0 : i32
    %c0_i32_0 = arith.constant 0 : i32
    return %c0_i32, %arg1 : i32, i32
  }
  func.func @transform_4(%arg0: i32, %arg1: i32, %arg2: i32) -> (i32, i32) {
    %c0_i32 = arith.constant 0 : i32
    return %arg0, %arg1 : i32, i32
  }
  func.func @transform_5(%arg0: i32, %arg1: i32, %arg2: i32) -> (i32, i32) {
    %c0_i32 = arith.constant 0 : i32
    return %arg0, %arg1 : i32, i32
  }
}

module attributes {stable_mosaic.version = 11 : i64} {
  func.func @_head_gap_kernel(%arg0: i32, %arg1: i32, %arg2: i32, %arg3: memref<1x16x128xbf16, #tpu.memory_space<vmem>>, %arg4: memref<128x128xbf16, #tpu.memory_space<vmem>>, %arg5: memref<1x128xf32, #tpu.memory_space<vmem>>, %arg6: memref<1x128xf32, #tpu.memory_space<vmem>>, %arg7: memref<1x1x128xf32, #tpu.memory_space<vmem>>, %arg8: memref<16x128xf32, #tpu.memory_space<vmem>>) attributes {dimension_semantics = [#tpu.dimension_semantics<parallel>, #tpu.dimension_semantics<parallel>, #tpu.dimension_semantics<arbitrary>], iteration_bounds = array<i64: 2, 1, 1>, scalar_prefetch = 0 : i64, scratch_operands = 1 : i64, tpu.core_type = #tpu.core_type<tc>, window_params = [{transform_indices = @transform_0, window_bounds = array<i64: 1, 16, 128>}, {transform_indices = @transform_1, window_bounds = array<i64: 128, 128>}, {transform_indices = @transform_2, window_bounds = array<i64: 1, 128>}, {transform_indices = @transform_3, window_bounds = array<i64: 1, 128>}, {transform_indices = @transform_4, window_bounds = array<i64: 1, 1, 128>}]} {
    %c0_i32 = arith.constant 0 : i32
    %0 = arith.cmpi eq, %arg2, %c0_i32 : i32
    %1 = arith.extui %0 : i1 to i32
    %c0_i32_0 = arith.constant 0 : i32
    %2 = arith.cmpi ne, %1, %c0_i32_0 : i32
    scf.if %2 {
      %cst_11 = arith.constant 0.000000e+00 : f32
      %13 = vector.broadcast %cst_11 : f32 to vector<16x128xf32>
      %c0_12 = arith.constant 0 : index
      %c0_13 = arith.constant 0 : index
      %14 = vector.load %arg8[%c0_12, %c0_13] : memref<16x128xf32, #tpu.memory_space<vmem>>, vector<16x128xf32>
      tpu.vector_store %arg8[%c0_12, %c0_13], %13 {strides = array<i32>} : memref<16x128xf32, #tpu.memory_space<vmem>>, vector<16x128xf32>,
    } else {
    }
    %c0 = arith.constant 0 : index
    %c0_1 = arith.constant 0 : index
    %3 = vector.load %arg8[%c0, %c0_1] : memref<16x128xf32, #tpu.memory_space<vmem>>, vector<16x128xf32>
    %c0_2 = arith.constant 0 : index
    %c0_3 = arith.constant 0 : index
    %c0_4 = arith.constant 0 : index
    %4 = vector.load %arg3[%c0_2, %c0_3, %c0_4] : memref<1x16x128xbf16, #tpu.memory_space<vmem>>, vector<1x16x128xbf16>
    %5 = vector.shape_cast %4 : vector<1x16x128xbf16> to vector<16x128xbf16>
    %c0_5 = arith.constant 0 : index
    %c0_6 = arith.constant 0 : index
    %6 = vector.load %arg4[%c0_5, %c0_6] : memref<128x128xbf16, #tpu.memory_space<vmem>>, vector<128x128xbf16>
    %cst = arith.constant dense<0.000000e+00> : vector<16x128xf32>
    %7 = tpu.matmul %5, %6, %cst {dimension_numbers = #tpu.dot_dimension_numbers<[1], [0], [0], [1], [0, 0, 1, 1], [], []>} : vector<16x128xbf16>, vector<128x128xbf16>, vector<16x128xf32> -> vector<16x128xf32>
    %8 = arith.addf %3, %7 : vector<16x128xf32>
    %c0_7 = arith.constant 0 : index
    %c0_8 = arith.constant 0 : index
    %9 = vector.load %arg8[%c0_7, %c0_8] : memref<16x128xf32, #tpu.memory_space<vmem>>, vector<16x128xf32>
    tpu.vector_store %arg8[%c0_7, %c0_8], %8 {strides = array<i32>} : memref<16x128xf32, #tpu.memory_space<vmem>>, vector<16x128xf32>,
    %c0_i32_9 = arith.constant 0 : i32
    %10 = arith.cmpi eq, %arg2, %c0_i32_9 : i32
    %11 = arith.extui %10 : i1 to i32
    %c0_i32_10 = arith.constant 0 : i32
    %12 = arith.cmpi ne, %11, %c0_i32_10 : i32
    scf.if %12 {
      %c0_11 = arith.constant 0 : index
      %c0_12 = arith.constant 0 : index
      %13 = vector.load %arg8[%c0_11, %c0_12] : memref<16x128xf32, #tpu.memory_space<vmem>>, vector<16x128xf32>
      %c0_13 = arith.constant 0 : index
      %c0_14 = arith.constant 0 : index
      %14 = vector.load %arg5[%c0_13, %c0_14] : memref<1x128xf32, #tpu.memory_space<vmem>>, vector<1x128xf32>
      %15 = vector.broadcast %14 : vector<1x128xf32> to vector<16x128xf32>
      %16 = arith.mulf %13, %15 : vector<16x128xf32>
      %c0_15 = arith.constant 0 : index
      %c0_16 = arith.constant 0 : index
      %17 = vector.load %arg6[%c0_15, %c0_16] : memref<1x128xf32, #tpu.memory_space<vmem>>, vector<1x128xf32>
      %18 = vector.broadcast %17 : vector<1x128xf32> to vector<16x128xf32>
      %19 = arith.addf %16, %18 : vector<16x128xf32>
      %20 = arith.negf %19 : vector<16x128xf32>
      %21 = math.exp %20 : vector<16x128xf32>
      %cst_17 = arith.constant 1.000000e+00 : f32
      %22 = vector.broadcast %cst_17 : f32 to vector<16x128xf32>
      %23 = arith.addf %22, %21 : vector<16x128xf32>
      %24 = arith.divf %22, %23 : vector<16x128xf32>
      %25 = arith.mulf %19, %24 : vector<16x128xf32>
      %cst_18 = arith.constant dense<0.000000e+00> : vector<128xf32>
      %26 = vector.multi_reduction <add>, %25, %cst_18 [0] : vector<16x128xf32> to vector<128xf32>
      %27 = vector.shape_cast %26 : vector<128xf32> to vector<1x128xf32>
      %cst_19 = arith.constant 1.600000e+01 : f32
      %28 = vector.broadcast %cst_19 : f32 to vector<1x128xf32>
      %29 = arith.divf %27, %28 : vector<1x128xf32>
      %c0_20 = arith.constant 0 : index
      %c0_21 = arith.constant 0 : index
      %c0_22 = arith.constant 0 : index
      %30 = vector.load %arg7[%c0_20, %c0_21, %c0_22] : memref<1x1x128xf32, #tpu.memory_space<vmem>>, vector<1x1x128xf32>
      %31 = vector.shape_cast %30 : vector<1x1x128xf32> to vector<1x128xf32>
      %32 = vector.shape_cast %29 : vector<1x128xf32> to vector<1x1x128xf32>
      tpu.vector_store %arg7[%c0_20, %c0_21, %c0_22], %32 {strides = array<i32>} : memref<1x1x128xf32, #tpu.memory_space<vmem>>, vector<1x1x128xf32>,
    } else {
    }
    return
  }
  func.func @transform_0(%arg0: i32, %arg1: i32, %arg2: i32) -> (i32, i32, i32) {
    %c0_i32 = arith.constant 0 : i32
    %c0_i32_0 = arith.constant 0 : i32
    return %arg0, %c0_i32, %arg2 : i32, i32, i32
  }
  func.func @transform_1(%arg0: i32, %arg1: i32, %arg2: i32) -> (i32, i32) {
    %c0_i32 = arith.constant 0 : i32
    return %arg2, %arg1 : i32, i32
  }
  func.func @transform_2(%arg0: i32, %arg1: i32, %arg2: i32) -> (i32, i32) {
    %c0_i32 = arith.constant 0 : i32
    %c0_i32_0 = arith.constant 0 : i32
    return %c0_i32, %arg1 : i32, i32
  }
  func.func @transform_3(%arg0: i32, %arg1: i32, %arg2: i32) -> (i32, i32) {
    %c0_i32 = arith.constant 0 : i32
    %c0_i32_0 = arith.constant 0 : i32
    return %c0_i32, %arg1 : i32, i32
  }
  func.func @transform_4(%arg0: i32, %arg1: i32, %arg2: i32) -> (i32, i32, i32) {
    %c0_i32 = arith.constant 0 : i32
    %c0_i32_0 = arith.constant 0 : i32
    return %arg0, %c0_i32, %arg1 : i32, i32, i32
  }
}

</mosaic_0001>

<bundles_post_ra>
// kernel: _lambda_.11
= control target key start
LH: loop header
LB: loop body
LE: loop exit
PB: predicated region body
PF: predicated region fallthrough
CT: control target
= control target key end

     0   :  { %s1445_s27 = smov 0   ;;  %s1930_s0 = inlined_call_operand.vmem [shape: bf16[2,10,10,128], index: 0, kind: input, shape index: {}]   ;;  %s1931_s1 = inlined_call_operand.vmem [shape: bf16[9,128], index: 1, kind: input, shape index: {}]   ;;  %s1932_s2 = inlined_call_operand.vmem [shape: f32[1,128], index: 2, kind: input, shape index: {}]   ;;  %s1933_s3 = inlined_call_operand.vmem [shape: f32[1,128], index: 3, kind: input, shape index: {}, may-alias: {3,7}]   ;;  %s1934_s4 = inlined_call_operand.vmem [shape: f32[128,4], index: 4, kind: input, shape index: {}]   ;;  %s1935_s5 = inlined_call_operand.vmem [shape: f32[1,4], index: 5, kind: input, shape index: {}]   ;;  %s1936_s6 = inlined_call_operand.vmem [shape: f32[4,128], index: 6, kind: input, shape index: {}]   ;;  %s1937_s7 = inlined_call_operand.vmem [shape: f32[1,128], index: 7, kind: input, shape index: {}, may-alias: {3,7}]   ;;  %s1938_s8 = inlined_call_operand.vmem [shape: bf16[2,8,8,128], index: 8, kind: output, shape index: {}]  }
   0x1 LB: > { %s1232_s28 = sadd.s32 4294967295, %s1396_s27   ;;  %p1236_p0 = scmp.ge.s32.totalorder %s1396_s27, 1  ;;  %s1396_s27 = sphi %s1445_s27, %s18_s27  }
   0x2   : > { %p262_p1 = scmp.lt.s32.totalorder %s1396_s27, 3 }
   0x4   : > { %p263_p2 = pnand %p1236_p0, %p262_p1 }
   0x5   : > { %p296_p3 = scmp.lt.s32.totalorder (!%p263_p2), %s1232_s28, 1 }
   0x6   : > { %266 = sbr.rel (%p263_p2) target bundleno = 640 (0x280), region = 52 }
   0xb   : > { %v984_v0 = vld [vmem:[%s1934_s4 + $0x78] sm:$0xff]  ;;  %v338_v1 = vlaneseq  ;;  %v1398_v2 = vmov 0.0   ;;  %v983_v3 = vld [vmem:[%s1934_s4 + $0x70] sm:$0xff]  ;;  %vm1399_vm0 = vmmov 0   ;;  %s1941_s28 = smov (!%p296_p3, %s1232_s28), 1  ;;  %v982_v5 = vld [vmem:[%s1934_s4 + $0x68] sm:$0xff] }
   0xc   : > { %1299 = vmatprep.subr.mxu0 %v1398_v2  ;;  %1331 = vmatprep.mubr.msk.f32.mxu0 %vm1399_vm0, %v1398_v2  ;;  %s1339_s13 = smul.u32 80, %s1941_s28  ;;  %v981_v7 = vld [vmem:[%s1934_s4 + $0x60] sm:$0xff]  ;;  %v980_v10 = vld [vmem:[%s1934_s4 + $0x58] sm:$0xff]  ;;  %v979_v18 = vld [vmem:[%s1934_s4 + $0x50] sm:$0xff]  ;;  %vm402_vm1 = vcmask 1046528   ;;  %vm479_vm2 = vcmask 1045504  }
   0xd   : > { %1300 = vmatpush3.msra.mxu0 %v984_v0  ;;  %v1463_v4 = vshrl.u32 %v338_v1, 7  ;;  %1334 = vmatprep.subr.mxu1 %v1398_v2  ;;  %v306_v8 = vld [vmem:[%s1931_s1] sm:$0xf]  ;;  %v978_v39 = vld [vmem:[%s1934_s4 + $0x48] sm:$0xff]  ;;  %v976_v60 = vld [vmem:[%s1934_s4 + $0x38] sm:$0xff]  ;;  %vm1069_vm3 = vcmask 1043456  }
   0xe   : > { %1301 = vmatprep.subr.mxu0 %v1398_v2  ;;  %1336 = vmatprep.mubr.msk.f32.mxu1 %vm1399_vm0, %v1398_v2  ;;  %s1489_s22 = scalar_lea.vmem %s1930_s0, %s1339_s13  ;;  %v1491_v11 = vunpack.c.l.bf16 %v306_v8  ;;  %v977_v51 = vld [vmem:[%s1934_s4 + $0x40] sm:$0xff]  ;;  %v975_v8 = vld [vmem:[%s1934_s4 + $0x30] sm:$0xff]  ;;  %vm1065_vm4 = vcmask 31744   ;;  %s1256_s17 = sshll.u32 %s1941_s28, 5 }
   0xf   : > { %1302 = vmatpush3.msra.mxu0 %v983_v3  ;;  %v1473_v6 = vsub.s32 0, %v1463_v4  ;;  %v368_v9 = vsub.s32 1, %v1463_v4  ;;  %v445_v12 = vsub.s32 2, %v1463_v4  ;;  %v523_v13 = vsub.s32 3, %v1463_v4  ;;  %v310_v15 = vld [vmem:[%s1489_s22] ss:$8 sps:$4 sm:$0xff]   ;;  %s305_s20 = scalar_lea.vmem %s1938_s8, %s1256_s17 }
  0x10   : > { %1303 = vmatprep.subr.mxu0 %v1398_v2  ;;  %v544_v14 = vsub.s32 4, %v1463_v4  ;;  %v1499_v16 = vld [vmem:[%s1489_s22 + $0x4] sm:$0x1]  ;;  %v313_v17 = vld [vmem:[%s1489_s22 + $0xc] sm:$0x1]  ;;  %v1507_v21 = vunpack.c.l.bf16 %v310_v15  ;;  %v1509_v22 = vunpack.c.h.bf16 %v310_v15 }
  0x11   : > { %1304 = vmatpush3.msra.mxu0 %v982_v5  ;;  %v314_v19 = vld [vmem:[%s1489_s22 + $0x10] ss:$8 sps:$4 sm:$0xff]   ;;  %v315_v20 = vld [vmem:[%s1489_s22 + $0x14] sm:$0x1]  ;;  %v341_v23 = vrot.slane %v1491_v11, %v1473_v6  ;;  %v358_v24 = vunpack.c.l.bf16 %v1499_v16  ;;  %v317_v25 = vld [vmem:[%s1489_s22 + $0x1c] sm:$0x1]  ;;  %v1522_v30 = vunpack.c.l.bf16 %v313_v17  ;;  %v369_v57 = vrot.slane %v1491_v11, %v368_v9 }
  0x12   : > { %1305 = vmatprep.subr.mxu0 %v1398_v2  ;;  %v318_v26 = vld [vmem:[%s1489_s22 + $0x20] ss:$8 sps:$4 sm:$0xff]   ;;  %v319_v27 = vld [vmem:[%s1489_s22 + $0x24] sm:$0x1]  ;;  %v1518_v28 = vunpack.c.l.bf16 %v314_v19  ;;  %v1520_v29 = vunpack.c.h.bf16 %v314_v19  ;;  %v1524_v31 = vunpack.c.l.bf16 %v315_v20  ;;  %v321_v32 = vld [vmem:[%s1489_s22 + $0x2c] sm:$0x1]  ;;  %v1564_v49 = vunpack.c.l.bf16 %v317_v25 }
  0x13   : > { %1306 = vmatpush3.msra.mxu0 %v981_v7  ;;  %v322_v33 = vld [vmem:[%s1489_s22 + $0x30] ss:$8 sps:$4 sm:$0xff]   ;;  %v323_v34 = vld [vmem:[%s1489_s22 + $0x34] sm:$0x1]  ;;  %v1529_v35 = vunpack.c.l.bf16 %v318_v26  ;;  %v1531_v36 = vunpack.c.h.bf16 %v318_v26  ;;  %v1534_v37 = vmul.f32 %v341_v23, %v1507_v21  ;;  %v1537_v38 = vmul.f32 %v341_v23, %v1509_v22  ;;  %v325_v40 = vld [vmem:[%s1489_s22 + $0x3c] sm:$0x1] }
  0x14   : > { %1307 = vmatprep.subr.mxu0 %v1398_v2  ;;  %v1545_v41 = vld [vmem:[%s1489_s22 + $0x40] ss:$8 sps:$4 sm:$0xff]   ;;  %v1547_v42 = vunpack.c.l.bf16 %v322_v33  ;;  %v1549_v43 = vunpack.c.h.bf16 %v322_v33  ;;  %v1552_v44 = vmul.f32 %v341_v23, %v1518_v28  ;;  %v1555_v45 = vmul.f32 %v341_v23, %v1520_v29  ;;  %v327_v46 = vld [vmem:[%s1489_s22 + $0x44] sm:$0x1] }
  0x15   : > { %1308 = vmatpush3.msra.mxu0 %v980_v10  ;;  %v1559_v47 = vmul.f32 %v341_v23, %v1529_v35  ;;  %v1562_v48 = vmul.f32 %v341_v23, %v1531_v36  ;;  %v1566_v50 = vunpack.c.l.bf16 %v319_v27  ;;  %v1578_v54 = vunpack.c.l.bf16 %v321_v32  ;;  %v974_v19 = vld [vmem:[%s1934_s4 + $0x28] sm:$0xff] }
  0x16   : > { %1309 = vmatprep.subr.mxu0 %v1398_v2  ;;  %v1573_v52 = vmul.f32 %v341_v23, %v1547_v42  ;;  %v1576_v53 = vmul.f32 %v341_v23, %v1549_v43  ;;  %v1580_v55 = vunpack.c.l.bf16 %v323_v34  ;;  %v1582_v56 = vunpack.c.l.bf16 %v325_v40 }
  0x17   : > { %1310 = vmatpush3.msra.mxu0 %v979_v18  ;;  %v1586_v58 = vrot.slane %v1491_v11, %v445_v12  ;;  %v1589_v59 = vunpack.c.l.bf16 %v1545_v41  ;;  %v1596_v61 = vrot.slane %v1491_v11, %v523_v13  ;;  %v1598_v62 = vunpack.c.l.bf16 %v327_v46 }
  0x18   : > { %1311 = vmatprep.subr.mxu0 %v1398_v2  ;;  %v1601_v63 = vrot.slane %v1491_v11, %v544_v14  ;;  %v370_v1 = vmul.f32 %v369_v57, %v1507_v21  ;;  %v371_v3 = vmul.f32 %v369_v57, %v358_v24  ;;  %v372_v5 = vmul.f32 %v369_v57, %v1509_v22 }
  0x19   : > { %1312 = vmatpush3.msra.mxu0 %v978_v39  ;;  %v373_v7 = vmul.f32 %v369_v57, %v1522_v30  ;;  %v374_v9 = vmul.f32 %v369_v57, %v1518_v28  ;;  %v375_v10 = vmul.f32 %v369_v57, %v1524_v31  ;;  %v376_v12 = vmul.f32 %v369_v57, %v1520_v29  ;;  %v973_v39 = vld [vmem:[%s1934_s4 + $0x20] sm:$0xff] }
  0x1a   : > { %1313 = vmatprep.subr.mxu0 %v1398_v2  ;;  %v377_v13 = vmul.f32 %v369_v57, %v1564_v49  ;;  %v378_v14 = vmul.f32 %v369_v57, %v1529_v35  ;;  %v379_v15 = vmul.f32 %v369_v57, %v1566_v50  ;;  %v380_v17 = vmul.f32 %v369_v57, %v1531_v36 }
  0x1b   : > { %1314 = vmatpush3.msra.mxu0 %v977_v51  ;;  %v381_v18 = vmul.f32 %v369_v57, %v1578_v54  ;;  %v382_v20 = vmul.f32 %v369_v57, %v1547_v42  ;;  %v383_v23 = vmul.f32 %v369_v57, %v1580_v55  ;;  %v384_v25 = vmul.f32 %v369_v57, %v1549_v43 }
  0x1c   : > { %1315 = vmatprep.subr.mxu0 %v1398_v2  ;;  %v385_v26 = vmul.f32 %v369_v57, %v1582_v56  ;;  %v403_v27 = vrot.slane %v370_v1, 1  ;;  %v404_v32 = vrot.slane %v371_v3, 1  ;;  %v406_v33 = vrot.slane %v372_v5, 1  ;;  %v972_v3 = vld [vmem:[%s1934_s4 + $0x18] sm:$0xff] }
  0x1d   : > { %1316 = vmatpush3.msra.mxu0 %v976_v60  ;;  %v407_v34 = vrot.slane %v373_v7, 1  ;;  %v409_v40 = vrot.slane %v374_v9, 1  ;;  %v410_v46 = vrot.slane %v375_v10, 1  ;;  %v412_v51 = vrot.slane %v376_v12, 1 }
  0x1e   : > { %1317 = vmatprep.subr.mxu0 %v1398_v2  ;;  %v413_v60 = vrot.slane %v377_v13, 1  ;;  %v405_v0 = vsel %vm402_vm1, %v403_v27, %v404_v32  ;;  %v416_v1 = vrot.slane %v379_v15, 1  ;;  %v418_v9 = vrot.slane %v380_v17, 1  ;;  %v971_v15 = vld [vmem:[%s1934_s4 + $0x10] sm:$0xff] }
  0x1f   : > { %1318 = vmatpush3.msra.mxu0 %v975_v8  ;;  %v408_v57 = vsel %vm402_vm1, %v406_v33, %v407_v34  ;;  %v415_v8 = vrot.slane %v378_v14, 1  ;;  %v411_v5 = vsel %vm402_vm1, %v409_v40, %v410_v46  ;;  %v419_v10 = vrot.slane %v381_v18, 1  ;;  %v970_v34 = vld [vmem:[%s1934_s4 + $0x8] sm:$0xff] }
  0x20   : > { %1319 = vmatprep.subr.mxu0 %v1398_v2  ;;  %v414_v7 = vsel %vm402_vm1, %v412_v51, %v413_v60  ;;  %v421_v13 = vrot.slane %v382_v20, 1  ;;  %v424_v14 = vrot.slane %v384_v25, 1  ;;  %v425_v32 = vrot.slane %v385_v26, 1 }
  0x21   : > { %1320 = vmatpush3.msra.mxu0 %v974_v19  ;;  %v417_v12 = vsel %vm402_vm1, %v415_v8, %v416_v1  ;;  %v422_v19 = vrot.slane %v383_v23, 1  ;;  %v420_v27 = vsel %vm402_vm1, %v418_v9, %v419_v10  ;;  %v435_v33 = vadd.f32 %v405_v0, %v1534_v37 }
  0x22   : > { %1321 = vmatprep.subr.mxu0 %v1398_v2  ;;  %v436_v17 = vadd.f32 %v408_v57, %v1537_v38  ;;  %v437_v20 = vadd.f32 %v411_v5, %v1552_v44  ;;  %v438_v23 = vadd.f32 %v414_v7, %v1555_v45  ;;  %v439_v25 = vadd.f32 %v417_v12, %v1559_v47 }
  0x23   : > { %1322 = vmatpush3.msra.mxu0 %v973_v39  ;;  %v423_v18 = vsel %vm402_vm1, %v421_v13, %v422_v19  ;;  %v426_v26 = vsel %vm402_vm1, %v424_v14, %v425_v32  ;;  %v440_v37 = vadd.f32 %v420_v27, %v1562_v48  ;;  %v447_v0 = vmul.f32 %v1586_v58, %v1507_v21  ;;  %v969_v48 = vld [vmem:[%s1934_s4] sm:$0xff] }
  0x24   : > { %1323 = vmatprep.subr.mxu0 %v1398_v2  ;;  %v441_v38 = vadd.f32 %v423_v18, %v1573_v52  ;;  %v442_v44 = vadd.f32 %v426_v26, %v1576_v53  ;;  %v448_v45 = vmul.f32 %v1586_v58, %v358_v24  ;;  %v449_v47 = vmul.f32 %v1586_v58, %v1509_v22 }
  0x25   : > { %1324 = vmatpush3.msra.mxu0 %v972_v3  ;;  %v450_v39 = vmul.f32 %v1586_v58, %v1522_v30  ;;  %v451_v21 = vmul.f32 %v1586_v58, %v1518_v28  ;;  %v452_v16 = vmul.f32 %v1586_v58, %v1524_v31  ;;  %v453_v24 = vmul.f32 %v1586_v58, %v1520_v29 }
  0x26   : > { %1325 = vmatprep.subr.mxu0 %v1398_v2  ;;  %v454_v52 = vmul.f32 %v1586_v58, %v1564_v49  ;;  %v455_v53 = vmul.f32 %v1586_v58, %v1529_v35  ;;  %v456_v40 = vmul.f32 %v1586_v58, %v1566_v50  ;;  %v457_v46 = vmul.f32 %v1586_v58, %v1531_v36 }
  0x27   : > { %1326 = vmatpush3.msra.mxu0 %v971_v15  ;;  %v458_v51 = vmul.f32 %v1586_v58, %v1578_v54  ;;  %v459_v60 = vmul.f32 %v1586_v58, %v1547_v42  ;;  %v460_v57 = vmul.f32 %v1586_v58, %v1580_v55  ;;  %v461_v8 = vmul.f32 %v1586_v58, %v1549_v43 }
  0x28   : > { %1327 = vmatprep.subr.mxu0 %v1398_v2  ;;  %v462_v1 = vmul.f32 %v1586_v58, %v1582_v56  ;;  %v480_v3 = vrot.slane %v447_v0, 2  ;;  %v481_v5 = vrot.slane %v448_v45, 2  ;;  %v483_v7 = vrot.slane %v449_v47, 2 }
  0x29   : > { %1328 = vmatpush3.msra.mxu0 %v970_v34  ;;  %v484_v9 = vrot.slane %v450_v39, 2  ;;  %v486_v10 = vrot.slane %v451_v21, 2  ;;  %v487_v12 = vrot.slane %v452_v16, 2  ;;  %v490_v13 = vrot.slane %v454_v52, 2 }
  0x2a   : > { %1329 = vmatprep.subr.mxu0 %v1398_v2  ;;  %v489_v2 = vrot.slane %v453_v24, 2  ;;  %v482_v19 = vsel %vm479_vm2, %v480_v3, %v481_v5  ;;  %v492_v15 = vrot.slane %v455_v53, 2  ;;  %v493_v27 = vrot.slane %v456_v40, 2 }
  0x2b   : > { %1330 = vmatpush3.msra.mxu0 %v969_v48  ;;  %v485_v14 = vsel %vm479_vm2, %v483_v7, %v484_v9  ;;  %v488_v32 = vsel %vm479_vm2, %v486_v10, %v487_v12  ;;  %v495_v58 = vrot.slane %v457_v46, 2  ;;  %v496_v34 = vrot.slane %v458_v51, 2 }
  0x2c   : > { %v491_v18 = vsel %vm479_vm2, %v489_v2, %v490_v13  ;;  %v494_v26 = vsel %vm479_vm2, %v492_v15, %v493_v27  ;;  %v498_v0 = vrot.slane %v459_v60, 2  ;;  %v499_v45 = vrot.slane %v460_v57, 2 }
  0x2d   : > { %v501_v47 = vrot.slane %v461_v8, 2  ;;  %v497_v39 = vsel %vm479_vm2, %v495_v58, %v496_v34  ;;  %v502_v48 = vrot.slane %v462_v1, 2  ;;  %v512_v21 = vadd.f32 %v482_v19, %v435_v33 }
  0x2e   : > { %v513_v16 = vadd.f32 %v485_v14, %v436_v17  ;;  %v500_v24 = vsel %vm479_vm2, %v498_v0, %v499_v45  ;;  %v514_v52 = vadd.f32 %v488_v32, %v437_v20  ;;  %v515_v53 = vadd.f32 %v491_v18, %v438_v23 }
  0x2f   : > { %v516_v40 = vadd.f32 %v494_v26, %v439_v25  ;;  %v503_v3 = vsel %vm479_vm2, %v501_v47, %v502_v48  ;;  %v517_v5 = vadd.f32 %v497_v39, %v440_v37  ;;  %v518_v46 = vadd.f32 %v500_v24, %v441_v38 }
  0x30   : > { %v525_v51 = vmul.f32 %v1596_v61, %v1509_v22  ;;  %v519_v60 = vadd.f32 %v503_v3, %v442_v44  ;;  %v526_v57 = vmul.f32 %v1596_v61, %v1518_v28  ;;  %v527_v33 = vmul.f32 %v1596_v61, %v1520_v29 }
  0x31   : > { %v528_v17 = vmul.f32 %v1596_v61, %v1529_v35  ;;  %v529_v20 = vmul.f32 %v1596_v61, %v1531_v36  ;;  %v530_v23 = vmul.f32 %v1596_v61, %v1547_v42  ;;  %v531_v25 = vmul.f32 %v1596_v61, %v1549_v43 }
  0x32   : > { %v532_v37 = vmul.f32 %v1596_v61, %v1589_v59  ;;  %v533_v38 = vadd.f32 %v525_v51, %v512_v21  ;;  %v534_v44 = vadd.f32 %v526_v57, %v513_v16  ;;  %v535_v8 = vadd.f32 %v527_v33, %v514_v52 }
  0x33   : > { %v536_v1 = vadd.f32 %v528_v17, %v515_v53  ;;  %v537_v7 = vadd.f32 %v529_v20, %v516_v40  ;;  %v538_v9 = vadd.f32 %v530_v23, %v517_v5  ;;  %v539_v10 = vadd.f32 %v531_v25, %v518_v46  ;;  %v1758_v5 = vld [vmem:[%s1931_s1 + $0x4] sm:$0x1] }
  0x34   : > { %v540_v12 = vadd.f32 %v532_v37, %v519_v60  ;;  %v546_v2 = vmul.f32 %v1601_v63, %v1509_v22  ;;  %v547_v13 = vmul.f32 %v1601_v63, %v1522_v30  ;;  %v548_v19 = vmul.f32 %v1601_v63, %v1518_v28 }
  0x35   : > { %v549_v61 = vmul.f32 %v1601_v63, %v1524_v31  ;;  %v550_v14 = vmul.f32 %v1601_v63, %v1520_v29  ;;  %v551_v15 = vmul.f32 %v1601_v63, %v1564_v49  ;;  %v552_v27 = vmul.f32 %v1601_v63, %v1529_v35 }
  0x36   : > { %v553_v32 = vmul.f32 %v1601_v63, %v1566_v50  ;;  %v554_v18 = vmul.f32 %v1601_v63, %v1531_v36  ;;  %v555_v58 = vmul.f32 %v1601_v63, %v1578_v54  ;;  %v556_v34 = vmul.f32 %v1601_v63, %v1547_v42 }
  0x37   : > { %v557_v26 = vmul.f32 %v1601_v63, %v1580_v55  ;;  %v558_v0 = vmul.f32 %v1601_v63, %v1549_v43  ;;  %v559_v45 = vmul.f32 %v1601_v63, %v1582_v56  ;;  %v560_v47 = vmul.f32 %v1601_v63, %v1589_v59 }
  0x38   : > { %v561_v39 = vmul.f32 %v1601_v63, %v1598_v62  ;;  %v578_v48 = vrot.slane %v546_v2, 1  ;;  %v579_v21 = vrot.slane %v547_v13, 1  ;;  %v581_v16 = vrot.slane %v548_v19, 1 }
  0x39   : > { %v582_v24 = vrot.slane %v549_v61, 1  ;;  %v584_v52 = vrot.slane %v550_v14, 1  ;;  %v585_v53 = vrot.slane %v551_v15, 1  ;;  %v587_v40 = vrot.slane %v552_v27, 1 }
  0x3a   : > { %v588_v3 = vrot.slane %v553_v32, 1  ;;  %v580_v46 = vsel %vm402_vm1, %v578_v48, %v579_v21  ;;  %v590_v60 = vrot.slane %v554_v18, 1  ;;  %v591_v57 = vrot.slane %v555_v58, 1 }
  0x3b   : > { %v583_v51 = vsel %vm402_vm1, %v581_v16, %v582_v24  ;;  %v586_v63 = vsel %vm402_vm1, %v584_v52, %v585_v53  ;;  %v593_v17 = vrot.slane %v556_v34, 1  ;;  %v594_v20 = vrot.slane %v557_v26, 1 }
  0x3c   : > { %v589_v33 = vsel %vm402_vm1, %v587_v40, %v588_v3  ;;  %v592_v23 = vsel %vm402_vm1, %v590_v60, %v591_v57  ;;  %v596_v25 = vrot.slane %v558_v0, 1  ;;  %v597_v37 = vrot.slane %v559_v45, 1 }
  0x3d   : > { %v599_v2 = vrot.slane %v560_v47, 1  ;;  %v309_v13 = vunpack.c.l.bf16 %v1758_v5  ;;  %v595_v19 = vsel %vm402_vm1, %v593_v17, %v594_v20  ;;  %v600_v61 = vrot.slane %v561_v39, 1  ;;  %v1793_v20 = vld [vmem:[%s1489_s22 + $0x4c] sm:$0x1] }
  0x3e   : > { %v610_v14 = vadd.f32 %v580_v46, %v533_v38  ;;  %v598_v15 = vsel %vm402_vm1, %v596_v25, %v597_v37  ;;  %v611_v27 = vadd.f32 %v583_v51, %v534_v44  ;;  %v612_v32 = vadd.f32 %v586_v63, %v535_v8 }
  0x3f   : > { %v613_v18 = vadd.f32 %v589_v33, %v536_v1  ;;  %v601_v58 = vsel %vm402_vm1, %v599_v2, %v600_v61  ;;  %v614_v34 = vadd.f32 %v592_v23, %v537_v7  ;;  %v615_v26 = vadd.f32 %v595_v19, %v538_v9 }
  0x40   : > { %v1939_v48 = vsub.s32 5, %v1463_v4  ;;  %v616_v45 = vadd.f32 %v598_v15, %v539_v10  ;;  %v617_v47 = vadd.f32 %v601_v58, %v540_v12  ;;  %v1773_v21 = vunpack.c.h.bf16 %v1545_v41 }
  0x41   : > { %v697_v38 = vsub.s32 6, %v1463_v4 }
  0x42   : > { %v621_v0 = vrot.slane %v1491_v11, %v1939_v48 }
  0x44   : > { %v622_v39 = vmul.f32 %v621_v0, %v1509_v22  ;;  %v623_v44 = vmul.f32 %v621_v0, %v1522_v30  ;;  %v624_v8 = vmul.f32 %v621_v0, %v1518_v28  ;;  %v625_v1 = vmul.f32 %v621_v0, %v1524_v31 }
  0x45   : > { %v626_v7 = vmul.f32 %v621_v0, %v1520_v29  ;;  %v627_v9 = vmul.f32 %v621_v0, %v1564_v49  ;;  %v628_v10 = vmul.f32 %v621_v0, %v1529_v35  ;;  %v629_v12 = vmul.f32 %v621_v0, %v1566_v50 }
  0x46   : > { %v630_v41 = vmul.f32 %v621_v0, %v1531_v36  ;;  %v631_v16 = vmul.f32 %v621_v0, %v1578_v54  ;;  %v632_v22 = vmul.f32 %v621_v0, %v1547_v42  ;;  %v633_v30 = vmul.f32 %v621_v0, %v1580_v55 }
  0x47   : > { %v634_v24 = vmul.f32 %v621_v0, %v1549_v43  ;;  %v635_v52 = vmul.f32 %v621_v0, %v1582_v56  ;;  %v636_v53 = vmul.f32 %v621_v0, %v1589_v59  ;;  %v637_v40 = vmul.f32 %v621_v0, %v1598_v62 }
  0x48   : > { %v654_v3 = vrot.slane %v622_v39, 2  ;;  %v655_v46 = vrot.slane %v623_v44, 2  ;;  %v657_v51 = vrot.slane %v624_v8, 2  ;;  %v658_v60 = vrot.slane %v625_v1, 2 }
  0x49   : > { %v660_v57 = vrot.slane %v626_v7, 2  ;;  %v661_v63 = vrot.slane %v627_v9, 2  ;;  %v663_v33 = vrot.slane %v628_v10, 2  ;;  %v664_v17 = vrot.slane %v629_v12, 2 }
  0x4a   : > { %v656_v23 = vsel %vm479_vm2, %v654_v3, %v655_v46  ;;  %v659_v25 = vsel %vm479_vm2, %v657_v51, %v658_v60  ;;  %v666_v37 = vrot.slane %v630_v41, 2  ;;  %v667_v2 = vrot.slane %v631_v16, 2 }
  0x4b   : > { %v662_v19 = vsel %vm479_vm2, %v660_v57, %v661_v63  ;;  %v665_v61 = vsel %vm479_vm2, %v663_v33, %v664_v17  ;;  %v669_v15 = vrot.slane %v632_v22, 2  ;;  %v670_v58 = vrot.slane %v633_v30, 2 }
  0x4c   : > { %v668_v48 = vsel %vm479_vm2, %v666_v37, %v667_v2  ;;  %v672_v0 = vrot.slane %v634_v24, 2  ;;  %v673_v39 = vrot.slane %v635_v52, 2  ;;  %v675_v44 = vrot.slane %v636_v53, 2 }
  0x4d   : > { %v671_v8 = vsel %vm479_vm2, %v669_v15, %v670_v58  ;;  %v676_v1 = vrot.slane %v637_v40, 2  ;;  %v686_v7 = vadd.f32 %v656_v23, %v610_v14  ;;  %v715_v9 = vunpack.c.l.bf16 %v1793_v20 }
  0x4e   : > { %v674_v10 = vsel %vm479_vm2, %v672_v0, %v673_v39  ;;  %v687_v12 = vadd.f32 %v659_v25, %v611_v27  ;;  %v688_v41 = vadd.f32 %v662_v19, %v612_v32  ;;  %v689_v16 = vadd.f32 %v665_v61, %v613_v18 }
  0x4f   : > { %v677_v3 = vsel %vm479_vm2, %v675_v44, %v676_v1  ;;  %v690_v22 = vadd.f32 %v668_v48, %v614_v34  ;;  %v691_v30 = vadd.f32 %v671_v8, %v615_v26  ;;  %v698_v46 = vrot.slane %v1491_v11, %v697_v38 }
  0x50   : > { %v692_v24 = vadd.f32 %v674_v10, %v616_v45  ;;  %v693_v52 = vadd.f32 %v677_v3, %v617_v47  ;;  %v718_v53 = vsub.s32 7, %v1463_v4  ;;  %v1809_v14 = vrot.slane %v309_v13, %v1473_v6 }
  0x51   : > { %v699_v40 = vmul.f32 %v698_v46, %v1518_v28  ;;  %v700_v27 = vmul.f32 %v698_v46, %v1520_v29  ;;  %v701_v32 = vmul.f32 %v698_v46, %v1529_v35  ;;  %v702_v18 = vmul.f32 %v698_v46, %v1531_v36 }
  0x52   : > { %v703_v34 = vmul.f32 %v698_v46, %v1547_v42  ;;  %v704_v26 = vmul.f32 %v698_v46, %v1549_v43  ;;  %v705_v45 = vmul.f32 %v698_v46, %v1589_v59  ;;  %v706_v4 = vmul.f32 %v698_v46, %v1773_v21 }
  0x53   : > { %v707_v47 = vadd.f32 %v699_v40, %v686_v7  ;;  %v708_v5 = vadd.f32 %v700_v27, %v687_v12  ;;  %v709_v13 = vadd.f32 %v701_v32, %v688_v41  ;;  %v710_v38 = vadd.f32 %v702_v18, %v689_v16 }
  0x54   : > { %v711_v51 = vadd.f32 %v703_v34, %v690_v22  ;;  %v712_v60 = vadd.f32 %v704_v26, %v691_v30  ;;  %v713_v57 = vadd.f32 %v705_v45, %v692_v24  ;;  %v714_v63 = vadd.f32 %v706_v4, %v693_v52 }
  0x55   : > { %v719_v33 = vrot.slane %v1491_v11, %v718_v53  ;;  %v1822_v17 = vmul.f32 %v1809_v14, %v1518_v28  ;;  %v1826_v23 = vmul.f32 %v1809_v14, %v1524_v31  ;;  %v1830_v25 = vmul.f32 %v1809_v14, %v1520_v29 }
  0x56   : > { %v1834_v37 = vmul.f32 %v1809_v14, %v1564_v49  ;;  %v1838_v2 = vmul.f32 %v1809_v14, %v1529_v35  ;;  %v1842_v11 = vmul.f32 %v1809_v14, %v1566_v50  ;;  %v1846_v19 = vmul.f32 %v1809_v14, %v1531_v36 }
  0x57   : > { %v720_v61 = vmul.f32 %v719_v33, %v1518_v28  ;;  %v721_v15 = vmul.f32 %v719_v33, %v1524_v31  ;;  %v722_v58 = vmul.f32 %v719_v33, %v1520_v29  ;;  %v723_v48 = vmul.f32 %v719_v33, %v1564_v49 }
  0x58   : > { %v724_v0 = vmul.f32 %v719_v33, %v1529_v35  ;;  %v725_v39 = vmul.f32 %v719_v33, %v1566_v50  ;;  %v726_v44 = vmul.f32 %v719_v33, %v1531_v36  ;;  %v727_v8 = vmul.f32 %v719_v33, %v1578_v54 }
  0x59   : > { %v728_v1 = vmul.f32 %v719_v33, %v1547_v42  ;;  %v729_v7 = vmul.f32 %v719_v33, %v1580_v55  ;;  %v730_v28 = vmul.f32 %v719_v33, %v1549_v43  ;;  %v731_v31 = vmul.f32 %v719_v33, %v1582_v56 }
  0x5a   : > { %v732_v29 = vmul.f32 %v719_v33, %v1589_v59  ;;  %v733_v49 = vmul.f32 %v719_v33, %v1598_v62  ;;  %v734_v35 = vmul.f32 %v719_v33, %v1773_v21  ;;  %v735_v50 = vmul.f32 %v719_v33, %v715_v9 }
  0x5b   : > { %v752_v36 = vrot.slane %v720_v61, 1  ;;  %v753_v10 = vrot.slane %v721_v15, 1  ;;  %v755_v12 = vrot.slane %v722_v58, 1  ;;  %v756_v41 = vrot.slane %v723_v48, 1 }
  0x5c   : > { %v758_v16 = vrot.slane %v724_v0, 1  ;;  %v759_v3 = vrot.slane %v725_v39, 1  ;;  %v761_v22 = vrot.slane %v726_v44, 1  ;;  %v762_v30 = vrot.slane %v727_v8, 1 }
  0x5d   : > { %v754_v46 = vsel %vm402_vm1, %v752_v36, %v753_v10  ;;  %v757_v24 = vsel %vm402_vm1, %v755_v12, %v756_v41  ;;  %v764_v52 = vrot.slane %v728_v1, 1  ;;  %v765_v53 = vrot.slane %v729_v7, 1  ;;  %v1240_v10 = vld [vmem:[%s1932_s2] ss:$0 sm:$0xff] }
  0x5e   : > { %v760_v40 = vsel %vm402_vm1, %v758_v16, %v759_v3  ;;  %v763_v27 = vsel %vm402_vm1, %v761_v22, %v762_v30  ;;  %v767_v32 = vrot.slane %v730_v28, 1  ;;  %v768_v18 = vrot.slane %v731_v31, 1 }
  0x5f   : > { %v766_v34 = vsel %vm402_vm1, %v764_v52, %v765_v53  ;;  %v770_v26 = vrot.slane %v732_v29, 1  ;;  %v771_v45 = vrot.slane %v733_v49, 1  ;;  %v773_v4 = vrot.slane %v734_v35, 1  ;;  %v1241_v52 = vld [vmem:[%s1933_s3] ss:$0 sm:$0xff] }
  0x60   : > { %v769_v33 = vsel %vm402_vm1, %v767_v32, %v768_v18  ;;  %v774_v61 = vrot.slane %v735_v50, 1  ;;  %v784_v15 = vadd.f32 %v754_v46, %v707_v47  ;;  %v785_v58 = vadd.f32 %v757_v24, %v708_v5 }
  0x61   : > { %v772_v48 = vsel %vm402_vm1, %v770_v26, %v771_v45  ;;  %v786_v0 = vadd.f32 %v760_v40, %v709_v13  ;;  %v787_v39 = vadd.f32 %v763_v27, %v710_v38  ;;  %v788_v44 = vadd.f32 %v766_v34, %v711_v51 }
  0x62   : > { %v775_v8 = vsel %vm402_vm1, %v773_v4, %v774_v61  ;;  %v789_v1 = vadd.f32 %v769_v33, %v712_v60  ;;  %v790_v7 = vadd.f32 %v772_v48, %v713_v57  ;;  %v803_v28 = vmul.f32 %v1809_v14, %v1578_v54 }
  0x63   : > { %v791_v31 = vadd.f32 %v775_v8, %v714_v63  ;;  %v804_v29 = vmul.f32 %v1809_v14, %v1547_v42  ;;  %v805_v47 = vmul.f32 %v1809_v14, %v1580_v55  ;;  %v806_v5 = vmul.f32 %v1809_v14, %v1549_v43 }
  0x64   : > { %v807_v13 = vmul.f32 %v1809_v14, %v1582_v56  ;;  %v808_v38 = vmul.f32 %v1809_v14, %v1589_v59  ;;  %v809_v51 = vmul.f32 %v1809_v14, %v1598_v62  ;;  %v810_v54 = vmul.f32 %v1809_v14, %v1773_v21 }
  0x65   : > { %v811_v42 = vmul.f32 %v1809_v14, %v715_v9  ;;  %v828_v55 = vrot.slane %v1822_v17, 2  ;;  %v829_v43 = vrot.slane %v1826_v23, 2  ;;  %v831_v60 = vrot.slane %v1830_v25, 2 }
  0x66   : > { %v832_v56 = vrot.slane %v1834_v37, 2  ;;  %v834_v59 = vrot.slane %v1838_v2, 2  ;;  %v835_v57 = vrot.slane %v1842_v11, 2  ;;  %v837_v62 = vrot.slane %v1846_v19, 2 }
  0x67   : > { %v830_v21 = vsel %vm479_vm2, %v828_v55, %v829_v43  ;;  %v838_v63 = vrot.slane %v803_v28, 2  ;;  %v840_v20 = vrot.slane %v804_v29, 2  ;;  %v841_v49 = vrot.slane %v805_v47, 2 }
  0x68   : > { %v833_v9 = vsel %vm479_vm2, %v831_v60, %v832_v56  ;;  %v836_v14 = vsel %vm479_vm2, %v834_v59, %v835_v57  ;;  %v843_v17 = vrot.slane %v806_v5, 2  ;;  %v844_v23 = vrot.slane %v807_v13, 2 }
  0x69   : > { %v839_v25 = vsel %vm479_vm2, %v837_v62, %v838_v63  ;;  %v842_v37 = vsel %vm479_vm2, %v840_v20, %v841_v49  ;;  %v846_v2 = vrot.slane %v808_v38, 2  ;;  %v847_v35 = vrot.slane %v809_v51, 2 }
  0x6a   : > { %v845_v11 = vsel %vm479_vm2, %v843_v17, %v844_v23  ;;  %v849_v19 = vrot.slane %v810_v54, 2  ;;  %v850_v50 = vrot.slane %v811_v42, 2  ;;  %v860_v36 = vadd.f32 %v830_v21, %v784_v15 }
  0x6b   : > { %v848_v12 = vsel %vm479_vm2, %v846_v2, %v847_v35  ;;  %v861_v41 = vadd.f32 %v833_v9, %v785_v58  ;;  %v862_v16 = vadd.f32 %v836_v14, %v786_v0  ;;  %v863_v3 = vadd.f32 %v839_v25, %v787_v39 }
  0x6c   : > { %v851_v22 = vsel %vm479_vm2, %v849_v19, %v850_v50  ;;  %v864_v30 = vadd.f32 %v842_v37, %v788_v44  ;;  %v865_v46 = vadd.f32 %v845_v11, %v789_v1  ;;  %v866_v24 = vadd.f32 %v848_v12, %v790_v7 }
  0x6d   : > { %v867_v53 = vadd.f32 %v851_v22, %v791_v31  ;;  %v875_v40 = vmul.f32 %v1240_v10, %v860_v36  ;;  %v876_v27 = vmul.f32 %v1240_v10, %v861_v41  ;;  %v877_v32 = vmul.f32 %v1240_v10, %v862_v16 }
  0x6e   : > { %v878_v18 = vmul.f32 %v1240_v10, %v863_v3  ;;  %v879_v34 = vmul.f32 %v1240_v10, %v864_v30  ;;  %v880_v26 = vmul.f32 %v1240_v10, %v865_v46  ;;  %v881_v45 = vmul.f32 %v1240_v10, %v866_v24 }
  0x6f   : > { %v882_v4 = vmul.f32 %v1240_v10, %v867_v53  ;;  %v890_v33 = vadd.f32 %v1241_v52, %v875_v40  ;;  %v891_v61 = vadd.f32 %v1241_v52, %v876_v27  ;;  %v892_v15 = vadd.f32 %v1241_v52, %v877_v32 }
  0x70   : > { %v893_v58 = vadd.f32 %v1241_v52, %v878_v18  ;;  %v894_v48 = vadd.f32 %v1241_v52, %v879_v34  ;;  %v895_v0 = vadd.f32 %v1241_v52, %v880_v26  ;;  %v896_v39 = vadd.f32 %v1241_v52, %v881_v45 }
  0x71   : > { %v1242_v44 = vmul.f32 -1.442695, %v890_v33  ;;  %v1243_v8 = vmul.f32 -1.442695, %v891_v61  ;;  %v1244_v1 = vmul.f32 -1.442695, %v892_v15  ;;  %v897_v7 = vadd.f32 %v1241_v52, %v882_v4 }
  0x72   : > { %v1245_v28 = vmul.f32 -1.442695, %v893_v58  ;;  %v1246_v31 = vmul.f32 -1.442695, %v894_v48  ;;  %v1247_v29 = vmul.f32 -1.442695, %v895_v0 }
  0x73   : > { %1350 = vpow2.f32 %v1242_v44  ;;  %v1248_v47 = vmul.f32 -1.442695, %v896_v39  ;;  %v1249_v5 = vmul.f32 -1.442695, %v897_v7  ;;  %v1063_v4 = vld [vmem:[%s1936_s6] sm:$0xf] }
  0x74   : > { %1352 = vpow2.f32 %v1243_v8  ;;  %1335 = vmatpush3.msk.msra.mxu1 %vm1069_vm3, %v1063_v4 }
  0x75   : > { %1354 = vpow2.f32 %v1244_v1  ;;  %v1064_v1 = vld [vmem:[%s1937_s7] sm:$0x1] }
  0x76   : > { %1356 = vpow2.f32 %v1245_v28 }
  0x77   : > { %1358 = vpow2.f32 %v1246_v31 }
  0x78   : > { %1360 = vpow2.f32 %v1247_v29 }
  0x79   : > { %1362 = vpow2.f32 %v1248_v47 }
  0x7a   : > { %1364 = vpow2.f32 %v1249_v5 }
  0x80   : > { %v1351_v13 = vpop.eup %1350 }
  0x81   : > { %v1353_v38 = vpop.eup %1352  ;;  %v922_v51 = vadd.f32 1.0, %v1351_v13 }
  0x82   : > { %v1355_v54 = vpop.eup %1354  ;;  %v923_v42 = vadd.f32 1.0, %v1353_v38 }
  0x83   : > { %v1357_v55 = vpop.eup %1356  ;;  %v924_v43 = vadd.f32 1.0, %v1355_v54  ;;  %1366 = vrcp.f32 %v922_v51 }
  0x84   : > { %v1359_v60 = vpop.eup %1358  ;;  %v925_v56 = vadd.f32 1.0, %v1357_v55  ;;  %1368 = vrcp.f32 %v923_v42 }
  0x85   : > { %v1361_v59 = vpop.eup %1360  ;;  %v926_v57 = vadd.f32 1.0, %v1359_v60  ;;  %1370 = vrcp.f32 %v924_v43 }
  0x86   : > { %v1363_v62 = vpop.eup %1362  ;;  %v927_v21 = vadd.f32 1.0, %v1361_v59  ;;  %1372 = vrcp.f32 %v925_v56 }
  0x87   : > { %v1365_v63 = vpop.eup %1364  ;;  %v928_v20 = vadd.f32 1.0, %v1363_v62  ;;  %1374 = vrcp.f32 %v926_v57 }
  0x88   : > { %v929_v49 = vadd.f32 1.0, %v1365_v63  ;;  %1376 = vrcp.f32 %v927_v21 }
  0x89   : > { %1378 = vrcp.f32 %v928_v20 }
  0x8a   : > { %1380 = vrcp.f32 %v929_v49 }
  0x90   : > { %v1367_v9 = vpop.eup %1366 }
  0x91   : > { %v1369_v14 = vpop.eup %1368  ;;  %v946_v17 = vmul.f32 %v1367_v9, %v890_v33  ;;  %v985_v33 = vld [vmem:[%s1935_s5] sm:$0x1] }
  0x92   : > { %v1371_v23 = vpop.eup %1370  ;;  %v947_v25 = vmul.f32 %v1369_v14, %v891_v61 }
  0x93   : > { %v1373_v37 = vpop.eup %1372  ;;  %v948_v2 = vmul.f32 %v1371_v23, %v892_v15 }
  0x94   : > { %v1375_v35 = vpop.eup %1374  ;;  %v949_v11 = vmul.f32 %v1373_v37, %v893_v58  ;;  %v954_v19 = vadd.f32 %v947_v25, %v946_v17 }
  0x95   : > { %v1377_v50 = vpop.eup %1376  ;;  %v950_v36 = vmul.f32 %v1375_v35, %v894_v48 }
  0x96   : > { %v955_v10 = vadd.f32 %v954_v19, %v948_v2  ;;  %v1379_v12 = vpop.eup %1378  ;;  %v951_v41 = vmul.f32 %v1377_v50, %v895_v0 }
  0x97   : > { %v1381_v3 = vpop.eup %1380  ;;  %v952_v22 = vmul.f32 %v1379_v12, %v896_v39 }
  0x98   : > { %v956_v16 = vadd.f32 %v955_v10, %v949_v11  ;;  %v953_v46 = vmul.f32 %v1381_v3, %v897_v7 }
  0x9a   : > { %v957_v30 = vadd.f32 %v956_v16, %v950_v36 }
  0x9c   : > { %v958_v24 = vadd.f32 %v957_v30, %v951_v41 }
  0x9e   : > { %v959_v52 = vadd.f32 %v958_v24, %v952_v22 }
  0xa0   : > { %v960_v53 = vadd.f32 %v959_v52, %v953_v46 }
  0xa2   : > { %v961_v40 = vrot.slane %v960_v53, 4 }
  0xa4   : > { %v962_v27 = vadd.f32 %v961_v40, %v960_v53 }
  0xa6   : > { %v963_v32 = vrot.slane %v962_v27, 2 }
  0xa8   : > { %v964_v18 = vadd.f32 %v963_v32, %v962_v27 }
  0xaa   : > { %v965_v34 = vrot.slane %v964_v18, 1 }
  0xac   : > { %v966_v26 = vadd.f32 %v965_v34, %v964_v18 }
  0xae   : > { %v968_v45 = vmul.f32 0.015625, %v966_v26 }
  0xb0   : > { %1332 = vmatmul.mubr.f32.vlgmr.msra.gmra.mxu0 %v968_v45 }
 0x170   : > { %v1052_v61 = vpop.f32.mrf.mxu0 }
 0x171   : > { %v1053_v15 = vadd.f32 %v1052_v61, %v985_v33 }
 0x172   : > { %v1333_v58 = vpop.f32.mrf.mxu0 }
 0x173   : > { %v1250_v48 = vmul.f32 -1.442695, %v1053_v15 }
 0x175   : > { %1382 = vpow2.f32 %v1250_v48 }
 0x182   : > { %v1383_v0 = vpop.eup %1382 }
 0x183   : > { %v1059_v39 = vadd.f32 1.0, %v1383_v0 }
 0x185   : > { %1384 = vrcp.f32 %v1059_v39 }
 0x192   : > { %v1385_v44 = vpop.eup %1384 }
 0x193   : > { %v1062_v8 = vmul.f32 %v1385_v44, %v1053_v15 }
 0x195   : > { %1337 = vmatmul.mubr.msk.f32.vlgmr.msra.gmra.mxu1 %vm1065_vm4, %v1062_v8 }
 0x255   : > { %v1139_v7 = vpop.f32.mrf.mxu1 }
 0x256   : > { %v1140_v28 = vadd.f32 %v1139_v7, %v1064_v1 }
 0x257   : > { %v1338_v31 = vpop.f32.mrf.mxu1 }
 0x258   : > { %v1253_v29 = vmul.f32 -1.442695, %v1140_v28 }
 0x25a   : > { %1386 = vpow2.f32 %v1253_v29 }
 0x267   : > { %v1387_v47 = vpop.eup %1386 }
 0x268   : > { %v1146_v5 = vadd.f32 1.0, %v1387_v47 }
 0x26a   : > { %1388 = vrcp.f32 %v1146_v5 }
 0x277   : > { %v1389_v13 = vpop.eup %1388 }
 0x278   : > { %v1152_v38 = vrot.slane %v1389_v13, %v1473_v6 }
 0x27a   : > { %v1153_v51 = vmul.f32 %v1152_v38, %v946_v17  ;;  %v1154_v54 = vmul.f32 %v1152_v38, %v947_v25  ;;  %v1155_v42 = vmul.f32 %v1152_v38, %v948_v2  ;;  %v1156_v55 = vmul.f32 %v1152_v38, %v949_v11 }
 0x27b   : > { %v1157_v43 = vmul.f32 %v1152_v38, %v950_v36  ;;  %v1158_v60 = vmul.f32 %v1152_v38, %v951_v41  ;;  %v1159_v56 = vmul.f32 %v1152_v38, %v952_v22  ;;  %v1160_v59 = vmul.f32 %v1152_v38, %v953_v46 }
 0x27c   : > { %v1260_v57 = vpack.c.bf16 %v1154_v54, %v1153_v51  ;;  %v1265_v62 = vpack.c.bf16 %v1156_v55, %v1155_v42 }
 0x27d   : > { %v1270_v21 = vpack.c.bf16 %v1158_v60, %v1157_v43  ;;  %v1275_v63 = vpack.c.bf16 %v1160_v59, %v1159_v56 }
 0x27e   : > { %1261 = vst [vmem:[%s305_s20] sm:$0xff] %v1260_v57   ;;  %1277 = vst [vmem:[%s305_s20 + $0x8] sm:$0xff] %v1265_v62  }
 0x27f   : > { %1278 = vst [vmem:[%s305_s20 + $0x10] sm:$0xff] %v1270_v21   ;;  %1279 = vst [vmem:[%s305_s20 + $0x18] sm:$0xff] %v1275_v63  }
 0x280 PF: > { %s18_s27 = sadd.s32 1, %s1396_s27  }
 0x281   : > { %p15_p4 = scmp.ge.s32.totalorder %s18_s27, 4  }
 0x283   :  { %17 = sbr.rel (!%p15_p4) target bundleno = 1 (0x1), region = 82 }

// kernel: _lambda_.12
= control target key start
LH: loop header
LB: loop body
LE: loop exit
PB: predicated region body
PF: predicated region fallthrough
CT: control target
= control target key end

     0   :  { %s911_s1 = inlined_call_operand.vmem [shape: bf16[128,128], index: 1, kind: input, shape index: {}]   ;;  %s912_s0 = inlined_call_operand.vmem [shape: bf16[128,128], index: 0, kind: input, shape index: {}]   ;;  %s913_s2 = inlined_call_operand.vmem [shape: f32[1,128], index: 2, kind: input, shape index: {}]   ;;  %s914_s4 = inlined_call_operand.vmem [shape: bf16[128,128], index: 4, kind: input, shape index: {}]   ;;  %s915_s3 = inlined_call_operand.vmem [shape: f32[1,128], index: 3, kind: input, shape index: {}]   ;;  %s916_s5 = inlined_call_operand.vmem [shape: bf16[128,128], index: 5, kind: output, shape index: {}]  }
   0x1   :  { %v711_v0 = vld [vmem:[%s911_s1 + $0x38] sm:$0xff]   ;;  %v712_v1 = vld [vmem:[%s911_s1 + $0x30] sm:$0xff]   ;;  %v713_v2 = vld [vmem:[%s911_s1 + $0x28] sm:$0xff]  }
   0x2   :  { %663 = vmatprep.subr.bf16.mxu0 %v711_v0  ;;  %695 = vmatprep.subr.bf16.mxu1 %v711_v0  ;;  %v714_v3 = vld [vmem:[%s911_s1 + $0x20] sm:$0xff]   ;;  %v715_v6 = vld [vmem:[%s911_s1 + $0x18] sm:$0xff]   ;;  %v716_v7 = vld [vmem:[%s911_s1 + $0x10] sm:$0xff]  }
   0x3   :  { %664 = vmatpush3.bf16.msra.mxu0 %v711_v0  ;;  %703 = vmatpush3.bf16.msra.mxu1 %v711_v0  ;;  %v719_v4 = vld [vmem:[%s912_s0] sm:$0xff]   ;;  %v717_v8 = vld [vmem:[%s911_s1 + $0x8] sm:$0xff]   ;;  %v723_v12 = vld [vmem:[%s912_s0 + $0x10] sm:$0xff]  }
   0x4   :  { %665 = vmatprep.subr.bf16.mxu0 %v712_v1  ;;  %696 = vmatprep.subr.bf16.mxu1 %v712_v1  ;;  %v720_v5 = vld [vmem:[%s912_s0 + $0x20] sm:$0xff]   ;;  %v721_v10 = vld [vmem:[%s912_s0 + $0x8] sm:$0xff]   ;;  %v724_v13 = vld [vmem:[%s912_s0 + $0x30] sm:$0xff]  }
   0x5   :  { %679 = vmatprep.mubr.bf16.mxu0 %v719_v4  ;;  %687 = vmatprep.mubr.bf16.mxu1 %v720_v5  ;;  %v718_v9 = vld [vmem:[%s911_s1] sm:$0xff]   ;;  %v722_v11 = vld [vmem:[%s912_s0 + $0x28] sm:$0xff]   ;;  %v725_v14 = vld [vmem:[%s912_s0 + $0x18] sm:$0xff]  }
   0x6   :  { %v726_v15 = vld [vmem:[%s912_s0 + $0x38] sm:$0xff]   ;;  %v808_v16 = vld [vmem:[%s913_s2] ss:$0 sm:$0xff]  ;;  %v633_v17 = vld [vmem:[%s914_s4 + $0x8] sm:$0xff]  }
   0x7   :  { %666 = vmatpush3.bf16.msra.mxu0 %v712_v1  ;;  %704 = vmatpush3.bf16.msra.mxu1 %v712_v1  ;;  %v637_v18 = vld [vmem:[%s914_s4 + $0x28] sm:$0xff]   ;;  %v562_v21 = vld [vmem:[%s914_s4] sm:$0xff]   ;;  %v567_v26 = vunpack.c.l.bf16 %v633_v17  ;;  %v832_v30 = vld [vmem:[%s914_s4 + $0x18] sm:$0xff]   ;;  %v568_v39 = vunpack.c.h.bf16 %v633_v17 }
   0x8   :  { %667 = vmatprep.subr.bf16.mxu0 %v713_v2  ;;  %697 = vmatprep.subr.bf16.mxu1 %v713_v2  ;;  %v636_v22 = vld [vmem:[%s914_s4 + $0x20] sm:$0xff]   ;;  %v583_v27 = vunpack.c.l.bf16 %v637_v18  ;;  %v837_v31 = vld [vmem:[%s914_s4 + $0x38] sm:$0xff]   ;;  %v563_v33 = vunpack.c.l.bf16 %v562_v21  ;;  %v844_v36 = vld [vmem:[%s914_s4 + $0x10] sm:$0xff]   ;;  %v584_v41 = vunpack.c.h.bf16 %v637_v18  ;;  %v564_v42 = vunpack.c.h.bf16 %v562_v21 }
   0x9   :  { %v827_v25 = vld [vmem:[%s915_s3] ss:$0 sm:$0xff]  ;;  %v579_v35 = vunpack.c.l.bf16 %v636_v22  ;;  %v849_v37 = vld [vmem:[%s914_s4 + $0x30] sm:$0xff]   ;;  %v580_v43 = vunpack.c.h.bf16 %v636_v22  ;;  %v575_v46 = vunpack.c.l.bf16 %v832_v30  ;;  %v591_v47 = vunpack.c.l.bf16 %v837_v31 }
   0xa   :  { %v571_v52 = vunpack.c.l.bf16 %v844_v36  ;;  %v587_v53 = vunpack.c.l.bf16 %v849_v37  ;;  %v576_v62 = vunpack.c.h.bf16 %v832_v30  ;;  %v592_v63 = vunpack.c.h.bf16 %v837_v31 }
   0xb   :  { %668 = vmatpush3.bf16.msra.mxu0 %v713_v2  ;;  %705 = vmatpush3.bf16.msra.mxu1 %v713_v2 }
   0xc   :  { %669 = vmatprep.subr.bf16.mxu0 %v714_v3  ;;  %698 = vmatprep.subr.bf16.mxu1 %v714_v3 }
   0xf   :  { %670 = vmatpush3.bf16.msra.mxu0 %v714_v3  ;;  %706 = vmatpush3.bf16.msra.mxu1 %v714_v3 }
  0x10   :  { %671 = vmatprep.subr.bf16.mxu0 %v715_v6  ;;  %699 = vmatprep.subr.bf16.mxu1 %v715_v6 }
  0x13   :  { %672 = vmatpush3.bf16.msra.mxu0 %v715_v6  ;;  %707 = vmatpush3.bf16.msra.mxu1 %v715_v6 }
  0x14   :  { %673 = vmatprep.subr.bf16.mxu0 %v716_v7  ;;  %700 = vmatprep.subr.bf16.mxu1 %v716_v7 }
  0x17   :  { %674 = vmatpush3.bf16.msra.mxu0 %v716_v7  ;;  %708 = vmatpush3.bf16.msra.mxu1 %v716_v7 }
  0x18   :  { %675 = vmatprep.subr.bf16.mxu0 %v717_v8  ;;  %701 = vmatprep.subr.bf16.mxu1 %v717_v8 }
  0x1b   :  { %676 = vmatpush3.bf16.msra.mxu0 %v717_v8  ;;  %709 = vmatpush3.bf16.msra.mxu1 %v717_v8 }
  0x1c   :  { %677 = vmatprep.subr.bf16.mxu0 %v718_v9  ;;  %702 = vmatprep.subr.bf16.mxu1 %v718_v9 }
  0x1f   :  { %678 = vmatpush3.bf16.msra.mxu0 %v718_v9  ;;  %710 = vmatpush3.bf16.msra.mxu1 %v718_v9 }
  0x22   :  { %680 = vmatmul.mubr.bf16.vlgmr.msra.gmra.mxu0 %v721_v10  ;;  %688 = vmatmul.mubr.bf16.vlgmr.msra.gmra.mxu1 %v722_v11 }
  0x23   :  { %683 = vmatprep.mubr.bf16.mxu0 %v723_v12  ;;  %691 = vmatprep.mubr.bf16.mxu1 %v724_v13 }
  0x2a   :  { %684 = vmatmul.mubr.bf16.gmra.mxu0 %v725_v14  ;;  %692 = vmatmul.mubr.bf16.gmra.mxu1 %v726_v15 }
  0xe2   :  { %v681_v19 = vpop.f32.mrf.mxu0  ;;  %v689_v20 = vpop.f32.mrf.mxu1 }
  0xe3   :  { %v342_v23 = vmul.f32 %v681_v19, %v808_v16  ;;  %v350_v24 = vmul.f32 %v689_v20, %v808_v16 }
  0xe4   :  { %v219_v28 = vpop.f32.mrf.mxu0  ;;  %v251_v29 = vpop.f32.mrf.mxu1 }
  0xe5   :  { %v340_v32 = vmul.f32 %v808_v16, %v219_v28  ;;  %v348_v34 = vmul.f32 %v808_v16, %v251_v29  ;;  %v365_v44 = vadd.f32 %v827_v25, %v342_v23  ;;  %v373_v45 = vadd.f32 %v827_v25, %v350_v24 }
  0xe6   :  { %v682_v38 = vpop.f32.mrf.mxu0  ;;  %v690_v40 = vpop.f32.mrf.mxu1  ;;  %v572_v23 = vunpack.c.h.bf16 %v844_v36  ;;  %v588_v24 = vunpack.c.h.bf16 %v849_v37 }
  0xe7   :  { %v343_v48 = vmul.f32 %v682_v38, %v808_v16  ;;  %v351_v49 = vmul.f32 %v690_v40, %v808_v16  ;;  %v363_v54 = vadd.f32 %v827_v25, %v340_v32  ;;  %v371_v55 = vadd.f32 %v827_v25, %v348_v34 }
  0xe8   :  { %v222_v50 = vpop.f32.mrf.mxu0  ;;  %v254_v51 = vpop.f32.mrf.mxu1  ;;  %v413_v0 = vadd.f32 %v567_v26, %v365_v44  ;;  %v421_v1 = vadd.f32 %v583_v27, %v373_v45 }
  0xe9   :  { %v341_v56 = vmul.f32 %v808_v16, %v222_v50  ;;  %v349_v57 = vmul.f32 %v808_v16, %v254_v51  ;;  %v366_v58 = vadd.f32 %v827_v25, %v343_v48  ;;  %v374_v59 = vadd.f32 %v827_v25, %v351_v49 }
  0xea   :  { %v685_v60 = vpop.f32.mrf.mxu0  ;;  %v693_v61 = vpop.f32.mrf.mxu1  ;;  %v411_v10 = vadd.f32 %v563_v33, %v363_v54  ;;  %v419_v11 = vadd.f32 %v579_v35, %v371_v55 }
  0xeb   :  { %v364_v2 = vadd.f32 %v827_v25, %v341_v56  ;;  %v372_v3 = vadd.f32 %v827_v25, %v349_v57  ;;  %v414_v4 = vadd.f32 %v568_v39, %v366_v58  ;;  %v422_v5 = vadd.f32 %v584_v41, %v374_v59 }
  0xec   :  { %v346_v6 = vmul.f32 %v685_v60, %v808_v16  ;;  %v354_v7 = vmul.f32 %v693_v61, %v808_v16  ;;  %v235_v8 = vpop.f32.mrf.mxu0  ;;  %v267_v9 = vpop.f32.mrf.mxu1 }
  0xed   :  { %v412_v12 = vadd.f32 %v564_v42, %v364_v2  ;;  %v420_v13 = vadd.f32 %v580_v43, %v372_v3  ;;  %v601_v14 = vpack.c.bf16 %v414_v4, %v413_v0  ;;  %v621_v15 = vpack.c.bf16 %v422_v5, %v421_v1 }
  0xee   :  { %v344_v17 = vmul.f32 %v808_v16, %v235_v8  ;;  %v352_v18 = vmul.f32 %v808_v16, %v267_v9  ;;  %v686_v19 = vpop.f32.mrf.mxu0  ;;  %v694_v20 = vpop.f32.mrf.mxu1  ;;  %v369_v26 = vadd.f32 %v827_v25, %v346_v6  ;;  %v377_v27 = vadd.f32 %v827_v25, %v354_v7 }
  0xef   :  { %v596_v21 = vpack.c.bf16 %v412_v12, %v411_v10  ;;  %v616_v22 = vpack.c.bf16 %v420_v13, %v419_v11  ;;  %640 = vst [vmem:[%s916_s5 + $0x8] sm:$0xff] %v601_v14   ;;  %644 = vst [vmem:[%s916_s5 + $0x28] sm:$0xff] %v621_v15   ;;  %v347_v28 = vmul.f32 %v686_v19, %v808_v16 }
  0xf0   :  { %v355_v29 = vmul.f32 %v694_v20, %v808_v16  ;;  %v238_v30 = vpop.f32.mrf.mxu0  ;;  %v270_v31 = vpop.f32.mrf.mxu1  ;;  %v367_v32 = vadd.f32 %v827_v25, %v344_v17  ;;  %v375_v33 = vadd.f32 %v827_v25, %v352_v18  ;;  %v417_v40 = vadd.f32 %v575_v46, %v369_v26 }
  0xf1   :  { %597 = vst [vmem:[%s916_s5] sm:$0xff] %v596_v21   ;;  %643 = vst [vmem:[%s916_s5 + $0x20] sm:$0xff] %v616_v22   ;;  %v345_v34 = vmul.f32 %v808_v16, %v238_v30  ;;  %v353_v35 = vmul.f32 %v808_v16, %v270_v31  ;;  %v370_v36 = vadd.f32 %v827_v25, %v347_v28 }
  0xf2   :  { %v378_v37 = vadd.f32 %v827_v25, %v355_v29  ;;  %v425_v41 = vadd.f32 %v591_v47, %v377_v27  ;;  %v415_v44 = vadd.f32 %v571_v52, %v367_v32  ;;  %v423_v45 = vadd.f32 %v587_v53, %v375_v33 }
  0xf3   :  { %v368_v38 = vadd.f32 %v827_v25, %v345_v34  ;;  %v376_v39 = vadd.f32 %v827_v25, %v353_v35  ;;  %v418_v42 = vadd.f32 %v576_v62, %v370_v36 }
  0xf4   :  { %v426_v43 = vadd.f32 %v592_v63, %v378_v37 }
  0xf5   :  { %v416_v48 = vadd.f32 %v572_v23, %v368_v38  ;;  %v424_v49 = vadd.f32 %v588_v24, %v376_v39  ;;  %v611_v50 = vpack.c.bf16 %v418_v42, %v417_v40 }
  0xf6   :  { %v631_v51 = vpack.c.bf16 %v426_v43, %v425_v41 }
  0xf7   :  { %v606_v54 = vpack.c.bf16 %v416_v48, %v415_v44  ;;  %v626_v16 = vpack.c.bf16 %v424_v49, %v423_v45  ;;  %642 = vst [vmem:[%s916_s5 + $0x18] sm:$0xff] %v611_v50  }
  0xf8   :  { %646 = vst [vmem:[%s916_s5 + $0x38] sm:$0xff] %v631_v51  }
  0xf9   :  { %641 = vst [vmem:[%s916_s5 + $0x10] sm:$0xff] %v606_v54   ;;  %645 = vst [vmem:[%s916_s5 + $0x30] sm:$0xff] %v626_v16  }

// kernel: _lambda_.10
= control target key start
LH: loop header
LB: loop body
LE: loop exit
PB: predicated region body
PF: predicated region fallthrough
CT: control target
= control target key end

     0   :  { %s1032_s1 = inlined_call_operand.vmem [shape: bf16[128,128], index: 1, kind: input, shape index: {}]   ;;  %s1033_s0 = inlined_call_operand.vmem [shape: bf16[128,128], index: 0, kind: input, shape index: {}]   ;;  %s1034_s2 = inlined_call_operand.vmem [shape: f32[1,128], index: 2, kind: input, shape index: {}]   ;;  %s1035_s3 = inlined_call_operand.vmem [shape: f32[1,128], index: 3, kind: input, shape index: {}]   ;;  %s1036_s4 = inlined_call_operand.vmem [shape: bf16[128,128], index: 4, kind: output, shape index: {}]  }
   0x1   :  { %v749_v0 = vld [vmem:[%s1032_s1 + $0x38] sm:$0xff]   ;;  %v750_v1 = vld [vmem:[%s1032_s1 + $0x30] sm:$0xff]   ;;  %v751_v2 = vld [vmem:[%s1032_s1 + $0x28] sm:$0xff]  }
   0x2   :  { %701 = vmatprep.subr.bf16.mxu0 %v749_v0  ;;  %733 = vmatprep.subr.bf16.mxu1 %v749_v0  ;;  %v752_v3 = vld [vmem:[%s1032_s1 + $0x20] sm:$0xff]   ;;  %v753_v6 = vld [vmem:[%s1032_s1 + $0x18] sm:$0xff]   ;;  %v754_v7 = vld [vmem:[%s1032_s1 + $0x10] sm:$0xff]  }
   0x3   :  { %702 = vmatpush3.bf16.msra.mxu0 %v749_v0  ;;  %741 = vmatpush3.bf16.msra.mxu1 %v749_v0  ;;  %v757_v4 = vld [vmem:[%s1033_s0] sm:$0xff]   ;;  %v755_v8 = vld [vmem:[%s1032_s1 + $0x8] sm:$0xff]   ;;  %v761_v12 = vld [vmem:[%s1033_s0 + $0x10] sm:$0xff]  }
   0x4   :  { %703 = vmatprep.subr.bf16.mxu0 %v750_v1  ;;  %734 = vmatprep.subr.bf16.mxu1 %v750_v1  ;;  %v758_v5 = vld [vmem:[%s1033_s0 + $0x20] sm:$0xff]   ;;  %v759_v10 = vld [vmem:[%s1033_s0 + $0x8] sm:$0xff]   ;;  %v762_v13 = vld [vmem:[%s1033_s0 + $0x30] sm:$0xff]  }
   0x5   :  { %717 = vmatprep.mubr.bf16.mxu0 %v757_v4  ;;  %725 = vmatprep.mubr.bf16.mxu1 %v758_v5  ;;  %v756_v9 = vld [vmem:[%s1032_s1] sm:$0xff]   ;;  %v760_v11 = vld [vmem:[%s1033_s0 + $0x28] sm:$0xff]   ;;  %v763_v14 = vld [vmem:[%s1033_s0 + $0x18] sm:$0xff]  }
   0x6   :  { %v764_v15 = vld [vmem:[%s1033_s0 + $0x38] sm:$0xff]   ;;  %v905_v16 = vld [vmem:[%s1034_s2] ss:$0 sm:$0xff] }
   0x7   :  { %704 = vmatpush3.bf16.msra.mxu0 %v750_v1  ;;  %742 = vmatpush3.bf16.msra.mxu1 %v750_v1  ;;  %v910_v18 = vld [vmem:[%s1035_s3] ss:$0 sm:$0xff] }
   0x8   :  { %705 = vmatprep.subr.bf16.mxu0 %v751_v2  ;;  %735 = vmatprep.subr.bf16.mxu1 %v751_v2 }
   0xb   :  { %706 = vmatpush3.bf16.msra.mxu0 %v751_v2  ;;  %743 = vmatpush3.bf16.msra.mxu1 %v751_v2 }
   0xc   :  { %707 = vmatprep.subr.bf16.mxu0 %v752_v3  ;;  %736 = vmatprep.subr.bf16.mxu1 %v752_v3 }
   0xf   :  { %708 = vmatpush3.bf16.msra.mxu0 %v752_v3  ;;  %744 = vmatpush3.bf16.msra.mxu1 %v752_v3 }
  0x10   :  { %709 = vmatprep.subr.bf16.mxu0 %v753_v6  ;;  %737 = vmatprep.subr.bf16.mxu1 %v753_v6 }
  0x13   :  { %710 = vmatpush3.bf16.msra.mxu0 %v753_v6  ;;  %745 = vmatpush3.bf16.msra.mxu1 %v753_v6 }
  0x14   :  { %711 = vmatprep.subr.bf16.mxu0 %v754_v7  ;;  %738 = vmatprep.subr.bf16.mxu1 %v754_v7 }
  0x17   :  { %712 = vmatpush3.bf16.msra.mxu0 %v754_v7  ;;  %746 = vmatpush3.bf16.msra.mxu1 %v754_v7 }
  0x18   :  { %713 = vmatprep.subr.bf16.mxu0 %v755_v8  ;;  %739 = vmatprep.subr.bf16.mxu1 %v755_v8 }
  0x1b   :  { %714 = vmatpush3.bf16.msra.mxu0 %v755_v8  ;;  %747 = vmatpush3.bf16.msra.mxu1 %v755_v8 }
  0x1c   :  { %715 = vmatprep.subr.bf16.mxu0 %v756_v9  ;;  %740 = vmatprep.subr.bf16.mxu1 %v756_v9 }
  0x1f   :  { %716 = vmatpush3.bf16.msra.mxu0 %v756_v9  ;;  %748 = vmatpush3.bf16.msra.mxu1 %v756_v9 }
  0x22   :  { %718 = vmatmul.mubr.bf16.vlgmr.msra.gmra.mxu0 %v759_v10  ;;  %726 = vmatmul.mubr.bf16.vlgmr.msra.gmra.mxu1 %v760_v11 }
  0x23   :  { %721 = vmatprep.mubr.bf16.mxu0 %v761_v12  ;;  %729 = vmatprep.mubr.bf16.mxu1 %v762_v13 }
  0x2a   :  { %722 = vmatmul.mubr.bf16.gmra.mxu0 %v763_v14  ;;  %730 = vmatmul.mubr.bf16.gmra.mxu1 %v764_v15 }
  0xe2   :  { %v719_v17 = vpop.f32.mrf.mxu0  ;;  %v727_v19 = vpop.f32.mrf.mxu1 }
  0xe3   :  { %v339_v20 = vmul.f32 %v719_v17, %v905_v16  ;;  %v347_v21 = vmul.f32 %v727_v19, %v905_v16 }
  0xe4   :  { %v216_v22 = vpop.f32.mrf.mxu0  ;;  %v248_v23 = vpop.f32.mrf.mxu1 }
  0xe5   :  { %v915_v24 = vadd.f32 %v910_v18, %v339_v20  ;;  %v918_v25 = vadd.f32 %v910_v18, %v347_v21  ;;  %v337_v26 = vmul.f32 %v905_v16, %v216_v22  ;;  %v345_v27 = vmul.f32 %v905_v16, %v248_v23 }
  0xe6   :  { %v720_v28 = vpop.f32.mrf.mxu0  ;;  %v728_v29 = vpop.f32.mrf.mxu1 }
  0xe7   :  { %v592_v30 = vmul.f32 -1.442695, %v915_v24  ;;  %v600_v31 = vmul.f32 -1.442695, %v918_v25  ;;  %v925_v32 = vadd.f32 %v910_v18, %v337_v26  ;;  %v928_v33 = vadd.f32 %v910_v18, %v345_v27 }
  0xe8   :  { %v340_v34 = vmul.f32 %v720_v28, %v905_v16  ;;  %v348_v35 = vmul.f32 %v728_v29, %v905_v16  ;;  %v219_v36 = vpop.f32.mrf.mxu0  ;;  %v251_v37 = vpop.f32.mrf.mxu1 }
  0xe9   :  { %765 = vpow2.f32 %v592_v30  ;;  %v590_v38 = vmul.f32 -1.442695, %v925_v32  ;;  %v598_v39 = vmul.f32 -1.442695, %v928_v33  ;;  %v338_v40 = vmul.f32 %v905_v16, %v219_v36 }
  0xea   :  { %767 = vpow2.f32 %v600_v31  ;;  %v936_v41 = vadd.f32 %v910_v18, %v340_v34  ;;  %v939_v42 = vadd.f32 %v910_v18, %v348_v35  ;;  %v346_v43 = vmul.f32 %v905_v16, %v251_v37  ;;  %v723_v44 = vpop.f32.mrf.mxu0  ;;  %v731_v45 = vpop.f32.mrf.mxu1 }
  0xeb   :  { %769 = vpow2.f32 %v590_v38  ;;  %v943_v46 = vadd.f32 %v910_v18, %v338_v40  ;;  %v343_v47 = vmul.f32 %v723_v44, %v905_v16  ;;  %v351_v48 = vmul.f32 %v731_v45, %v905_v16 }
  0xec   :  { %771 = vpow2.f32 %v598_v39  ;;  %v593_v49 = vmul.f32 -1.442695, %v936_v41  ;;  %v601_v50 = vmul.f32 -1.442695, %v939_v42  ;;  %v950_v51 = vadd.f32 %v910_v18, %v346_v43  ;;  %v232_v52 = vpop.f32.mrf.mxu0  ;;  %v264_v53 = vpop.f32.mrf.mxu1 }
  0xed   :  { %v591_v54 = vmul.f32 -1.442695, %v943_v46  ;;  %v954_v55 = vadd.f32 %v910_v18, %v343_v47  ;;  %v957_v56 = vadd.f32 %v910_v18, %v351_v48  ;;  %v341_v57 = vmul.f32 %v905_v16, %v232_v52 }
  0xee   :  { %773 = vpow2.f32 %v593_v49  ;;  %v599_v58 = vmul.f32 -1.442695, %v950_v51  ;;  %v349_v59 = vmul.f32 %v905_v16, %v264_v53  ;;  %v724_v60 = vpop.f32.mrf.mxu0  ;;  %v732_v61 = vpop.f32.mrf.mxu1 }
  0xef   :  { %775 = vpow2.f32 %v601_v50  ;;  %v596_v62 = vmul.f32 -1.442695, %v954_v55  ;;  %v604_v63 = vmul.f32 -1.442695, %v957_v56  ;;  %v965_v0 = vadd.f32 %v910_v18, %v341_v57 }
  0xf0   :  { %777 = vpow2.f32 %v591_v54  ;;  %v968_v1 = vadd.f32 %v910_v18, %v349_v59  ;;  %v344_v2 = vmul.f32 %v724_v60, %v905_v16  ;;  %v352_v3 = vmul.f32 %v732_v61, %v905_v16  ;;  %v235_v4 = vpop.f32.mrf.mxu0  ;;  %v267_v5 = vpop.f32.mrf.mxu1 }
  0xf1   :  { %779 = vpow2.f32 %v599_v58  ;;  %v594_v6 = vmul.f32 -1.442695, %v965_v0  ;;  %v342_v7 = vmul.f32 %v905_v16, %v235_v4  ;;  %v350_v8 = vmul.f32 %v905_v16, %v267_v5 }
  0xf2   :  { %781 = vpow2.f32 %v596_v62  ;;  %v602_v9 = vmul.f32 -1.442695, %v968_v1  ;;  %v977_v10 = vadd.f32 %v910_v18, %v344_v2  ;;  %v980_v11 = vadd.f32 %v910_v18, %v352_v3 }
  0xf3   :  { %783 = vpow2.f32 %v604_v63  ;;  %v983_v12 = vadd.f32 %v910_v18, %v342_v7  ;;  %v989_v16 = vadd.f32 %v910_v18, %v350_v8 }
  0xf4   :  { %785 = vpow2.f32 %v594_v6  ;;  %v597_v13 = vmul.f32 -1.442695, %v977_v10  ;;  %v605_v14 = vmul.f32 -1.442695, %v980_v11 }
  0xf5   :  { %787 = vpow2.f32 %v602_v9  ;;  %v595_v15 = vmul.f32 -1.442695, %v983_v12  ;;  %v603_v27 = vmul.f32 -1.442695, %v989_v16 }
  0xf6   :  { %v766_v17 = vpop.eup %765  ;;  %789 = vpow2.f32 %v597_v13 }
  0xf7   :  { %v768_v19 = vpop.eup %767  ;;  %v426_v20 = vadd.f32 1.0, %v766_v17  ;;  %791 = vpow2.f32 %v605_v14 }
  0xf8   :  { %v770_v21 = vpop.eup %769  ;;  %v434_v22 = vadd.f32 1.0, %v768_v19  ;;  %793 = vpow2.f32 %v595_v15 }
  0xf9   :  { %v772_v23 = vpop.eup %771  ;;  %795 = vrcp.f32 %v426_v20  ;;  %v424_v26 = vadd.f32 1.0, %v770_v21 }
  0xfa   :  { %797 = vrcp.f32 %v434_v22  ;;  %v432_v28 = vadd.f32 1.0, %v772_v23 }
  0xfb   :  { %v774_v29 = vpop.eup %773  ;;  %799 = vrcp.f32 %v424_v26 }
  0xfc   :  { %v776_v30 = vpop.eup %775  ;;  %801 = vrcp.f32 %v432_v28  ;;  %v427_v18 = vadd.f32 1.0, %v774_v29 }
  0xfd   :  { %v778_v31 = vpop.eup %777  ;;  %v435_v34 = vadd.f32 1.0, %v776_v30  ;;  %803 = vpow2.f32 %v603_v27 }
  0xfe   :  { %v780_v35 = vpop.eup %779  ;;  %805 = vrcp.f32 %v427_v18  ;;  %v425_v36 = vadd.f32 1.0, %v778_v31 }
  0xff   :  { %v782_v37 = vpop.eup %781  ;;  %807 = vrcp.f32 %v435_v34  ;;  %v433_v38 = vadd.f32 1.0, %v780_v35 }
 0x100   :  { %v784_v39 = vpop.eup %783  ;;  %809 = vrcp.f32 %v425_v36  ;;  %v430_v40 = vadd.f32 1.0, %v782_v37 }
 0x101   :  { %v786_v43 = vpop.eup %785  ;;  %811 = vrcp.f32 %v433_v38  ;;  %v438_v44 = vadd.f32 1.0, %v784_v39 }
 0x102   :  { %v788_v45 = vpop.eup %787  ;;  %v428_v47 = vadd.f32 1.0, %v786_v43  ;;  %813 = vrcp.f32 %v430_v40 }
 0x103   :  { %v790_v48 = vpop.eup %789  ;;  %815 = vrcp.f32 %v438_v44  ;;  %v436_v59 = vadd.f32 1.0, %v788_v45 }
 0x104   :  { %v792_v49 = vpop.eup %791  ;;  %v431_v50 = vadd.f32 1.0, %v790_v48  ;;  %817 = vrcp.f32 %v428_v47 }
 0x105   :  { %v794_v52 = vpop.eup %793  ;;  %v439_v53 = vadd.f32 1.0, %v792_v49 }
 0x106   :  { %v796_v54 = vpop.eup %795  ;;  %819 = vrcp.f32 %v431_v50  ;;  %v429_v57 = vadd.f32 1.0, %v794_v52 }
 0x107   :  { %v798_v58 = vpop.eup %797  ;;  %821 = vrcp.f32 %v439_v53  ;;  %v474_v4 = vmul.f32 %v796_v54, %v915_v24 }
 0x108   :  { %v800_v60 = vpop.eup %799  ;;  %823 = vrcp.f32 %v429_v57  ;;  %v482_v7 = vmul.f32 %v798_v58, %v918_v25 }
 0x109   :  { %v802_v61 = vpop.eup %801  ;;  %825 = vrcp.f32 %v436_v59  ;;  %v472_v13 = vmul.f32 %v800_v60, %v925_v32 }
 0x10a   :  { %v804_v62 = vpop.eup %803  ;;  %v480_v17 = vmul.f32 %v802_v61, %v928_v33 }
 0x10b   :  { %v806_v63 = vpop.eup %805  ;;  %v437_v2 = vadd.f32 1.0, %v804_v62 }
 0x10c   :  { %v808_v3 = vpop.eup %807  ;;  %v475_v5 = vmul.f32 %v806_v63, %v936_v41 }
 0x10d   :  { %v810_v6 = vpop.eup %809  ;;  %v483_v8 = vmul.f32 %v808_v3, %v939_v42  ;;  %827 = vrcp.f32 %v437_v2 }
 0x10e   :  { %v812_v9 = vpop.eup %811  ;;  %v646_v14 = vpack.c.bf16 %v475_v5, %v474_v4  ;;  %v473_v15 = vmul.f32 %v810_v6, %v943_v46 }
 0x10f   :  { %v666_v19 = vpack.c.bf16 %v483_v8, %v482_v7  ;;  %v481_v20 = vmul.f32 %v812_v9, %v950_v51  ;;  %v814_v24 = vpop.eup %813 }
 0x110   :  { %678 = vst [vmem:[%s1036_s4 + $0x8] sm:$0xff] %v646_v14   ;;  %v641_v25 = vpack.c.bf16 %v473_v15, %v472_v13  ;;  %v816_v41 = vpop.eup %815  ;;  %v478_v51 = vmul.f32 %v814_v24, %v954_v55 }
 0x111   :  { %682 = vst [vmem:[%s1036_s4 + $0x28] sm:$0xff] %v666_v19   ;;  %v661_v32 = vpack.c.bf16 %v481_v20, %v480_v17  ;;  %v818_v42 = vpop.eup %817  ;;  %v486_v23 = vmul.f32 %v816_v41, %v957_v56 }
 0x112   :  { %642 = vst [vmem:[%s1036_s4] sm:$0xff] %v641_v25   ;;  %v476_v27 = vmul.f32 %v818_v42, %v965_v0 }
 0x113   :  { %v820_v33 = vpop.eup %819  ;;  %681 = vst [vmem:[%s1036_s4 + $0x20] sm:$0xff] %v661_v32  }
 0x114   :  { %v822_v46 = vpop.eup %821  ;;  %v479_v21 = vmul.f32 %v820_v33, %v977_v10 }
 0x115   :  { %v824_v22 = vpop.eup %823  ;;  %v487_v26 = vmul.f32 %v822_v46, %v980_v11 }
 0x116   :  { %v656_v28 = vpack.c.bf16 %v479_v21, %v478_v51  ;;  %v477_v29 = vmul.f32 %v824_v22, %v983_v12  ;;  %v826_v18 = vpop.eup %825 }
 0x117   :  { %v676_v30 = vpack.c.bf16 %v487_v26, %v486_v23  ;;  %v484_v56 = vmul.f32 %v826_v18, %v968_v1 }
 0x118   :  { %680 = vst [vmem:[%s1036_s4 + $0x18] sm:$0xff] %v656_v28   ;;  %v651_v31 = vpack.c.bf16 %v477_v29, %v476_v27 }
 0x119   :  { %684 = vst [vmem:[%s1036_s4 + $0x38] sm:$0xff] %v676_v30  }
 0x11a   :  { %v828_v55 = vpop.eup %827  ;;  %679 = vst [vmem:[%s1036_s4 + $0x10] sm:$0xff] %v651_v31  }
 0x11b   :  { %v485_v0 = vmul.f32 %v828_v55, %v989_v16 }
 0x11d   :  { %v671_v10 = vpack.c.bf16 %v485_v0, %v484_v56 }
 0x11f   :  { %683 = vst [vmem:[%s1036_s4 + $0x30] sm:$0xff] %v671_v10  }

// kernel: _lambda_.15
= control target key start
LH: loop header
LB: loop body
LE: loop exit
PB: predicated region body
PF: predicated region fallthrough
CT: control target
= control target key end

     0   :  { %s358_s1 = inlined_call_operand.vmem [shape: bf16[128,128], index: 1, kind: input, shape index: {}]   ;;  %s359_s0 = inlined_call_operand.vmem [shape: bf16[32,128], index: 0, kind: input, shape index: {}]   ;;  %s360_s2 = inlined_call_operand.vmem [shape: f32[1,128], index: 2, kind: input, shape index: {}]   ;;  %s361_s3 = inlined_call_operand.vmem [shape: f32[1,128], index: 3, kind: input, shape index: {}]   ;;  %s362_s4 = inlined_call_operand.vmem [shape: bf16[32,128], index: 4, kind: output, shape index: {}]  }
   0x1   :  { %v281_v0 = vld [vmem:[%s358_s1 + $0x38] sm:$0xff]   ;;  %v282_v1 = vld [vmem:[%s358_s1 + $0x30] sm:$0xff]   ;;  %v283_v2 = vld [vmem:[%s358_s1 + $0x28] sm:$0xff]  }
   0x2   :  { %261 = vmatprep.subr.bf16.mxu0 %v281_v0  ;;  %v284_v3 = vld [vmem:[%s358_s1 + $0x20] sm:$0xff]   ;;  %v285_v5 = vld [vmem:[%s358_s1 + $0x18] sm:$0xff]   ;;  %v286_v6 = vld [vmem:[%s358_s1 + $0x10] sm:$0xff]  }
   0x3   :  { %262 = vmatpush3.bf16.msra.mxu0 %v281_v0  ;;  %v289_v4 = vld [vmem:[%s359_s0] sm:$0xff]   ;;  %v287_v7 = vld [vmem:[%s358_s1 + $0x8] sm:$0xff]  }
   0x4   :  { %263 = vmatprep.subr.bf16.mxu0 %v282_v1  ;;  %277 = vmatprep.mubr.bf16.mxu0 %v289_v4  ;;  %v288_v8 = vld [vmem:[%s358_s1] sm:$0xff]   ;;  %v290_v9 = vld [vmem:[%s359_s0 + $0x8] sm:$0xff]  }
   0x5   :  { %v230_v11 = vld [vmem:[%s360_s2] ss:$0 sm:$0xff] }
   0x6   :  { %v231_v14 = vld [vmem:[%s361_s3] ss:$0 sm:$0xff] }
   0x7   :  { %264 = vmatpush3.bf16.msra.mxu0 %v282_v1 }
   0x8   :  { %265 = vmatprep.subr.bf16.mxu0 %v283_v2 }
   0xb   :  { %266 = vmatpush3.bf16.msra.mxu0 %v283_v2 }
   0xc   :  { %267 = vmatprep.subr.bf16.mxu0 %v284_v3 }
   0xf   :  { %268 = vmatpush3.bf16.msra.mxu0 %v284_v3 }
  0x10   :  { %269 = vmatprep.subr.bf16.mxu0 %v285_v5 }
  0x13   :  { %270 = vmatpush3.bf16.msra.mxu0 %v285_v5 }
  0x14   :  { %271 = vmatprep.subr.bf16.mxu0 %v286_v6 }
  0x17   :  { %272 = vmatpush3.bf16.msra.mxu0 %v286_v6 }
  0x18   :  { %273 = vmatprep.subr.bf16.mxu0 %v287_v7 }
  0x1b   :  { %274 = vmatpush3.bf16.msra.mxu0 %v287_v7 }
  0x1c   :  { %275 = vmatprep.subr.bf16.mxu0 %v288_v8 }
  0x1f   :  { %276 = vmatpush3.bf16.msra.mxu0 %v288_v8 }
  0x22   :  { %278 = vmatmul.mubr.bf16.vlgmr.msra.gmra.mxu0 %v290_v9 }
  0xe2   :  { %v279_v10 = vpop.f32.mrf.mxu0 }
  0xe3   :  { %v183_v13 = vmul.f32 %v279_v10, %v230_v11 }
  0xe4   :  { %v144_v12 = vpop.f32.mrf.mxu0 }
  0xe5   :  { %v181_v16 = vmul.f32 %v230_v11, %v144_v12  ;;  %v194_v19 = vadd.f32 %v231_v14, %v183_v13 }
  0xe6   :  { %v280_v15 = vpop.f32.mrf.mxu0 }
  0xe7   :  { %v184_v17 = vmul.f32 %v280_v15, %v230_v11  ;;  %v192_v22 = vadd.f32 %v231_v14, %v181_v16 }
  0xe8   :  { %v147_v18 = vpop.f32.mrf.mxu0 }
  0xe9   :  { %v195_v20 = vadd.f32 %v231_v14, %v184_v17  ;;  %v182_v21 = vmul.f32 %v230_v11, %v147_v18 }
  0xeb   :  { %v248_v23 = vpack.c.bf16 %v195_v20, %v194_v19  ;;  %v193_v24 = vadd.f32 %v231_v14, %v182_v21 }
  0xed   :  { %250 = vst [vmem:[%s362_s4 + $0x8] sm:$0xff] %v248_v23   ;;  %v243_v25 = vpack.c.bf16 %v193_v24, %v192_v22 }
  0xef   :  { %244 = vst [vmem:[%s362_s4] sm:$0xff] %v243_v25  }

// kernel: _lambda_.14
= control target key start
LH: loop header
LB: loop body
LE: loop exit
PB: predicated region body
PF: predicated region fallthrough
CT: control target
= control target key end

     0   :  { %s998_s27 = smov 0   ;;  %s1231_s0 = inlined_call_operand.vmem [shape: bf16[8,5,5,128], index: 0, kind: input, shape index: {}]   ;;  %s1232_s1 = inlined_call_operand.vmem [shape: bf16[9,128], index: 1, kind: input, shape index: {}]   ;;  %s1233_s2 = inlined_call_operand.vmem [shape: f32[1,128], index: 2, kind: input, shape index: {}]   ;;  %s1234_s3 = inlined_call_operand.vmem [shape: f32[1,128], index: 3, kind: input, shape index: {}, may-alias: {3,7}]   ;;  %s1235_s4 = inlined_call_operand.vmem [shape: f32[128,4], index: 4, kind: input, shape index: {}]   ;;  %s1236_s5 = inlined_call_operand.vmem [shape: f32[1,4], index: 5, kind: input, shape index: {}]   ;;  %s1237_s6 = inlined_call_operand.vmem [shape: f32[4,128], index: 6, kind: input, shape index: {}]   ;;  %s1238_s7 = inlined_call_operand.vmem [shape: f32[1,128], index: 7, kind: input, shape index: {}, may-alias: {3,7}]   ;;  %s1239_s8 = inlined_call_operand.vmem [shape: bf16[2,4,4,128], index: 8, kind: output, shape index: {}]  }
   0x1 LB: > { %s1004_s28 = sadd.s32 4294967295, %s949_s27   ;;  %p818_p0 = scmp.ge.s32.totalorder %s949_s27, 1  ;;  %s949_s27 = sphi %s998_s27, %s18_s27  }
   0x2   : > { %p264_p1 = scmp.lt.s32.totalorder %s949_s27, 3 }
   0x4   : > { %p265_p2 = pnand %p818_p0, %p264_p1 }
   0x5   : > { %s819_s9 = sshll.u32 (!%p265_p2), %s1004_s28, 2  ;;  %p306_p4 = scmp.lt.s32.totalorder (!%p265_p2), %s1004_s28, 1 }
   0x6   : > { %268 = sbr.rel (%p265_p2) target bundleno = 569 (0x239), region = 52  ;;  %p300_p3 = scmp.lt.s32.totalorder (!%p265_p2), %s819_s9, 7 }
   0xb   : > { %v579_v0 = vld [vmem:[%s1235_s4 + $0x78] sm:$0xff]  ;;  %v340_v1 = vlaneseq  ;;  %v951_v2 = vmov 0.0   ;;  %v578_v3 = vld [vmem:[%s1235_s4 + $0x70] sm:$0xff]  ;;  %vm952_vm0 = vmmov 0   ;;  %v577_v5 = vld [vmem:[%s1235_s4 + $0x68] sm:$0xff]  ;;  %s1241_s9 = smov (!%p300_p3, %s819_s9), 7 }
   0xc   : > { %868 = vmatprep.subr.mxu0 %v951_v2  ;;  %900 = vmatprep.mubr.msk.f32.mxu0 %vm952_vm0, %v951_v2  ;;  %v576_v9 = vld [vmem:[%s1235_s4 + $0x60] sm:$0xff]  ;;  %s908_s16 = smul.u32 20, %s1241_s9  ;;  %v575_v15 = vld [vmem:[%s1235_s4 + $0x58] sm:$0xff]  ;;  %v574_v16 = vld [vmem:[%s1235_s4 + $0x50] sm:$0xff]  ;;  %vm548_vm1 = vcmask 1043456   ;;  %vm660_vm2 = vcmask 31744  }
   0xd   : > { %869 = vmatpush3.msra.mxu0 %v579_v0  ;;  %v1017_v4 = vshrl.u32 %v340_v1, 7  ;;  %903 = vmatprep.subr.mxu1 %v951_v2  ;;  %v311_v10 = vld [vmem:[%s1232_s1] sm:$0xf]  ;;  %v1040_v11 = vld [vmem:[%s1232_s1 + $0x4] sm:$0x1]  ;;  %v573_v42 = vld [vmem:[%s1235_s4 + $0x48] sm:$0xff] }
   0xe   : > { %870 = vmatprep.subr.mxu0 %v951_v2  ;;  %905 = vmatprep.mubr.msk.f32.mxu1 %vm952_vm0, %v951_v2  ;;  %v1042_v12 = vunpack.c.l.bf16 %v311_v10  ;;  %s1056_s29 = scalar_lea.vmem %s1231_s0, %s908_s16  ;;  %v314_v17 = vunpack.c.l.bf16 %v1040_v11  ;;  %v572_v51 = vld [vmem:[%s1235_s4 + $0x40] sm:$0xff]  ;;  %v571_v63 = vld [vmem:[%s1235_s4 + $0x38] sm:$0xff]  ;;  %s1243_s28 = smov (!%p306_p4, %s1004_s28), 1 }
   0xf   : > { %871 = vmatpush3.msra.mxu0 %v578_v3  ;;  %v1026_v6 = vsub.s32 0, %v1017_v4  ;;  %v358_v7 = vsub.s32 1, %v1017_v4  ;;  %v370_v8 = vsub.s32 2, %v1017_v4  ;;  %v398_v13 = vsub.s32 3, %v1017_v4  ;;  %v315_v21 = vld [vmem:[%s1056_s29] sm:$0x7] }
  0x10   : > { %872 = vmatprep.subr.mxu0 %v951_v2  ;;  %v414_v14 = vsub.s32 4, %v1017_v4  ;;  %v426_v18 = vsub.s32 5, %v1017_v4  ;;  %v451_v19 = vsub.s32 6, %v1017_v4  ;;  %v464_v20 = vsub.s32 7, %v1017_v4  ;;  %v316_v22 = vld [vmem:[%s1056_s29 + $0x4] sm:$0x7] }
  0x11   : > { %873 = vmatpush3.msra.mxu0 %v577_v5  ;;  %v317_v23 = vld [vmem:[%s1056_s29 + $0x8] sm:$0x7]  ;;  %v343_v24 = vrot.slane %v1042_v12, %v1026_v6  ;;  %v359_v25 = vrot.slane %v1042_v12, %v358_v7  ;;  %v371_v26 = vrot.slane %v1042_v12, %v370_v8  ;;  %v1070_v27 = vrot.slane %v1042_v12, %v398_v13  ;;  %v318_v28 = vld [vmem:[%s1056_s29 + $0xc] sm:$0x7]  ;;  %v1075_v29 = vld [vmem:[%s1056_s29 + $0x10] sm:$0x7] }
  0x12   : > { %874 = vmatprep.subr.mxu0 %v951_v2  ;;  %v823_v30 = vld [vmem:[%s1056_s29 + $0x14] sm:$0x7]  ;;  %v336_v31 = vunpack.c.l.bf16 %v315_v21  ;;  %v1078_v32 = vunpack.c.l.bf16 %v316_v22  ;;  %v1080_v33 = vunpack.c.l.bf16 %v317_v23  ;;  %v1083_v34 = vrot.slane %v1042_v12, %v414_v14  ;;  %v1086_v35 = vld [vmem:[%s1056_s29 + $0x18] sm:$0x7]  ;;  %v1089_v36 = vld [vmem:[%s1056_s29 + $0x1c] sm:$0x7] }
  0x13   : > { %875 = vmatpush3.msra.mxu0 %v576_v9  ;;  %v1092_v37 = vld [vmem:[%s1056_s29 + $0x20] sm:$0x7]  ;;  %v1094_v38 = vunpack.c.l.bf16 %v318_v28  ;;  %v352_v39 = vunpack.c.l.bf16 %v823_v30  ;;  %v1097_v40 = vrot.slane %v1042_v12, %v426_v18  ;;  %v448_v41 = vunpack.c.l.bf16 %v1075_v29  ;;  %v828_v52 = vld [vmem:[%s1056_s29 + $0x28] sm:$0x7]  ;;  %v829_v57 = vld [vmem:[%s1056_s29 + $0x2c] sm:$0x7] }
  0x14   : > { %876 = vmatprep.subr.mxu0 %v951_v2  ;;  %v344_v43 = vmul.f32 %v343_v24, %v336_v31  ;;  %v345_v44 = vmul.f32 %v343_v24, %v1078_v32  ;;  %v346_v45 = vmul.f32 %v343_v24, %v1080_v33  ;;  %v353_v46 = vunpack.c.l.bf16 %v1086_v35  ;;  %v830_v58 = vld [vmem:[%s1056_s29 + $0x30] sm:$0x7]  ;;  %v831_v0 = vld [vmem:[%s1056_s29 + $0x34] sm:$0x7]  ;;  %v832_v8 = vld [vmem:[%s1056_s29 + $0x3c] sm:$0x7] }
  0x15   : > { %877 = vmatpush3.msra.mxu0 %v575_v15  ;;  %v347_v47 = vmul.f32 %v343_v24, %v1094_v38  ;;  %v354_v48 = vunpack.c.l.bf16 %v1089_v36  ;;  %v355_v49 = vunpack.c.l.bf16 %v1092_v37  ;;  %v360_v50 = vmul.f32 %v359_v25, %v352_v39  ;;  %v833_v9 = vld [vmem:[%s1056_s29 + $0x40] sm:$0x7]  ;;  %v834_v18 = vld [vmem:[%s1056_s29 + $0x44] sm:$0x7]  ;;  %v835_v21 = vld [vmem:[%s1056_s29 + $0x48] sm:$0x7] }
  0x16   : > { %878 = vmatprep.subr.mxu0 %v951_v2  ;;  %v361_v53 = vmul.f32 %v359_v25, %v353_v46  ;;  %v372_v54 = vmul.f32 %v371_v26, %v336_v31  ;;  %v373_v55 = vmul.f32 %v371_v26, %v1078_v32  ;;  %v374_v56 = vmul.f32 %v371_v26, %v1080_v33  ;;  %v569_v39 = vld [vmem:[%s1235_s4 + $0x28] sm:$0xff]  ;;  %s848_s18 = sshll.u32 %s1243_s28, 3 }
  0x17   : > { %879 = vmatpush3.msra.mxu0 %v574_v16  ;;  %v362_v59 = vmul.f32 %v359_v25, %v354_v48  ;;  %v363_v60 = vmul.f32 %v359_v25, %v355_v49  ;;  %v364_v61 = vadd.f32 %v360_v50, %v344_v43  ;;  %v375_v62 = vmul.f32 %v371_v26, %v1094_v38  ;;  %v570_v16 = vld [vmem:[%s1235_s4 + $0x30] sm:$0xff]  ;;  %s310_s21 = scalar_lea.vmem %s1239_s8, %s848_s18 }
  0x18   : > { %880 = vmatprep.subr.mxu0 %v951_v2  ;;  %v365_v1 = vadd.f32 %v361_v53, %v345_v44  ;;  %v380_v3 = vrot.slane %v372_v54, 1  ;;  %v381_v5 = vrot.slane %v373_v55, 1  ;;  %v382_v7 = vrot.slane %v374_v56, 1  ;;  %v568_v53 = vld [vmem:[%s1235_s4 + $0x20] sm:$0xff] }
  0x19   : > { %881 = vmatpush3.msra.mxu0 %v573_v42  ;;  %v366_v10 = vadd.f32 %v362_v59, %v346_v45  ;;  %v367_v13 = vadd.f32 %v363_v60, %v347_v47  ;;  %v383_v14 = vrot.slane %v375_v62, 1  ;;  %v392_v15 = vunpack.c.l.bf16 %v828_v52  ;;  %v567_v62 = vld [vmem:[%s1235_s4 + $0x18] sm:$0xff] }
  0x1a   : > { %882 = vmatprep.subr.mxu0 %v951_v2  ;;  %v388_v22 = vadd.f32 %v380_v3, %v364_v61  ;;  %v389_v23 = vadd.f32 %v381_v5, %v365_v1  ;;  %v393_v24 = vunpack.c.l.bf16 %v829_v57  ;;  %v394_v25 = vunpack.c.l.bf16 %v830_v58  ;;  %v827_v58 = vld [vmem:[%s1056_s29 + $0x24] sm:$0x7] }
  0x1b   : > { %883 = vmatpush3.msra.mxu0 %v572_v51  ;;  %v390_v26 = vadd.f32 %v382_v7, %v366_v10  ;;  %v391_v28 = vadd.f32 %v383_v14, %v367_v13  ;;  %v395_v30 = vunpack.c.l.bf16 %v831_v0  ;;  %v400_v31 = vmul.f32 %v1070_v27, %v392_v15 }
  0x1c   : > { %884 = vmatprep.subr.mxu0 %v951_v2  ;;  %v401_v42 = vmul.f32 %v1070_v27, %v393_v24  ;;  %v402_v43 = vmul.f32 %v1070_v27, %v394_v25  ;;  %v408_v44 = vunpack.c.l.bf16 %v832_v8  ;;  %v409_v45 = vunpack.c.l.bf16 %v833_v9  ;;  %v566_v9 = vld [vmem:[%s1235_s4 + $0x10] sm:$0xff] }
  0x1d   : > { %885 = vmatpush3.msra.mxu0 %v571_v63  ;;  %v403_v47 = vmul.f32 %v1070_v27, %v395_v30  ;;  %v404_v50 = vadd.f32 %v400_v31, %v388_v22  ;;  %v410_v51 = vunpack.c.l.bf16 %v834_v18  ;;  %v411_v52 = vunpack.c.l.bf16 %v835_v21  ;;  %v565_v22 = vld [vmem:[%s1235_s4 + $0x8] sm:$0xff] }
  0x1e   : > { %886 = vmatprep.subr.mxu0 %v951_v2  ;;  %v405_v54 = vadd.f32 %v401_v42, %v389_v23  ;;  %v406_v55 = vadd.f32 %v402_v43, %v390_v26  ;;  %v416_v56 = vmul.f32 %v1083_v34, %v408_v44  ;;  %v417_v57 = vmul.f32 %v1083_v34, %v409_v45 }
  0x1f   : > { %887 = vmatpush3.msra.mxu0 %v570_v16  ;;  %v407_v59 = vadd.f32 %v403_v47, %v391_v28  ;;  %v418_v27 = vmul.f32 %v1083_v34, %v410_v51  ;;  %v419_v60 = vmul.f32 %v1083_v34, %v411_v52  ;;  %v428_v61 = vmul.f32 %v1097_v40, %v392_v15 }
  0x20   : > { %888 = vmatprep.subr.mxu0 %v951_v2  ;;  %v420_v63 = vadd.f32 %v416_v56, %v404_v50  ;;  %v421_v0 = vadd.f32 %v417_v57, %v405_v54  ;;  %v429_v1 = vmul.f32 %v1097_v40, %v393_v24  ;;  %v430_v3 = vmul.f32 %v1097_v40, %v394_v25 }
  0x21   : > { %889 = vmatpush3.msra.mxu0 %v569_v39  ;;  %v422_v5 = vadd.f32 %v418_v27, %v406_v55  ;;  %v423_v7 = vadd.f32 %v419_v60, %v407_v59  ;;  %v431_v8 = vmul.f32 %v1097_v40, %v395_v30  ;;  %v436_v34 = vrot.slane %v428_v61, 1 }
  0x22   : > { %890 = vmatprep.subr.mxu0 %v951_v2  ;;  %v437_v10 = vrot.slane %v429_v1, 1  ;;  %v438_v13 = vrot.slane %v430_v3, 1  ;;  %v452_v14 = vrot.slane %v1042_v12, %v451_v19  ;;  %v461_v15 = vunpack.c.l.bf16 %v827_v58 }
  0x23   : > { %891 = vmatpush3.msra.mxu0 %v568_v53  ;;  %v439_v16 = vrot.slane %v431_v8, 1  ;;  %v444_v18 = vadd.f32 %v436_v34, %v420_v63  ;;  %v465_v40 = vrot.slane %v1042_v12, %v464_v20  ;;  %v477_v21 = vrot.slane %v314_v17, %v1026_v6  ;;  %v564_v20 = vld [vmem:[%s1235_s4] sm:$0xff] }
  0x24   : > { %892 = vmatprep.subr.mxu0 %v951_v2  ;;  %v445_v23 = vadd.f32 %v437_v10, %v421_v0  ;;  %v446_v19 = vadd.f32 %v438_v13, %v422_v5  ;;  %v453_v24 = vmul.f32 %v452_v14, %v1078_v32  ;;  %v454_v25 = vmul.f32 %v452_v14, %v1080_v33 }
  0x25   : > { %893 = vmatpush3.msra.mxu0 %v567_v62  ;;  %v447_v4 = vadd.f32 %v439_v16, %v423_v7  ;;  %v455_v12 = vmul.f32 %v452_v14, %v1094_v38  ;;  %v456_v11 = vmul.f32 %v452_v14, %v448_v41  ;;  %v466_v17 = vmul.f32 %v465_v40, %v353_v46 }
  0x26   : > { %894 = vmatprep.subr.mxu0 %v951_v2  ;;  %v457_v26 = vadd.f32 %v453_v24, %v444_v18  ;;  %v458_v28 = vadd.f32 %v454_v25, %v445_v23  ;;  %v467_v30 = vmul.f32 %v465_v40, %v354_v48  ;;  %v468_v31 = vmul.f32 %v465_v40, %v355_v49 }
  0x27   : > { %895 = vmatpush3.msra.mxu0 %v566_v9  ;;  %v459_v39 = vadd.f32 %v455_v12, %v446_v19  ;;  %v460_v42 = vadd.f32 %v456_v11, %v447_v4  ;;  %v469_v43 = vmul.f32 %v465_v40, %v461_v15  ;;  %v478_v35 = vmul.f32 %v477_v21, %v1078_v32  ;;  %v836_v32 = vld [vmem:[%s1233_s2] ss:$0 sm:$0xff] }
  0x28   : > { %896 = vmatprep.subr.mxu0 %v951_v2  ;;  %v470_v46 = vadd.f32 %v466_v17, %v457_v26  ;;  %v471_v44 = vadd.f32 %v467_v30, %v458_v28  ;;  %v479_v45 = vmul.f32 %v477_v21, %v1080_v33  ;;  %v480_v47 = vmul.f32 %v477_v21, %v1094_v38  ;;  %v837_v33 = vld [vmem:[%s1234_s3] ss:$0 sm:$0xff] }
  0x29   : > { %897 = vmatpush3.msra.mxu0 %v565_v22  ;;  %v472_v36 = vadd.f32 %v468_v31, %v459_v39  ;;  %v473_v48 = vadd.f32 %v469_v43, %v460_v42  ;;  %v481_v37 = vmul.f32 %v477_v21, %v448_v41  ;;  %v486_v49 = vrot.slane %v478_v35, 1  ;;  %v658_v39 = vld [vmem:[%s1237_s6] sm:$0xf] }
  0x2a   : > { %898 = vmatprep.subr.mxu0 %v951_v2  ;;  %v487_v50 = vrot.slane %v479_v45, 1  ;;  %v488_v51 = vrot.slane %v480_v47, 1  ;;  %904 = vmatpush3.msk.msra.mxu1 %vm548_vm1, %v658_v39  ;;  %v580_v42 = vld [vmem:[%s1236_s5] sm:$0x1] }
  0x2b   : > { %899 = vmatpush3.msra.mxu0 %v564_v20  ;;  %v489_v2 = vrot.slane %v481_v37, 1  ;;  %v494_v52 = vadd.f32 %v486_v49, %v470_v46  ;;  %v659_v37 = vld [vmem:[%s1238_s7] sm:$0x1] }
  0x2c   : > { %v495_v53 = vadd.f32 %v487_v50, %v471_v44  ;;  %v496_v54 = vadd.f32 %v488_v51, %v472_v36 }
  0x2d   : > { %v497_v38 = vadd.f32 %v489_v2, %v473_v48  ;;  %v505_v55 = vmul.f32 %v836_v32, %v494_v52 }
  0x2e   : > { %v506_v56 = vmul.f32 %v836_v32, %v495_v53  ;;  %v507_v29 = vmul.f32 %v836_v32, %v496_v54 }
  0x2f   : > { %v508_v41 = vmul.f32 %v836_v32, %v497_v38  ;;  %v516_v57 = vadd.f32 %v837_v33, %v505_v55 }
  0x30   : > { %v517_v58 = vadd.f32 %v837_v33, %v506_v56  ;;  %v518_v59 = vadd.f32 %v837_v33, %v507_v29 }
  0x31   : > { %v519_v27 = vadd.f32 %v837_v33, %v508_v41  ;;  %v838_v60 = vmul.f32 -1.442695, %v516_v57 }
  0x32   : > { %v839_v61 = vmul.f32 -1.442695, %v517_v58  ;;  %v840_v62 = vmul.f32 -1.442695, %v518_v59 }
  0x33   : > { %919 = vpow2.f32 %v838_v60  ;;  %v841_v63 = vmul.f32 -1.442695, %v519_v27 }
  0x34   : > { %921 = vpow2.f32 %v839_v61 }
  0x35   : > { %923 = vpow2.f32 %v840_v62 }
  0x36   : > { %925 = vpow2.f32 %v841_v63 }
  0x40   : > { %v920_v0 = vpop.eup %919 }
  0x41   : > { %v922_v1 = vpop.eup %921  ;;  %v532_v3 = vadd.f32 1.0, %v920_v0 }
  0x42   : > { %v924_v5 = vpop.eup %923  ;;  %v533_v7 = vadd.f32 1.0, %v922_v1 }
  0x43   : > { %v926_v8 = vpop.eup %925  ;;  %v534_v34 = vadd.f32 1.0, %v924_v5  ;;  %927 = vrcp.f32 %v532_v3 }
  0x44   : > { %v535_v9 = vadd.f32 1.0, %v926_v8  ;;  %929 = vrcp.f32 %v533_v7 }
  0x45   : > { %931 = vrcp.f32 %v534_v34 }
  0x46   : > { %933 = vrcp.f32 %v535_v9 }
  0x50   : > { %v928_v10 = vpop.eup %927 }
  0x51   : > { %v930_v13 = vpop.eup %929  ;;  %v544_v14 = vmul.f32 %v928_v10, %v516_v57 }
  0x52   : > { %v932_v15 = vpop.eup %931  ;;  %v545_v16 = vmul.f32 %v930_v13, %v517_v58 }
  0x53   : > { %v934_v18 = vpop.eup %933  ;;  %v546_v40 = vmul.f32 %v932_v15, %v518_v59  ;;  %v549_v21 = vsel %vm548_vm1, %v544_v14, 0.0 }
  0x54   : > { %v547_v22 = vmul.f32 %v934_v18, %v519_v27  ;;  %v550_v23 = vsel %vm548_vm1, %v545_v16, 0.0 }
  0x55   : > { %v551_v19 = vadd.f32 %v550_v23, %v549_v21  ;;  %v552_v24 = vsel %vm548_vm1, %v546_v40, 0.0 }
  0x56   : > { %v554_v25 = vsel %vm548_vm1, %v547_v22, 0.0 }
  0x57   : > { %v553_v4 = vadd.f32 %v552_v24, %v551_v19 }
  0x59   : > { %v555_v12 = vadd.f32 %v554_v25, %v553_v4 }
  0x5b   : > { %v556_v11 = vrot.slane %v555_v12, 4 }
  0x5d   : > { %v557_v17 = vadd.f32 %v556_v11, %v555_v12 }
  0x5f   : > { %v558_v20 = vrot.slane %v557_v17, 2 }
  0x61   : > { %v559_v26 = vadd.f32 %v558_v20, %v557_v17 }
  0x63   : > { %v560_v28 = vrot.slane %v559_v26, 1 }
  0x65   : > { %v561_v30 = vadd.f32 %v560_v28, %v559_v26 }
  0x67   : > { %v563_v31 = vmul.f32 0.0625, %v561_v30 }
  0x69   : > { %901 = vmatmul.mubr.f32.vlgmr.msra.gmra.mxu0 %v563_v31 }
 0x129   : > { %v647_v43 = vpop.f32.mrf.mxu0 }
 0x12a   : > { %v648_v35 = vadd.f32 %v647_v43, %v580_v42 }
 0x12b   : > { %v902_v46 = vpop.f32.mrf.mxu0 }
 0x12c   : > { %v842_v44 = vmul.f32 -1.442695, %v648_v35 }
 0x12e   : > { %935 = vpow2.f32 %v842_v44 }
 0x13b   : > { %v936_v45 = vpop.eup %935 }
 0x13c   : > { %v654_v47 = vadd.f32 1.0, %v936_v45 }
 0x13e   : > { %937 = vrcp.f32 %v654_v47 }
 0x14b   : > { %v938_v36 = vpop.eup %937 }
 0x14c   : > { %v657_v48 = vmul.f32 %v938_v36, %v648_v35 }
 0x14e   : > { %906 = vmatmul.mubr.msk.f32.vlgmr.msra.gmra.mxu1 %vm660_vm2, %v657_v48 }
 0x20e   : > { %v733_v49 = vpop.f32.mrf.mxu1 }
 0x20f   : > { %v734_v50 = vadd.f32 %v733_v49, %v659_v37 }
 0x210   : > { %v907_v51 = vpop.f32.mrf.mxu1 }
 0x211   : > { %v845_v32 = vmul.f32 -1.442695, %v734_v50 }
 0x213   : > { %939 = vpow2.f32 %v845_v32 }
 0x220   : > { %v940_v2 = vpop.eup %939 }
 0x221   : > { %v740_v52 = vadd.f32 1.0, %v940_v2 }
 0x223   : > { %941 = vrcp.f32 %v740_v52 }
 0x230   : > { %v942_v53 = vpop.eup %941 }
 0x231   : > { %v746_v54 = vrot.slane %v942_v53, %v1026_v6 }
 0x233   : > { %v747_v33 = vmul.f32 %v746_v54, %v544_v14  ;;  %v748_v38 = vmul.f32 %v746_v54, %v545_v16  ;;  %v749_v55 = vmul.f32 %v746_v54, %v546_v40  ;;  %v750_v56 = vmul.f32 %v746_v54, %v547_v22 }
 0x235   : > { %v751_v29 = vpack.c.bf16 %v747_v33, %v747_v33  ;;  %v752_v41 = vpack.c.bf16 %v748_v38, %v748_v38  ;;  %v753_v57 = vpack.c.bf16 %v749_v55, %v749_v55  ;;  %v754_v58 = vpack.c.bf16 %v750_v56, %v750_v56 }
 0x237   : > { %755 = vst [vmem:[%s310_s21] sm:$0x3] %v751_v29  ;;  %756 = vst [vmem:[%s310_s21 + $0x2] sm:$0x3] %v752_v41 }
 0x238   : > { %757 = vst [vmem:[%s310_s21 + $0x4] sm:$0x3] %v753_v57  ;;  %758 = vst [vmem:[%s310_s21 + $0x6] sm:$0x3] %v754_v58 }
 0x239 PF: > { %s18_s27 = sadd.s32 1, %s949_s27  }
 0x23a   : > { %p15_p5 = scmp.ge.s32.totalorder %s18_s27, 4  }
 0x23c   :  { %17 = sbr.rel (!%p15_p5) target bundleno = 1 (0x1), region = 85 }

// kernel: _lambda_.16
= control target key start
LH: loop header
LB: loop body
LE: loop exit
PB: predicated region body
PF: predicated region fallthrough
CT: control target
= control target key end

     0   :  { %s406_s1 = inlined_call_operand.vmem [shape: bf16[128,128], index: 1, kind: input, shape index: {}]   ;;  %s407_s0 = inlined_call_operand.vmem [shape: bf16[32,128], index: 0, kind: input, shape index: {}]   ;;  %s408_s2 = inlined_call_operand.vmem [shape: f32[1,128], index: 2, kind: input, shape index: {}]   ;;  %s409_s3 = inlined_call_operand.vmem [shape: f32[1,128], index: 3, kind: input, shape index: {}]   ;;  %s410_s4 = inlined_call_operand.vmem [shape: bf16[32,128], index: 4, kind: output, shape index: {}]  }
   0x1   :  { %v313_v0 = vld [vmem:[%s406_s1 + $0x38] sm:$0xff]   ;;  %v314_v1 = vld [vmem:[%s406_s1 + $0x30] sm:$0xff]   ;;  %v315_v2 = vld [vmem:[%s406_s1 + $0x28] sm:$0xff]  }
   0x2   :  { %293 = vmatprep.subr.bf16.mxu0 %v313_v0  ;;  %v316_v3 = vld [vmem:[%s406_s1 + $0x20] sm:$0xff]   ;;  %v317_v5 = vld [vmem:[%s406_s1 + $0x18] sm:$0xff]   ;;  %v318_v6 = vld [vmem:[%s406_s1 + $0x10] sm:$0xff]  }
   0x3   :  { %294 = vmatpush3.bf16.msra.mxu0 %v313_v0  ;;  %v321_v4 = vld [vmem:[%s407_s0] sm:$0xff]   ;;  %v319_v7 = vld [vmem:[%s406_s1 + $0x8] sm:$0xff]  }
   0x4   :  { %295 = vmatprep.subr.bf16.mxu0 %v314_v1  ;;  %309 = vmatprep.mubr.bf16.mxu0 %v321_v4  ;;  %v320_v8 = vld [vmem:[%s406_s1] sm:$0xff]   ;;  %v322_v9 = vld [vmem:[%s407_s0 + $0x8] sm:$0xff]  }
   0x5   :  { %v258_v10 = vld [vmem:[%s408_s2] ss:$0 sm:$0xff] }
   0x6   :  { %v259_v12 = vld [vmem:[%s409_s3] ss:$0 sm:$0xff] }
   0x7   :  { %296 = vmatpush3.bf16.msra.mxu0 %v314_v1 }
   0x8   :  { %297 = vmatprep.subr.bf16.mxu0 %v315_v2 }
   0xb   :  { %298 = vmatpush3.bf16.msra.mxu0 %v315_v2 }
   0xc   :  { %299 = vmatprep.subr.bf16.mxu0 %v316_v3 }
   0xf   :  { %300 = vmatpush3.bf16.msra.mxu0 %v316_v3 }
  0x10   :  { %301 = vmatprep.subr.bf16.mxu0 %v317_v5 }
  0x13   :  { %302 = vmatpush3.bf16.msra.mxu0 %v317_v5 }
  0x14   :  { %303 = vmatprep.subr.bf16.mxu0 %v318_v6 }
  0x17   :  { %304 = vmatpush3.bf16.msra.mxu0 %v318_v6 }
  0x18   :  { %305 = vmatprep.subr.bf16.mxu0 %v319_v7 }
  0x1b   :  { %306 = vmatpush3.bf16.msra.mxu0 %v319_v7 }
  0x1c   :  { %307 = vmatprep.subr.bf16.mxu0 %v320_v8 }
  0x1f   :  { %308 = vmatpush3.bf16.msra.mxu0 %v320_v8 }
  0x22   :  { %310 = vmatmul.mubr.bf16.vlgmr.msra.gmra.mxu0 %v322_v9 }
  0xe2   :  { %v311_v11 = vpop.f32.mrf.mxu0 }
  0xe3   :  { %v183_v13 = vmul.f32 %v311_v11, %v258_v10 }
  0xe4   :  { %v144_v14 = vpop.f32.mrf.mxu0 }
  0xe5   :  { %v194_v15 = vadd.f32 %v259_v12, %v183_v13  ;;  %v181_v16 = vmul.f32 %v258_v10, %v144_v14 }
  0xe6   :  { %v312_v17 = vpop.f32.mrf.mxu0 }
  0xe7   :  { %v262_v18 = vmul.f32 -1.442695, %v194_v15  ;;  %v192_v19 = vadd.f32 %v259_v12, %v181_v16  ;;  %v184_v20 = vmul.f32 %v312_v17, %v258_v10 }
  0xe8   :  { %v147_v21 = vpop.f32.mrf.mxu0 }
  0xe9   :  { %323 = vpow2.f32 %v262_v18  ;;  %v260_v22 = vmul.f32 -1.442695, %v192_v19  ;;  %v195_v23 = vadd.f32 %v259_v12, %v184_v20  ;;  %v182_v24 = vmul.f32 %v258_v10, %v147_v21 }
  0xeb   :  { %325 = vpow2.f32 %v260_v22  ;;  %v263_v25 = vmul.f32 -1.442695, %v195_v23  ;;  %v193_v26 = vadd.f32 %v259_v12, %v182_v24 }
  0xed   :  { %327 = vpow2.f32 %v263_v25  ;;  %v261_v27 = vmul.f32 -1.442695, %v193_v26 }
  0xef   :  { %329 = vpow2.f32 %v261_v27 }
  0xf6   :  { %v324_v28 = vpop.eup %323 }
  0xf7   :  { %v210_v29 = vadd.f32 1.0, %v324_v28 }
  0xf8   :  { %v326_v30 = vpop.eup %325 }
  0xf9   :  { %v208_v31 = vadd.f32 1.0, %v326_v30  ;;  %331 = vrcp.f32 %v210_v29 }
  0xfa   :  { %v328_v32 = vpop.eup %327 }
  0xfb   :  { %v211_v33 = vadd.f32 1.0, %v328_v32  ;;  %333 = vrcp.f32 %v208_v31 }
  0xfc   :  { %v330_v34 = vpop.eup %329 }
  0xfd   :  { %335 = vrcp.f32 %v211_v33  ;;  %v209_v35 = vadd.f32 1.0, %v330_v34 }
  0xff   :  { %337 = vrcp.f32 %v209_v35 }
 0x106   :  { %v332_v36 = vpop.eup %331 }
 0x107   :  { %v222_v39 = vmul.f32 %v332_v36, %v194_v15 }
 0x108   :  { %v334_v37 = vpop.eup %333 }
 0x109   :  { %v220_v42 = vmul.f32 %v334_v37, %v192_v19 }
 0x10a   :  { %v336_v38 = vpop.eup %335 }
 0x10b   :  { %v223_v40 = vmul.f32 %v336_v38, %v195_v23 }
 0x10c   :  { %v338_v41 = vpop.eup %337 }
 0x10d   :  { %v280_v43 = vpack.c.bf16 %v223_v40, %v222_v39  ;;  %v221_v44 = vmul.f32 %v338_v41, %v193_v26 }
 0x10f   :  { %282 = vst [vmem:[%s410_s4 + $0x8] sm:$0xff] %v280_v43   ;;  %v275_v45 = vpack.c.bf16 %v221_v44, %v220_v42 }
 0x111   :  { %276 = vst [vmem:[%s410_s4] sm:$0xff] %v275_v45  }

// kernel: _lambda_.17
= control target key start
LH: loop header
LB: loop body
LE: loop exit
PB: predicated region body
PF: predicated region fallthrough
CT: control target
= control target key end

     0   :  { %s989_s27 = smov 0   ;;  %s1181_s0 = inlined_call_operand.vmem [shape: bf16[2,6,6,128], index: 0, kind: input, shape index: {}]   ;;  %s1182_s1 = inlined_call_operand.vmem [shape: bf16[9,128], index: 1, kind: input, shape index: {}]   ;;  %s1183_s2 = inlined_call_operand.vmem [shape: f32[1,128], index: 2, kind: input, shape index: {}]   ;;  %s1184_s3 = inlined_call_operand.vmem [shape: f32[1,128], index: 3, kind: input, shape index: {}, may-alias: {3,7}]   ;;  %s1185_s4 = inlined_call_operand.vmem [shape: f32[128,6], index: 4, kind: input, shape index: {}]   ;;  %s1186_s5 = inlined_call_operand.vmem [shape: f32[1,6], index: 5, kind: input, shape index: {}]   ;;  %s1187_s6 = inlined_call_operand.vmem [shape: f32[6,128], index: 6, kind: input, shape index: {}]   ;;  %s1188_s7 = inlined_call_operand.vmem [shape: f32[1,128], index: 7, kind: input, shape index: {}, may-alias: {3,7}]   ;;  %s1189_s8 = inlined_call_operand.vmem [shape: bf16[2,4,4,128], index: 8, kind: output, shape index: {}]  }
   0x1 LB: > { %s819_s28 = sadd.s32 4294967295, %s940_s27   ;;  %p823_p0 = scmp.ge.s32.totalorder %s940_s27, 1  ;;  %s940_s27 = sphi %s989_s27, %s18_s27  }
   0x2   : > { %p262_p1 = scmp.lt.s32.totalorder %s940_s27, 3 }
   0x4   : > { %p263_p2 = pnand %p823_p0, %p262_p1 }
   0x5   : > { %p296_p3 = scmp.lt.s32.totalorder (!%p263_p2), %s819_s28, 1 }
   0x6   : > { %266 = sbr.rel (%p263_p2) target bundleno = 571 (0x23b), region = 52 }
   0xb   : > { %v583_v0 = vld [vmem:[%s1185_s4 + $0x78] sm:$0xff]  ;;  %v320_v1 = vlaneseq  ;;  %v942_v2 = vmov 0.0   ;;  %v582_v3 = vld [vmem:[%s1185_s4 + $0x70] sm:$0xff]  ;;  %vm943_vm0 = vmmov 0   ;;  %s1191_s28 = smov (!%p296_p3, %s819_s28), 1  ;;  %v581_v5 = vld [vmem:[%s1185_s4 + $0x68] sm:$0xff] }
   0xc   : > { %859 = vmatprep.subr.mxu0 %v942_v2  ;;  %891 = vmatprep.mubr.msk.f32.mxu0 %vm943_vm0, %v942_v2  ;;  %v580_v6 = vld [vmem:[%s1185_s4 + $0x60] sm:$0xff]  ;;  %s899_s15 = smul.u32 24, %s1191_s28  ;;  %v579_v12 = vld [vmem:[%s1185_s4 + $0x58] sm:$0xff]  ;;  %v578_v26 = vld [vmem:[%s1185_s4 + $0x50] sm:$0xff]  ;;  %vm552_vm1 = vcmask 1043456   ;;  %vm668_vm2 = vcmask 1045504  }
   0xd   : > { %860 = vmatpush3.msra.mxu0 %v583_v0  ;;  %v1007_v4 = vshrl.u32 %v320_v1, 7  ;;  %894 = vmatprep.subr.mxu1 %v942_v2  ;;  %v306_v8 = vld [vmem:[%s1182_s1] sm:$0xf]  ;;  %v1029_v9 = vld [vmem:[%s1182_s1 + $0x4] sm:$0x1]  ;;  %v577_v35 = vld [vmem:[%s1185_s4 + $0x48] sm:$0xff] }
   0xe   : > { %861 = vmatprep.subr.mxu0 %v942_v2  ;;  %896 = vmatprep.mubr.msk.f32.mxu1 %vm943_vm0, %v942_v2  ;;  %s1039_s24 = scalar_lea.vmem %s1181_s0, %s899_s15  ;;  %v1041_v13 = vunpack.c.l.bf16 %v306_v8  ;;  %v309_v16 = vunpack.c.l.bf16 %v1029_v9  ;;  %v576_v44 = vld [vmem:[%s1185_s4 + $0x40] sm:$0xff]  ;;  %v575_v53 = vld [vmem:[%s1185_s4 + $0x38] sm:$0xff]  ;;  %v574_v63 = vld [vmem:[%s1185_s4 + $0x30] sm:$0xff]  ;;  %vm664_vm3 = vcmask 48128   ;;  %s839_s17 = sshll.u32 %s1191_s28, 3 }
   0xf   : > { %862 = vmatpush3.msra.mxu0 %v582_v3  ;;  %v1020_v7 = vsub.s32 0, %v1007_v4  ;;  %v334_v10 = vsub.s32 1, %v1007_v4  ;;  %v358_v11 = vsub.s32 2, %v1007_v4  ;;  %v383_v14 = vsub.s32 3, %v1007_v4  ;;  %v310_v17 = vld [vmem:[%s1039_s24] sm:$0x7]  ;;  %s305_s20 = scalar_lea.vmem %s1189_s8, %s839_s17 }
  0x10   : > { %863 = vmatprep.subr.mxu0 %v942_v2  ;;  %v395_v15 = vsub.s32 4, %v1007_v4  ;;  %v311_v18 = vld [vmem:[%s1039_s24 + $0x4] sm:$0x7]  ;;  %v312_v19 = vld [vmem:[%s1039_s24 + $0x8] sm:$0x7]  ;;  %v316_v22 = vunpack.c.l.bf16 %v310_v17 }
  0x11   : > { %864 = vmatpush3.msra.mxu0 %v581_v5  ;;  %v313_v20 = vld [vmem:[%s1039_s24 + $0xc] sm:$0x7]  ;;  %v314_v21 = vld [vmem:[%s1039_s24 + $0x10] sm:$0x7]  ;;  %v1052_v23 = vunpack.c.l.bf16 %v311_v18  ;;  %v1054_v24 = vunpack.c.l.bf16 %v312_v19  ;;  %v323_v25 = vrot.slane %v1041_v13, %v1020_v7  ;;  %v335_v28 = vrot.slane %v1041_v13, %v334_v10  ;;  %v315_v54 = vld [vmem:[%s1039_s24 + $0x14] sm:$0x7] }
  0x12   : > { %865 = vmatprep.subr.mxu0 %v942_v2  ;;  %v1062_v27 = vunpack.c.l.bf16 %v313_v20  ;;  %v359_v29 = vrot.slane %v1041_v13, %v358_v11  ;;  %v1066_v30 = vunpack.c.l.bf16 %v314_v21  ;;  %v384_v34 = vrot.slane %v1041_v13, %v383_v14 }
  0x13   : > { %866 = vmatpush3.msra.mxu0 %v580_v6  ;;  %v324_v31 = vmul.f32 %v323_v25, %v316_v22  ;;  %v325_v32 = vmul.f32 %v323_v25, %v1052_v23  ;;  %v326_v33 = vmul.f32 %v323_v25, %v1054_v24  ;;  %v336_v37 = vmul.f32 %v335_v28, %v316_v22 }
  0x14   : > { %867 = vmatprep.subr.mxu0 %v942_v2  ;;  %v327_v36 = vmul.f32 %v323_v25, %v1062_v27  ;;  %v337_v38 = vmul.f32 %v335_v28, %v1052_v23  ;;  %v338_v39 = vmul.f32 %v335_v28, %v1054_v24  ;;  %v339_v40 = vmul.f32 %v335_v28, %v1062_v27  ;;  %v572_v25 = vld [vmem:[%s1185_s4 + $0x20] sm:$0xff] }
  0x15   : > { %868 = vmatpush3.msra.mxu0 %v579_v12  ;;  %v360_v41 = vmul.f32 %v359_v29, %v316_v22  ;;  %v361_v42 = vmul.f32 %v359_v29, %v1052_v23  ;;  %v362_v43 = vmul.f32 %v359_v29, %v1054_v24  ;;  %v344_v45 = vrot.slane %v336_v37, 1  ;;  %v573_v12 = vld [vmem:[%s1185_s4 + $0x28] sm:$0xff] }
  0x16   : > { %869 = vmatprep.subr.mxu0 %v942_v2  ;;  %v345_v46 = vrot.slane %v337_v38, 1  ;;  %v346_v47 = vrot.slane %v338_v39, 1  ;;  %v363_v48 = vmul.f32 %v359_v29, %v1062_v27  ;;  %v347_v49 = vrot.slane %v339_v40, 1 }
  0x17   : > { %870 = vmatpush3.msra.mxu0 %v578_v26  ;;  %v368_v50 = vrot.slane %v360_v41, 2  ;;  %v369_v51 = vrot.slane %v361_v42, 2  ;;  %v370_v52 = vrot.slane %v362_v43, 2  ;;  %v352_v55 = vadd.f32 %v344_v45, %v324_v31 }
  0x18   : > { %871 = vmatprep.subr.mxu0 %v942_v2  ;;  %v353_v56 = vadd.f32 %v345_v46, %v325_v32  ;;  %v354_v57 = vadd.f32 %v346_v47, %v326_v33  ;;  %v371_v58 = vrot.slane %v363_v48, 2  ;;  %v355_v59 = vadd.f32 %v347_v49, %v327_v36  ;;  %v571_v36 = vld [vmem:[%s1185_s4 + $0x18] sm:$0xff] }
  0x19   : > { %872 = vmatpush3.msra.mxu0 %v577_v35  ;;  %v385_v60 = vmul.f32 %v384_v34, %v1052_v23  ;;  %v386_v61 = vmul.f32 %v384_v34, %v1054_v24  ;;  %v387_v62 = vmul.f32 %v384_v34, %v1062_v27  ;;  %v376_v0 = vadd.f32 %v368_v50, %v352_v55  ;;  %v569_v50 = vld [vmem:[%s1185_s4 + $0x8] sm:$0xff] }
  0x1a   : > { %873 = vmatprep.subr.mxu0 %v942_v2  ;;  %v377_v1 = vadd.f32 %v369_v51, %v353_v56  ;;  %v378_v3 = vadd.f32 %v370_v52, %v354_v57  ;;  %v388_v5 = vmul.f32 %v384_v34, %v1066_v30  ;;  %v379_v6 = vadd.f32 %v371_v58, %v355_v59  ;;  %v568_v59 = vld [vmem:[%s1185_s4] sm:$0xff] }
  0x1b   : > { %874 = vmatpush3.msra.mxu0 %v576_v44  ;;  %v396_v8 = vrot.slane %v1041_v13, %v395_v15  ;;  %v419_v10 = vsub.s32 5, %v1007_v4  ;;  %v1103_v11 = vunpack.c.l.bf16 %v315_v54  ;;  %v389_v14 = vadd.f32 %v385_v60, %v376_v0 }
  0x1c   : > { %875 = vmatprep.subr.mxu0 %v942_v2  ;;  %v390_v17 = vadd.f32 %v386_v61, %v377_v1  ;;  %v391_v18 = vadd.f32 %v387_v62, %v378_v3  ;;  %v444_v19 = vsub.s32 6, %v1007_v4  ;;  %v392_v20 = vadd.f32 %v388_v5, %v379_v6 }
  0x1d   : > { %876 = vmatpush3.msra.mxu0 %v575_v53  ;;  %v397_v21 = vmul.f32 %v396_v8, %v1052_v23  ;;  %v398_v15 = vmul.f32 %v396_v8, %v1054_v24  ;;  %v399_v22 = vmul.f32 %v396_v8, %v1062_v27  ;;  %v400_v26 = vmul.f32 %v396_v8, %v1066_v30 }
  0x1e   : > { %877 = vmatprep.subr.mxu0 %v942_v2  ;;  %v420_v28 = vrot.slane %v1041_v13, %v419_v10  ;;  %v445_v29 = vrot.slane %v1041_v13, %v444_v19  ;;  %v456_v31 = vsub.s32 7, %v1007_v4  ;;  %v481_v35 = vrot.slane %v309_v16, %v1020_v7  ;;  %v570_v16 = vld [vmem:[%s1185_s4 + $0x10] sm:$0xff] }
  0x1f   : > { %878 = vmatpush3.msra.mxu0 %v574_v63  ;;  %v405_v32 = vrot.slane %v397_v21, 1  ;;  %v406_v33 = vrot.slane %v398_v15, 1  ;;  %v407_v34 = vrot.slane %v399_v22, 1  ;;  %v408_v37 = vrot.slane %v400_v26, 1  ;;  %v828_v26 = vld [vmem:[%s1184_s3] ss:$0 sm:$0xff] }
  0x20   : > { %879 = vmatprep.subr.mxu0 %v942_v2  ;;  %v421_v38 = vmul.f32 %v420_v28, %v1052_v23  ;;  %v422_v39 = vmul.f32 %v420_v28, %v1054_v24  ;;  %v423_v4 = vmul.f32 %v420_v28, %v1062_v27  ;;  %v424_v9 = vmul.f32 %v420_v28, %v1066_v30 }
  0x21   : > { %880 = vmatpush3.msra.mxu0 %v573_v12  ;;  %v413_v40 = vadd.f32 %v405_v32, %v389_v14  ;;  %v414_v41 = vadd.f32 %v406_v33, %v390_v17  ;;  %v415_v42 = vadd.f32 %v407_v34, %v391_v18  ;;  %v416_v43 = vadd.f32 %v408_v37, %v392_v20 }
  0x22   : > { %881 = vmatprep.subr.mxu0 %v942_v2  ;;  %v429_v44 = vrot.slane %v421_v38, 2  ;;  %v430_v45 = vrot.slane %v422_v39, 2  ;;  %v431_v23 = vrot.slane %v423_v4, 2  ;;  %v432_v46 = vrot.slane %v424_v9, 2 }
  0x23   : > { %882 = vmatpush3.msra.mxu0 %v572_v25  ;;  %v446_v47 = vmul.f32 %v445_v29, %v1054_v24  ;;  %v447_v48 = vmul.f32 %v445_v29, %v1062_v27  ;;  %v448_v49 = vmul.f32 %v445_v29, %v1066_v30  ;;  %v449_v54 = vmul.f32 %v445_v29, %v1103_v11 }
  0x24   : > { %883 = vmatprep.subr.mxu0 %v942_v2  ;;  %v437_v51 = vadd.f32 %v429_v44, %v413_v40  ;;  %v438_v52 = vadd.f32 %v430_v45, %v414_v41  ;;  %v439_v53 = vadd.f32 %v431_v23, %v415_v42  ;;  %v440_v55 = vadd.f32 %v432_v46, %v416_v43 }
  0x25   : > { %884 = vmatpush3.msra.mxu0 %v571_v36  ;;  %v457_v56 = vrot.slane %v1041_v13, %v456_v31  ;;  %v482_v57 = vmul.f32 %v481_v35, %v1054_v24  ;;  %v483_v58 = vmul.f32 %v481_v35, %v1062_v27  ;;  %v484_v63 = vmul.f32 %v481_v35, %v1066_v30 }
  0x26   : > { %885 = vmatprep.subr.mxu0 %v942_v2  ;;  %v450_v60 = vadd.f32 %v446_v47, %v437_v51  ;;  %v451_v61 = vadd.f32 %v447_v48, %v438_v52  ;;  %v452_v62 = vadd.f32 %v448_v49, %v439_v53  ;;  %v453_v0 = vadd.f32 %v449_v54, %v440_v55 }
  0x27   : > { %886 = vmatpush3.msra.mxu0 %v570_v16  ;;  %v458_v1 = vmul.f32 %v457_v56, %v1054_v24  ;;  %v459_v13 = vmul.f32 %v457_v56, %v1062_v27  ;;  %v460_v3 = vmul.f32 %v457_v56, %v1066_v30  ;;  %v461_v5 = vmul.f32 %v457_v56, %v1103_v11 }
  0x28   : > { %887 = vmatprep.subr.mxu0 %v942_v2  ;;  %v485_v6 = vmul.f32 %v481_v35, %v1103_v11  ;;  %v490_v8 = vrot.slane %v482_v57, 2  ;;  %v491_v10 = vrot.slane %v483_v58, 2  ;;  %v492_v18 = vrot.slane %v484_v63, 2 }
  0x29   : > { %888 = vmatpush3.msra.mxu0 %v569_v50  ;;  %v466_v12 = vrot.slane %v458_v1, 1  ;;  %v467_v14 = vrot.slane %v459_v13, 1  ;;  %v468_v17 = vrot.slane %v460_v3, 1  ;;  %v469_v19 = vrot.slane %v461_v5, 1  ;;  %v662_v3 = vld [vmem:[%s1187_s6] sm:$0x3f] }
  0x2a   : > { %889 = vmatprep.subr.mxu0 %v942_v2  ;;  %v493_v20 = vrot.slane %v485_v6, 2  ;;  %v827_v2 = vld [vmem:[%s1183_s2] ss:$0 sm:$0xff]  ;;  %895 = vmatpush3.msk.msra.mxu1 %vm668_vm2, %v662_v3 }
  0x2b   : > { %890 = vmatpush3.msra.mxu0 %v568_v59  ;;  %v474_v24 = vadd.f32 %v466_v12, %v450_v60  ;;  %v475_v21 = vadd.f32 %v467_v14, %v451_v61  ;;  %v476_v27 = vadd.f32 %v468_v17, %v452_v62  ;;  %v477_v15 = vadd.f32 %v469_v19, %v453_v0  ;;  %v584_v5 = vld [vmem:[%s1186_s5] sm:$0x1] }
  0x2d   : > { %v498_v30 = vadd.f32 %v490_v8, %v474_v24  ;;  %v499_v22 = vadd.f32 %v491_v10, %v475_v21  ;;  %v500_v11 = vadd.f32 %v492_v18, %v476_v27  ;;  %v501_v25 = vadd.f32 %v493_v20, %v477_v15  ;;  %v663_v20 = vld [vmem:[%s1188_s7] sm:$0x1] }
  0x2f   : > { %v509_v28 = vmul.f32 %v827_v2, %v498_v30  ;;  %v510_v29 = vmul.f32 %v827_v2, %v499_v22  ;;  %v511_v31 = vmul.f32 %v827_v2, %v500_v11  ;;  %v512_v32 = vmul.f32 %v827_v2, %v501_v25 }
  0x31   : > { %v520_v33 = vadd.f32 %v828_v26, %v509_v28  ;;  %v521_v34 = vadd.f32 %v828_v26, %v510_v29  ;;  %v522_v35 = vadd.f32 %v828_v26, %v511_v31  ;;  %v523_v36 = vadd.f32 %v828_v26, %v512_v32 }
  0x33   : > { %v829_v37 = vmul.f32 -1.442695, %v520_v33  ;;  %v830_v38 = vmul.f32 -1.442695, %v521_v34  ;;  %v831_v39 = vmul.f32 -1.442695, %v522_v35 }
  0x34   : > { %v832_v4 = vmul.f32 -1.442695, %v523_v36 }
  0x35   : > { %910 = vpow2.f32 %v829_v37 }
  0x36   : > { %912 = vpow2.f32 %v830_v38 }
  0x37   : > { %914 = vpow2.f32 %v831_v39 }
  0x38   : > { %916 = vpow2.f32 %v832_v4 }
  0x42   : > { %v911_v40 = vpop.eup %910 }
  0x43   : > { %v913_v41 = vpop.eup %912  ;;  %v536_v42 = vadd.f32 1.0, %v911_v40 }
  0x44   : > { %v915_v9 = vpop.eup %914  ;;  %v537_v16 = vadd.f32 1.0, %v913_v41 }
  0x45   : > { %v917_v43 = vpop.eup %916  ;;  %v538_v44 = vadd.f32 1.0, %v915_v9  ;;  %918 = vrcp.f32 %v536_v42 }
  0x46   : > { %v539_v45 = vadd.f32 1.0, %v917_v43  ;;  %920 = vrcp.f32 %v537_v16 }
  0x47   : > { %922 = vrcp.f32 %v538_v44 }
  0x48   : > { %924 = vrcp.f32 %v539_v45 }
  0x52   : > { %v919_v23 = vpop.eup %918 }
  0x53   : > { %v921_v46 = vpop.eup %920  ;;  %v548_v47 = vmul.f32 %v919_v23, %v520_v33 }
  0x54   : > { %v923_v48 = vpop.eup %922  ;;  %v549_v49 = vmul.f32 %v921_v46, %v521_v34 }
  0x55   : > { %v925_v50 = vpop.eup %924  ;;  %v550_v51 = vmul.f32 %v923_v48, %v522_v35  ;;  %v553_v52 = vsel %vm552_vm1, %v548_v47, 0.0 }
  0x56   : > { %v551_v53 = vmul.f32 %v925_v50, %v523_v36  ;;  %v554_v54 = vsel %vm552_vm1, %v549_v49, 0.0 }
  0x57   : > { %v555_v55 = vadd.f32 %v554_v54, %v553_v52  ;;  %v556_v56 = vsel %vm552_vm1, %v550_v51, 0.0 }
  0x58   : > { %v558_v57 = vsel %vm552_vm1, %v551_v53, 0.0 }
  0x59   : > { %v557_v58 = vadd.f32 %v556_v56, %v555_v55 }
  0x5b   : > { %v559_v59 = vadd.f32 %v558_v57, %v557_v58 }
  0x5d   : > { %v560_v60 = vrot.slane %v559_v59, 4 }
  0x5f   : > { %v561_v61 = vadd.f32 %v560_v60, %v559_v59 }
  0x61   : > { %v562_v62 = vrot.slane %v561_v61, 2 }
  0x63   : > { %v563_v63 = vadd.f32 %v562_v62, %v561_v61 }
  0x65   : > { %v564_v0 = vrot.slane %v563_v63, 1 }
  0x67   : > { %v565_v1 = vadd.f32 %v564_v0, %v563_v63 }
  0x69   : > { %v567_v13 = vmul.f32 0.0625, %v565_v1 }
  0x6b   : > { %892 = vmatmul.mubr.f32.vlgmr.msra.gmra.mxu0 %v567_v13 }
 0x12b   : > { %v651_v6 = vpop.f32.mrf.mxu0 }
 0x12c   : > { %v652_v8 = vadd.f32 %v651_v6, %v584_v5 }
 0x12d   : > { %v893_v10 = vpop.f32.mrf.mxu0 }
 0x12e   : > { %v833_v12 = vmul.f32 -1.442695, %v652_v8 }
 0x130   : > { %926 = vpow2.f32 %v833_v12 }
 0x13d   : > { %v927_v14 = vpop.eup %926 }
 0x13e   : > { %v658_v17 = vadd.f32 1.0, %v927_v14 }
 0x140   : > { %928 = vrcp.f32 %v658_v17 }
 0x14d   : > { %v929_v18 = vpop.eup %928 }
 0x14e   : > { %v661_v19 = vmul.f32 %v929_v18, %v652_v8 }
 0x150   : > { %897 = vmatmul.mubr.msk.f32.vlgmr.msra.gmra.mxu1 %vm664_vm3, %v661_v19 }
 0x210   : > { %v738_v24 = vpop.f32.mrf.mxu1 }
 0x211   : > { %v739_v21 = vadd.f32 %v738_v24, %v663_v20 }
 0x212   : > { %v898_v27 = vpop.f32.mrf.mxu1 }
 0x213   : > { %v836_v15 = vmul.f32 -1.442695, %v739_v21 }
 0x215   : > { %930 = vpow2.f32 %v836_v15 }
 0x222   : > { %v931_v2 = vpop.eup %930 }
 0x223   : > { %v745_v30 = vadd.f32 1.0, %v931_v2 }
 0x225   : > { %932 = vrcp.f32 %v745_v30 }
 0x232   : > { %v933_v22 = vpop.eup %932 }
 0x233   : > { %v751_v11 = vrot.slane %v933_v22, %v1020_v7 }
 0x235   : > { %v752_v25 = vmul.f32 %v751_v11, %v548_v47  ;;  %v753_v26 = vmul.f32 %v751_v11, %v549_v49  ;;  %v754_v28 = vmul.f32 %v751_v11, %v550_v51  ;;  %v755_v29 = vmul.f32 %v751_v11, %v551_v53 }
 0x237   : > { %v756_v31 = vpack.c.bf16 %v752_v25, %v752_v25  ;;  %v757_v32 = vpack.c.bf16 %v753_v26, %v753_v26  ;;  %v758_v33 = vpack.c.bf16 %v754_v28, %v754_v28  ;;  %v759_v34 = vpack.c.bf16 %v755_v29, %v755_v29 }
 0x239   : > { %760 = vst [vmem:[%s305_s20] sm:$0x3] %v756_v31  ;;  %761 = vst [vmem:[%s305_s20 + $0x2] sm:$0x3] %v757_v32 }
 0x23a   : > { %762 = vst [vmem:[%s305_s20 + $0x4] sm:$0x3] %v758_v33  ;;  %763 = vst [vmem:[%s305_s20 + $0x6] sm:$0x3] %v759_v34 }
 0x23b PF: > { %s18_s27 = sadd.s32 1, %s940_s27  }
 0x23c   : > { %p15_p4 = scmp.ge.s32.totalorder %s18_s27, 4  }
 0x23e   :  { %17 = sbr.rel (!%p15_p4) target bundleno = 1 (0x1), region = 82 }

// kernel: _lambda_.18
= control target key start
LH: loop header
LB: loop body
LE: loop exit
PB: predicated region body
PF: predicated region fallthrough
CT: control target
= control target key end

     0   :  { %s393_s1 = inlined_call_operand.vmem [shape: bf16[128,128], index: 1, kind: input, shape index: {}]   ;;  %s394_s0 = inlined_call_operand.vmem [shape: bf16[32,128], index: 0, kind: input, shape index: {}]   ;;  %s395_s2 = inlined_call_operand.vmem [shape: f32[1,128], index: 2, kind: input, shape index: {}]   ;;  %s396_s3 = inlined_call_operand.vmem [shape: f32[1,128], index: 3, kind: input, shape index: {}]   ;;  %s397_s4 = inlined_call_operand.vmem [shape: bf16[32,128], index: 4, kind: input, shape index: {}]   ;;  %s398_s5 = inlined_call_operand.vmem [shape: bf16[32,128], index: 5, kind: output, shape index: {}]  }
   0x1   :  { %v305_v0 = vld [vmem:[%s393_s1 + $0x38] sm:$0xff]   ;;  %v306_v1 = vld [vmem:[%s393_s1 + $0x30] sm:$0xff]   ;;  %v307_v2 = vld [vmem:[%s393_s1 + $0x28] sm:$0xff]  }
   0x2   :  { %285 = vmatprep.subr.bf16.mxu0 %v305_v0  ;;  %v308_v3 = vld [vmem:[%s393_s1 + $0x20] sm:$0xff]   ;;  %v309_v5 = vld [vmem:[%s393_s1 + $0x18] sm:$0xff]   ;;  %v310_v6 = vld [vmem:[%s393_s1 + $0x10] sm:$0xff]  }
   0x3   :  { %286 = vmatpush3.bf16.msra.mxu0 %v305_v0  ;;  %v313_v4 = vld [vmem:[%s394_s0] sm:$0xff]   ;;  %v311_v7 = vld [vmem:[%s393_s1 + $0x8] sm:$0xff]  }
   0x4   :  { %287 = vmatprep.subr.bf16.mxu0 %v306_v1  ;;  %301 = vmatprep.mubr.bf16.mxu0 %v313_v4  ;;  %v312_v8 = vld [vmem:[%s393_s1] sm:$0xff]   ;;  %v314_v9 = vld [vmem:[%s394_s0 + $0x8] sm:$0xff]  }
   0x5   :  { %v245_v10 = vld [vmem:[%s395_s2] ss:$0 sm:$0xff]  ;;  %v273_v14 = vld [vmem:[%s397_s4 + $0x8] sm:$0xff]  }
   0x6   :  { %v246_v13 = vld [vmem:[%s396_s3] ss:$0 sm:$0xff]  ;;  %v261_v20 = vunpack.c.l.bf16 %v273_v14  ;;  %v262_v22 = vunpack.c.h.bf16 %v273_v14 }
   0x7   :  { %288 = vmatpush3.bf16.msra.mxu0 %v306_v1  ;;  %v256_v17 = vld [vmem:[%s397_s4] sm:$0xff]  }
   0x8   :  { %289 = vmatprep.subr.bf16.mxu0 %v307_v2  ;;  %v257_v23 = vunpack.c.l.bf16 %v256_v17  ;;  %v258_v28 = vunpack.c.h.bf16 %v256_v17 }
   0xb   :  { %290 = vmatpush3.bf16.msra.mxu0 %v307_v2 }
   0xc   :  { %291 = vmatprep.subr.bf16.mxu0 %v308_v3 }
   0xf   :  { %292 = vmatpush3.bf16.msra.mxu0 %v308_v3 }
  0x10   :  { %293 = vmatprep.subr.bf16.mxu0 %v309_v5 }
  0x13   :  { %294 = vmatpush3.bf16.msra.mxu0 %v309_v5 }
  0x14   :  { %295 = vmatprep.subr.bf16.mxu0 %v310_v6 }
  0x17   :  { %296 = vmatpush3.bf16.msra.mxu0 %v310_v6 }
  0x18   :  { %297 = vmatprep.subr.bf16.mxu0 %v311_v7 }
  0x1b   :  { %298 = vmatpush3.bf16.msra.mxu0 %v311_v7 }
  0x1c   :  { %299 = vmatprep.subr.bf16.mxu0 %v312_v8 }
  0x1f   :  { %300 = vmatpush3.bf16.msra.mxu0 %v312_v8 }
  0x22   :  { %302 = vmatmul.mubr.bf16.vlgmr.msra.gmra.mxu0 %v314_v9 }
  0xe2   :  { %v303_v11 = vpop.f32.mrf.mxu0 }
  0xe3   :  { %v186_v12 = vmul.f32 %v303_v11, %v245_v10 }
  0xe4   :  { %v147_v15 = vpop.f32.mrf.mxu0 }
  0xe5   :  { %v184_v16 = vmul.f32 %v245_v10, %v147_v15  ;;  %v197_v19 = vadd.f32 %v246_v13, %v186_v12 }
  0xe6   :  { %v304_v18 = vpop.f32.mrf.mxu0 }
  0xe7   :  { %v187_v21 = vmul.f32 %v304_v18, %v245_v10  ;;  %v195_v25 = vadd.f32 %v246_v13, %v184_v16  ;;  %v209_v29 = vadd.f32 %v261_v20, %v197_v19 }
  0xe8   :  { %v150_v24 = vpop.f32.mrf.mxu0 }
  0xe9   :  { %v198_v26 = vadd.f32 %v246_v13, %v187_v21  ;;  %v185_v27 = vmul.f32 %v245_v10, %v150_v24  ;;  %v207_v32 = vadd.f32 %v257_v23, %v195_v25 }
  0xeb   :  { %v210_v30 = vadd.f32 %v262_v22, %v198_v26  ;;  %v196_v31 = vadd.f32 %v246_v13, %v185_v27 }
  0xed   :  { %v271_v33 = vpack.c.bf16 %v210_v30, %v209_v29  ;;  %v208_v34 = vadd.f32 %v258_v28, %v196_v31 }
  0xef   :  { %274 = vst [vmem:[%s398_s5 + $0x8] sm:$0xff] %v271_v33   ;;  %v266_v35 = vpack.c.bf16 %v208_v34, %v207_v32 }
  0xf1   :  { %267 = vst [vmem:[%s398_s5] sm:$0xff] %v266_v35  }

// kernel: _lambda_.19
= control target key start
LH: loop header
LB: loop body
LE: loop exit
PB: predicated region body
PF: predicated region fallthrough
CT: control target
= control target key end

     0   :  { %9 = vsyncpa [#allocation4], 0  ;;  %s955_s0 = inlined_call_operand.vmem [shape: bf16[2,16,128], index: 0, kind: input, shape index: {}]   ;;  %s956_s1 = inlined_call_operand.vmem [shape: bf16[128,128], index: 1, kind: input, shape index: {}]   ;;  %s957_s2 = inlined_call_operand.vmem [shape: f32[1,128], index: 2, kind: input, shape index: {}]   ;;  %s958_s3 = inlined_call_operand.vmem [shape: f32[1,128], index: 3, kind: input, shape index: {}]   ;;  %s959_s4 = inlined_call_operand.hbm [shape: f32[2,1,128], index: 4, kind: output, shape index: {}]  }
   0x1   :  { %11 = vsyncpa [#allocation4 + $0x1], 0  ;;  %s826_s15 = smov 0   ;;  %s828_s16 = smov 0  }
   0x2   :  { %s830_s17 = smov 0   ;;  %s832_s18 = smov 0  }
   0x3   :  { %s834_s19 = smov 0   ;;  %s836_s20 = smov 0  }
   0x4 LB: > { %s590_s21 = sadd.s32 4294967295, %s796_s20   ;;  %s591_s22 = sadd.s32 4294967294, %s796_s20   ;;  %s796_s20 = sphi %s836_s20, %s17_s20   ;;  %s792_s19 = sphi %s834_s19, %s966_s19   ;;  %s788_s18 = sphi %s832_s18, %s965_s18   ;;  %s784_s17 = sphi %s830_s17, %s964_s17   ;;  %s780_s16 = sphi %s828_s16, %s963_s16   ;;  %s776_s15 = sphi %s826_s15, %s962_s15  }
   0x5   : > { %s36_s23 = sadd.s32 1, %s792_s19  ;;  %s153_s24 = sadd.s32 1, %s784_s17 }
   0x6   : > { %p38_p0 = scmp.ge.s32.totalorder %s36_s23, 2  ;;  %p163_p1 = scmp.ne.s32.totalorder %s784_s17, %s780_s16 }
   0x7   : > { %p164_p2 = scmp.eq.s32.totalorder %s590_s21, 1  ;;  %p169_p3 = scmp.ne.s32.totalorder %s780_s16, %s776_s15 }
   0x8   : > { %s968_s23 = smov (%p38_p0, %s36_s23), 0  ;;  %p170_p5 = scmp.eq.s32.totalorder %s591_s22, 1 }
   0x9   : > { %p866_p4 = por %p164_p2, %p163_p1  ;;  %s148_s26 = ssub.s32 %s792_s19, %s968_s23 }
   0xa   : > { %p597_p6 = scmp.ge.s32.totalorder %s796_s20, 1  ;;  %p151_p7 = scmp.eq.s32.totalorder %s148_s26, 0 }
   0xb   : > { %p873_p8 = por %p170_p5, %p169_p3  ;;  %p223_p9 = scmp.lt.s32.totalorder %s796_s20, 3 }
   0xc   : > { %s879_s28 = scalar_select %p151_p7, %s784_s17, %s153_s24  }
   0xd   : > { %p224_p10 = pnand %p597_p6, %p223_p9 }
   0xe   : > { %p265_p11 = scmp.lt.s32.totalorder (!%p224_p10), %s788_s18, 1  ;;  %s263_s12 = sand.u32 (!%p224_p10), 1, %s780_s16  }
   0xf   : > { %227 = sbr.rel (%p224_p10) target bundleno = 317 (0x13d), region = 36  ;;  %s264_s14 = scalar_lea.vmem (!%p224_p10), [#allocation3], %s263_s12 }
  0x10   : > { %s475_s21 = sshll.u32 (!%p224_p10), %s264_s14, 4  ;;  %s462_s29 = scalar_lea.sflag (!%p224_p10), [#allocation4], %s263_s12  ;;  %s476_s21 = int_to_ptr.vmem [resolvable:$true] %s475_s21 }
  0x11   : > { %s720_s30 = scalar_lea.vmem (!%p224_p10), %s476_s21, 16  ;;  %s800_s5 = smov (!%p224_p10), [#allocation3]  }
  0x12   : > { %p721_p12 = scmp.ne.s32.totalorder (!%p224_p10), %s476_s21, %s720_s30  ;;  %s724_s6 = sshll.u32 (!%p224_p10), %s800_s5, 4  ;;  %s725_s6 = int_to_ptr.vmem [resolvable:$false] %s724_s6 }
  0x13   : > { %p727_p1 = scmp.lt.s32.totalorder (!%p224_p10), %s476_s21, %s725_s6 }
  0x14   : > { %v703_v0 = vld [vmem:[%s956_s1 + $0x38] sm:$0xff]   ;;  %v798_v1 = vmov 0.0   ;;  %v704_v2 = vld [vmem:[%s956_s1 + $0x30] sm:$0xff]   ;;  %vm799_vm0 = vmmov 0   ;;  %s266_s7 = scalar_select %p265_p11, %s788_s18, 1  ;;  %v705_v3 = vld [vmem:[%s956_s1 + $0x28] sm:$0xff]  }
  0x15   : > { %626 = vmatprep.subr.bf16.mxu0 %v798_v1  ;;  %642 = vmatprep.mubr.msk.bf16.mxu0 %vm799_vm0, %v798_v1  ;;  %v706_v4 = vld [vmem:[%s956_s1 + $0x20] sm:$0xff]   ;;  %v707_v5 = vld [vmem:[%s956_s1 + $0x18] sm:$0xff]   ;;  %v708_v6 = vld [vmem:[%s956_s1 + $0x10] sm:$0xff]   ;;  %p722_p13 = pnand %p721_p12, %p866_p4 }
  0x16   : > { %627 = vmatpush3.bf16.msra.mxu0 %v703_v0  ;;  %s616_s10 = sshll.u32 %s266_s7, 3  ;;  %v709_v7 = vld [vmem:[%s956_s1 + $0x8] sm:$0xff]   ;;  %v710_v8 = vld [vmem:[%s956_s1] sm:$0xff]  }
  0x17   : > { %628 = vmatprep.subr.bf16.mxu0 %v798_v1  ;;  %s272_s13 = scalar_lea.vmem %s955_s0, %s616_s10  ;;  %v609_v10 = vld [vmem:[%s957_s2] ss:$0 sm:$0xff]  ;;  %p723_p0 = pneg %p722_p13 }
  0x18   : > { %v711_v9 = vld [vmem:[%s272_s13] sm:$0xff]   ;;  %s613_s13 = sshll.u32 %s788_s18, 4  ;;  %s726_s18 = scalar_lea.vmem %s725_s6, 32 }
  0x19   : > { %v610_v12 = vld [vmem:[%s958_s3] ss:$0 sm:$0xff]  ;;  %s473_s26 = scalar_lea.hbm %s959_s4, %s613_s13  ;;  %p728_p2 = scmp.lt.s32.totalorder %s726_s18, %s720_s30 }
  0x1a   : > { %629 = vmatpush3.bf16.msra.mxu0 %v704_v2 }
  0x1b   : > { %630 = vmatprep.subr.bf16.mxu0 %v798_v1  ;;  %p729_p3 = por %p728_p2, %p727_p1 }
  0x1d   : > { %p730_p5 = pnand %p729_p3, %p723_p0 }
  0x1e   : > { %631 = vmatpush3.bf16.msra.mxu0 %v705_v3 }
  0x1f   : > { %632 = vmatprep.subr.bf16.mxu0 %v798_v1 }
  0x22   : > { %633 = vmatpush3.bf16.msra.mxu0 %v706_v4 }
  0x23   : > { %634 = vmatprep.subr.bf16.mxu0 %v798_v1 }
  0x26   : > { %635 = vmatpush3.bf16.msra.mxu0 %v707_v5 }
  0x27   : > { %636 = vmatprep.subr.bf16.mxu0 %v798_v1 }
  0x2a   : > { %637 = vmatpush3.bf16.msra.mxu0 %v708_v6 }
  0x2b   : > { %638 = vmatprep.subr.bf16.mxu0 %v798_v1 }
  0x2e   : > { %639 = vmatpush3.bf16.msra.mxu0 %v709_v7 }
  0x2f   : > { %640 = vmatprep.subr.bf16.mxu0 %v798_v1 }
  0x32   : > { %641 = vmatpush3.bf16.msra.mxu0 %v710_v8 }
  0x35   : > { %643 = vmatmul.mubr.bf16.vlgmr.msra.gmra.mxu0 %v711_v9 }
  0xf5   : > { %v403_v11 = vpop.f32.mrf.mxu0 }
  0xf6   : > { %v426_v13 = vmul.f32 %v609_v10, %v403_v11 }
  0xf7   : > { %v644_v14 = vpop.f32.mrf.mxu0 }
  0xf8   : > { %v435_v15 = vadd.f32 %v610_v12, %v426_v13 }
  0xf9   : > { %v406_v16 = vpop.f32.mrf.mxu0 }
  0xfa   : > { %v611_v17 = vmul.f32 -1.442695, %v435_v15  ;;  %v427_v18 = vmul.f32 %v609_v10, %v406_v16 }
  0xfb   : > { %v645_v19 = vpop.f32.mrf.mxu0 }
  0xfc   : > { %712 = vpow2.f32 %v611_v17  ;;  %v436_v20 = vadd.f32 %v610_v12, %v427_v18 }
  0xfe   : > { %v612_v21 = vmul.f32 -1.442695, %v436_v20 }
 0x100   : > { %714 = vpow2.f32 %v612_v21 }
 0x109   : > { %v713_v22 = vpop.eup %712 }
 0x10a   : > { %v443_v23 = vadd.f32 1.0, %v713_v22 }
 0x10c   : > { %716 = vrcp.f32 %v443_v23 }
 0x10d   : > { %v715_v24 = vpop.eup %714 }
 0x10e   : > { %v444_v25 = vadd.f32 1.0, %v715_v24 }
 0x110   : > { %718 = vrcp.f32 %v444_v25 }
 0x119   : > { %v717_v26 = vpop.eup %716 }
 0x11a   : > { %v449_v28 = vmul.f32 %v717_v26, %v435_v15 }
 0x11d   : > { %v719_v27 = vpop.eup %718 }
 0x11e   : > { %v450_v29 = vmul.f32 %v719_v27, %v436_v20 }
 0x120   : > { %v451_v30 = vadd.f32 %v450_v29, %v449_v28 }
 0x122   : > { %v452_v31 = vrot.slane %v451_v30, 4 }
 0x124   : > { %v453_v32 = vadd.f32 %v452_v31, %v451_v30 }
 0x126   : > { %v454_v33 = vrot.slane %v453_v32, 2 }
 0x128   : > { %v455_v34 = vadd.f32 %v454_v33, %v453_v32 }
 0x12a   : > { %v456_v35 = vrot.slane %v455_v34, 1 }
 0x12c   : > { %v457_v36 = vadd.f32 %v456_v35, %v455_v34 }
 0x12e   : > { %v459_v37 = vmul.f32 0.0625, %v457_v36 }
 0x130   : > { %460 = vst [vmem:[%s264_s14] sm:$0x1] %v459_v37 }
 0x131   : > { %733 = shalt.err (!%p730_p5)
}
 0x132   : > { %s734_s7 = scalar_lea.hbm %s473_s26, 16  ;;  %s738_s10 = scalar_lea.hbm %s959_s4, 32 }
 0x133   : > { %p735_p6 = scmp.ne.s32.totalorder %s473_s26, %s734_s7  ;;  %p739_p10 = scmp.lt.s32.totalorder %s473_s26, %s959_s4 }
 0x134   : > { %p740_p11 = scmp.lt.s32.totalorder %s738_s10, %s734_s7 }
 0x135   : > { %p736_p7 = pnand %p735_p6, %p866_p4 }
 0x136   : > { %p741_p12 = por %p740_p11, %p739_p10 }
 0x137   : > { %p737_p9 = pneg %p736_p7 }
 0x139   : > { %p742_p13 = pnand %p741_p12, %p737_p9 }
 0x13b   : > { %745 = shalt.err (!%p742_p13)
}
 0x13c   : > { %646 = dma.vmem_to_hbm [thread:$0]  (%p866_p4), %s476_s21, 16, %s473_s26, %s462_s29  }
 0x13d PF: > { %p652_p0 = scmp.ge.s32.totalorder %s796_s20, 2  ;;  %s487_s13 = sand.u32 1, %s776_s15  }
 0x13e   : > { %s488_s14 = scalar_lea.sflag [#allocation4], %s487_s13 }
 0x13f   : > { %p649_p1 = pnand %p652_p0, %p873_p8 }
 0x141   : > { %p650_p2 = pneg %p649_p1 }
 0x143   : > { %771 = dma.done.wait (%p650_p2), %s488_s14, 16  }
 0x144   : > { %773 = vsyncadd (%p650_p2), %s488_s14, 4294967280  ;;  %s17_s20 = sadd.s32 1, %s796_s20   ;;  %s962_s15 = smov %s780_s16 }
 0x145   : > { %p14_p3 = scmp.ge.s32.totalorder %s17_s20, 4   ;;  %s963_s16 = smov %s784_s17 }
 0x146   : > { %s964_s17 = smov %s879_s28  ;;  %s965_s18 = smov %s792_s19 }
 0x147   : > { %s966_s19 = smov %s968_s23  ;;  %16 = sbr.rel (!%p14_p3) target bundleno = 4 (0x4), region = 88 }
 0x14c   :  { %492 = vsyncpa [#allocation4], 1 }
 0x14d   :  { %494 = vsyncpa [#allocation4 + $0x1], 1 }

</bundles_post_ra>
